<compile_context>
chip_gen: v5e
topology: v5e:2x2
jax: 0.10.0
libtpu: 0.0.40
codegen_flags: <defaults>
</compile_context>

<pallas_src>
import functools

import jax
import jax.numpy as jnp
from jax.experimental import pallas as pl
from jax.experimental.pallas import tpu as pltpu


_PER_STEP_VMEM_BUDGET = 24 << 20   # pipelined buffer set per grid step (review: <= ~24 MiB on v7x)
_VMEM_LIMIT_BYTES = 48 << 20       # raise v5e(16 MiB)/v6e(32 MiB) scoped defaults; < v7x 64 MiB phys


def _round_up(v, m):
    return -(-v // m) * m


def _vmem_per_image_bytes(hp, wp, cin, ho, wo, cout, cbytes):
    """Rough VMEM bytes per image per grid step (incl. double-buffered input/output blocks)."""
    lane = 128
    sub_c = 8 * (4 // cbytes)                                              # sub-32-bit packs sublanes
    in_img = 2 * hp * _round_up(wp, sub_c) * _round_up(cin, lane) * cbytes   # x block, x2 buffers
    acc_img = ho * _round_up(wo, 8) * _round_up(cin, lane) * 4               # f32 scratch accumulator
    out_img = 2 * _round_up(cout, 8) * _round_up(ho * wo, lane) * 4          # f32 out block, x2 buffers
    return in_img + acc_img + out_img


# ----------------------------- Pallas kernel --------------------------------------------------

def _sepconv_kernel(xp_ref, wdw_ref, wpw_ref, o_ref, acc_ref, *,
                    ksize, stride, dilation, ho, wo, block_n):
    """Fused depthwise(KxK, groups=Cin) + pointwise(1x1), bias=False, for B images.

    xp_ref : (B, Hp, Wp, Cin)   zero-padded NHWC input block (VMEM, compute dtype)
    wdw_ref: (K*K, Cin)         depthwise weights, tap-major
    wpw_ref: (Cout, Cin)        pointwise weights (native PyTorch order)
    o_ref  : (B, Cout, Ho*Wo)   f32 output block (lane-dense when Ho*Wo % 128 == 0)
    acc_ref: (B, Ho, Wo, Cin)   f32 VMEM scratch accumulator
    """
    cin = acc_ref.shape[-1]

    # ---- depthwise: K*K shifted taps accumulated into the f32 VMEM scratch (VPU work) ----
    # Each tap is a static slice of the Ref (not of a materialized tile), so only one tap plus
    # the accumulator is live in vregs.  Taps with x0 in {1,..,K-1} slice along the sublane
    # axis (sublane shifts); acceptable cost per the review.
    for t in range(ksize * ksize):
        dy, dx = divmod(t, ksize)
        y0, x0 = dy * dilation, dx * dilation
        if stride == 1:
            tap = xp_ref[:, y0:y0 + ho, x0:x0 + wo, :]
        else:
            # TODO(synk): strided ref reads for stride>1 are untested on Mosaic (demo uses 1).
            tap = xp_ref[:, pl.ds(y0, ho, stride), pl.ds(x0, wo, stride), :]
        w_t = wdw_ref[t:t + 1, :]                 # (1, Cin) per-lane scale, broadcasts on lanes
        term = tap * w_t                          # compute-dtype VPU multiply (bf16 on v6e/v7x)
        if t == 0:
            acc_ref[...] = term.astype(jnp.float32)
        else:
            acc_ref[...] += term                  # f32 accumulate (term promoted)

    # ---- pointwise: per-image (Cout,Cin) x (Cin, Ho*Wo) MXU matmul, NCHW-direct output ----
    wpw = wpw_ref[...]                            # (Cout, Cin)
    for b in range(block_n):
        d_b = acc_ref[b].reshape(ho * wo, cin).astype(wpw.dtype)     # (M, Cin)
        # "NT" matmul (contract both operands on their last dim) — the q @ k^T pattern —
        # yields (Cout, Ho*Wo) so the wrapper's NCHW epilogue is a free reshape.
        o_ref[b] = jax.lax.dot_general(
            wpw, d_b, (((1,), (1,)), ((), ())),
            preferred_element_type=jnp.float32).astype(o_ref.dtype)


# ----------------------------- wrapper ---------------------------------------------------------

def separable_conv2d(x_nchw, w_dw, w_pw, *, kernel_size=3, stride=1, padding=1, dilation=1,
                     compute_dtype=jnp.bfloat16):
    """SeparableConv2d forward (bias=False for both convs, as in the module default).

    x_nchw: (N, Cin, H, W)      — PyTorch NCHW input
    w_dw  : (Cin, 1, K, K)      — depthwise weight (groups=Cin)
    w_pw  : (Cout, Cin, 1, 1)   — pointwise weight
    Returns (N, Cout, Ho, Wo) float32.
    compute_dtype=bfloat16 halves HBM input traffic (f32 accumulation throughout); pass
    jnp.float32 for a bit-tighter numerics (recommended on v5e which has no bf16 VPU).
    """
    n, cin, h, w = x_nchw.shape
    cout = w_pw.shape[0]
    k = kernel_size
    ho = (h + 2 * padding - dilation * (k - 1) - 1) // stride + 1
    wo = (w + 2 * padding - dilation * (k - 1) - 1) // stride + 1
    hp, wp = h + 2 * padding, w + 2 * padding

    # --- pick images-per-step B from the VMEM budget, keep >= 2 grid steps when N >= 2 -------
    cbytes = jnp.dtype(compute_dtype).itemsize
    per_img = _vmem_per_image_bytes(hp, wp, cin, ho, wo, cout, cbytes)
    max_b = max(1, int(_PER_STEP_VMEM_BUDGET // per_img))
    block_n = min(max_b, max(1, -(-n // 2))) if n >= 2 else 1
    block_n = max(1, min(block_n, n))
    n_pad = _round_up(n, block_n)
    grid_n = n_pad // block_n

    # NCHW -> NHWC (channels on the 128-lane axis) + spatial zero-pad + batch pad, one fused
    # XLA pass.  (See TODO(synk) at top of file about removing this last wrapper HBM pass.)
    x = jnp.transpose(x_nchw, (0, 2, 3, 1)).astype(compute_dtype)
    x = jnp.pad(x, ((0, n_pad - n), (padding, padding), (padding, padding), (0, 0)))

    # Depthwise weights tap-major (K*K, Cin); pointwise stays in PyTorch (Cout, Cin) order
    # because the kernel computes the pointwise matmul transposed (NCHW-direct output).
    wdw = jnp.transpose(w_dw.reshape(cin, k * k), (1, 0)).astype(compute_dtype)
    wpw = w_pw.reshape(cout, cin).astype(compute_dtype)

    kernel = functools.partial(_sepconv_kernel, ksize=k, stride=stride, dilation=dilation,
                               ho=ho, wo=wo, block_n=block_n)

    cost = pl.CostEstimate(
        flops=2 * n * ho * wo * cin * (k * k + cout),
        transcendentals=0,
        bytes_accessed=int(x.size * cbytes + (wdw.size + wpw.size) * cbytes
                           + n_pad * cout * ho * wo * 4),
    )

    out = pl.pallas_call(
        kernel,
        out_shape=jax.ShapeDtypeStruct((n_pad, cout, ho * wo), jnp.float32),
        grid_spec=pltpu.PrefetchScalarGridSpec(
            num_scalar_prefetch=0,
            grid=(grid_n,),                                           # B images per grid step
            in_specs=[
                pl.BlockSpec((block_n, hp, wp, cin), lambda i: (i, 0, 0, 0)),  # padded images
                pl.BlockSpec((k * k, cin), lambda i: (0, 0)),                  # depthwise weights
                pl.BlockSpec((cout, cin), lambda i: (0, 0)),                   # pointwise weights
            ],
            out_specs=pl.BlockSpec((block_n, cout, ho * wo), lambda i: (i, 0, 0)),
            scratch_shapes=[pltpu.VMEM((block_n, ho, wo, cin), jnp.float32)],  # dw accumulator
        ),
        compiler_params=pltpu.CompilerParams(
            dimension_semantics=("parallel",),
            vmem_limit_bytes=_VMEM_LIMIT_BYTES,
        ),
        cost_estimate=cost,
    )(x, wdw, wpw)

    # Output is already (N, Cout, Ho*Wo): the NCHW epilogue is a free reshape (no HBM transpose).
    return out[:n].reshape(n, cout, ho, wo)


# ----------------------------- pure-JAX reference ----------------------------------------------

def separable_conv2d_ref(x, w_dw, w_pw, *, stride, padding, dilation):
    cin = x.shape[1]
    dn = jax.lax.conv_dimension_numbers(x.shape, w_dw.shape, ('NCHW', 'OIHW', 'NCHW'))
    d = jax.lax.conv_general_dilated(
        x, w_dw, window_strides=(stride, stride),
        padding=[(padding, padding), (padding, padding)],
        rhs_dilation=(dilation, dilation),
        dimension_numbers=dn, feature_group_count=cin)
    dn2 = jax.lax.conv_dimension_numbers(d.shape, w_pw.shape, ('NCHW', 'OIHW', 'NCHW'))
    return jax.lax.conv_general_dilated(d, w_pw, (1, 1), [(0, 0), (0, 0)],
                                        dimension_numbers=dn2)


# ----------------------------- demo -------------------------------------------------------------

if __name__ == "__main__":
    key = jax.random.PRNGKey(0)
    kx, kd, kp = jax.random.split(key, 3)

    N, CIN, H, W = 2, 32, 16, 16
    COUT, K, STRIDE, PAD, DIL = 128, 3, 1, 1, 1      # Ho*Wo=256, Cout=128 -> lane-dense stores

    x = jax.random.normal(kx, (N, CIN, H, W), jnp.float32)
    w_dw = jax.random.normal(kd, (CIN, 1, K, K), jnp.float32) / (K * K)
    w_pw = jax.random.normal(kp, (COUT, CIN, 1, 1), jnp.float32) / (CIN ** 0.5)

    fwd = jax.jit(functools.partial(separable_conv2d, kernel_size=K, stride=STRIDE,
                                    padding=PAD, dilation=DIL))
    out = jax.block_until_ready(fwd(x, w_dw, w_pw))
    assert out.shape == (N, COUT, H, W) and out.dtype == jnp.float32

    ref = separable_conv2d_ref(x, w_dw, w_pw, stride=STRIDE, padding=PAD, dilation=DIL)
    rel_err = float(jnp.max(jnp.abs(out - ref)) / jnp.max(jnp.abs(ref)))
    # bf16 inputs/weights with f32 accumulation vs a pure-f32 reference.
    assert rel_err < 5e-2, rel_err

    print("KERNEL_OK")
</pallas_src>

<mosaic_0001>
module attributes {stable_mosaic.version = 11 : i64} {
  func.func @_sepconv_kernel(%arg0: i32, %arg1: memref<1x18x18x32xbf16, #tpu.memory_space<vmem>>, %arg2: memref<9x32xbf16, #tpu.memory_space<vmem>>, %arg3: memref<128x32xbf16, #tpu.memory_space<vmem>>, %arg4: memref<1x128x256xf32, #tpu.memory_space<vmem>>, %arg5: memref<1x16x16x32xf32, #tpu.memory_space<vmem>>) attributes {dimension_semantics = [#tpu.dimension_semantics<parallel>], iteration_bounds = array<i64: 2>, scalar_prefetch = 0 : i64, scratch_operands = 1 : i64, tpu.core_type = #tpu.core_type<tc>, window_params = [{transform_indices = @transform_0, window_bounds = array<i64: 1, 18, 18, 32>}, {pipeline_mode = #tpu.pipeline_mode<synchronous>, transform_indices = @transform_1, window_bounds = array<i64: 9, 32>}, {pipeline_mode = #tpu.pipeline_mode<synchronous>, transform_indices = @transform_2, window_bounds = array<i64: 128, 32>}, {transform_indices = @transform_3, window_bounds = array<i64: 1, 128, 256>}]} {
    %c0 = arith.constant 0 : index
    %c0_0 = arith.constant 0 : index
    %c0_1 = arith.constant 0 : index
    %c0_2 = arith.constant 0 : index
    %0 = vector.load %arg1[%c0, %c0_0, %c0_1, %c0_2] : memref<1x18x18x32xbf16, #tpu.memory_space<vmem>>, vector<1x16x16x32xbf16>
    %c0_3 = arith.constant 0 : index
    %c0_4 = arith.constant 0 : index
    %1 = vector.load %arg2[%c0_3, %c0_4] : memref<9x32xbf16, #tpu.memory_space<vmem>>, vector<1x32xbf16>
    %2 = vector.shape_cast %1 : vector<1x32xbf16> to vector<1x1x1x32xbf16>
    %3 = vector.broadcast %2 : vector<1x1x1x32xbf16> to vector<1x16x16x32xbf16>
    %4 = arith.mulf %0, %3 : vector<1x16x16x32xbf16>
    %5 = arith.extf %4 : vector<1x16x16x32xbf16> to vector<1x16x16x32xf32>
    %c0_5 = arith.constant 0 : index
    %c0_6 = arith.constant 0 : index
    %c0_7 = arith.constant 0 : index
    %c0_8 = arith.constant 0 : index
    %6 = vector.load %arg5[%c0_5, %c0_6, %c0_7, %c0_8] : memref<1x16x16x32xf32, #tpu.memory_space<vmem>>, vector<1x16x16x32xf32>
    tpu.vector_store %arg5[%c0_5, %c0_6, %c0_7, %c0_8], %5 {strides = array<i32>} : memref<1x16x16x32xf32, #tpu.memory_space<vmem>>, vector<1x16x16x32xf32>,
    %c0_9 = arith.constant 0 : index
    %c0_10 = arith.constant 0 : index
    %c1 = arith.constant 1 : index
    %c0_11 = arith.constant 0 : index
    %7 = vector.load %arg1[%c0_9, %c0_10, %c1, %c0_11] : memref<1x18x18x32xbf16, #tpu.memory_space<vmem>>, vector<1x16x16x32xbf16>
    %c1_12 = arith.constant 1 : index
    %c0_13 = arith.constant 0 : index
    %8 = vector.load %arg2[%c1_12, %c0_13] : memref<9x32xbf16, #tpu.memory_space<vmem>>, vector<1x32xbf16>
    %9 = vector.shape_cast %8 : vector<1x32xbf16> to vector<1x1x1x32xbf16>
    %10 = vector.broadcast %9 : vector<1x1x1x32xbf16> to vector<1x16x16x32xbf16>
    %11 = arith.mulf %7, %10 : vector<1x16x16x32xbf16>
    %c0_14 = arith.constant 0 : index
    %c0_15 = arith.constant 0 : index
    %c0_16 = arith.constant 0 : index
    %c0_17 = arith.constant 0 : index
    %12 = vector.load %arg5[%c0_14, %c0_15, %c0_16, %c0_17] : memref<1x16x16x32xf32, #tpu.memory_space<vmem>>, vector<1x16x16x32xf32>
    %13 = arith.extf %11 : vector<1x16x16x32xbf16> to vector<1x16x16x32xf32>
    %14 = arith.addf %12, %13 : vector<1x16x16x32xf32>
    %c0_18 = arith.constant 0 : index
    %c0_19 = arith.constant 0 : index
    %c0_20 = arith.constant 0 : index
    %c0_21 = arith.constant 0 : index
    %15 = vector.load %arg5[%c0_18, %c0_19, %c0_20, %c0_21] : memref<1x16x16x32xf32, #tpu.memory_space<vmem>>, vector<1x16x16x32xf32>
    tpu.vector_store %arg5[%c0_18, %c0_19, %c0_20, %c0_21], %14 {strides = array<i32>} : memref<1x16x16x32xf32, #tpu.memory_space<vmem>>, vector<1x16x16x32xf32>,
    %c0_22 = arith.constant 0 : index
    %c0_23 = arith.constant 0 : index
    %c2 = arith.constant 2 : index
    %c0_24 = arith.constant 0 : index
    %16 = vector.load %arg1[%c0_22, %c0_23, %c2, %c0_24] : memref<1x18x18x32xbf16, #tpu.memory_space<vmem>>, vector<1x16x16x32xbf16>
    %c2_25 = arith.constant 2 : index
    %c0_26 = arith.constant 0 : index
    %17 = vector.load %arg2[%c2_25, %c0_26] : memref<9x32xbf16, #tpu.memory_space<vmem>>, vector<1x32xbf16>
    %18 = vector.shape_cast %17 : vector<1x32xbf16> to vector<1x1x1x32xbf16>
    %19 = vector.broadcast %18 : vector<1x1x1x32xbf16> to vector<1x16x16x32xbf16>
    %20 = arith.mulf %16, %19 : vector<1x16x16x32xbf16>
    %c0_27 = arith.constant 0 : index
    %c0_28 = arith.constant 0 : index
    %c0_29 = arith.constant 0 : index
    %c0_30 = arith.constant 0 : index
    %21 = vector.load %arg5[%c0_27, %c0_28, %c0_29, %c0_30] : memref<1x16x16x32xf32, #tpu.memory_space<vmem>>, vector<1x16x16x32xf32>
    %22 = arith.extf %20 : vector<1x16x16x32xbf16> to vector<1x16x16x32xf32>
    %23 = arith.addf %21, %22 : vector<1x16x16x32xf32>
    %c0_31 = arith.constant 0 : index
    %c0_32 = arith.constant 0 : index
    %c0_33 = arith.constant 0 : index
    %c0_34 = arith.constant 0 : index
    %24 = vector.load %arg5[%c0_31, %c0_32, %c0_33, %c0_34] : memref<1x16x16x32xf32, #tpu.memory_space<vmem>>, vector<1x16x16x32xf32>
    tpu.vector_store %arg5[%c0_31, %c0_32, %c0_33, %c0_34], %23 {strides = array<i32>} : memref<1x16x16x32xf32, #tpu.memory_space<vmem>>, vector<1x16x16x32xf32>,
    %c0_35 = arith.constant 0 : index
    %c1_36 = arith.constant 1 : index
    %c0_37 = arith.constant 0 : index
    %c0_38 = arith.constant 0 : index
    %25 = vector.load %arg1[%c0_35, %c1_36, %c0_37, %c0_38] : memref<1x18x18x32xbf16, #tpu.memory_space<vmem>>, vector<1x16x16x32xbf16>
    %c3 = arith.constant 3 : index
    %c0_39 = arith.constant 0 : index
    %26 = vector.load %arg2[%c3, %c0_39] : memref<9x32xbf16, #tpu.memory_space<vmem>>, vector<1x32xbf16>
    %27 = vector.shape_cast %26 : vector<1x32xbf16> to vector<1x1x1x32xbf16>
    %28 = vector.broadcast %27 : vector<1x1x1x32xbf16> to vector<1x16x16x32xbf16>
    %29 = arith.mulf %25, %28 : vector<1x16x16x32xbf16>
    %c0_40 = arith.constant 0 : index
    %c0_41 = arith.constant 0 : index
    %c0_42 = arith.constant 0 : index
    %c0_43 = arith.constant 0 : index
    %30 = vector.load %arg5[%c0_40, %c0_41, %c0_42, %c0_43] : memref<1x16x16x32xf32, #tpu.memory_space<vmem>>, vector<1x16x16x32xf32>
    %31 = arith.extf %29 : vector<1x16x16x32xbf16> to vector<1x16x16x32xf32>
    %32 = arith.addf %30, %31 : vector<1x16x16x32xf32>
    %c0_44 = arith.constant 0 : index
    %c0_45 = arith.constant 0 : index
    %c0_46 = arith.constant 0 : index
    %c0_47 = arith.constant 0 : index
    %33 = vector.load %arg5[%c0_44, %c0_45, %c0_46, %c0_47] : memref<1x16x16x32xf32, #tpu.memory_space<vmem>>, vector<1x16x16x32xf32>
    tpu.vector_store %arg5[%c0_44, %c0_45, %c0_46, %c0_47], %32 {strides = array<i32>} : memref<1x16x16x32xf32, #tpu.memory_space<vmem>>, vector<1x16x16x32xf32>,
    %c0_48 = arith.constant 0 : index
    %c1_49 = arith.constant 1 : index
    %c1_50 = arith.constant 1 : index
    %c0_51 = arith.constant 0 : index
    %34 = vector.load %arg1[%c0_48, %c1_49, %c1_50, %c0_51] : memref<1x18x18x32xbf16, #tpu.memory_space<vmem>>, vector<1x16x16x32xbf16>
    %c4 = arith.constant 4 : index
    %c0_52 = arith.constant 0 : index
    %35 = vector.load %arg2[%c4, %c0_52] : memref<9x32xbf16, #tpu.memory_space<vmem>>, vector<1x32xbf16>
    %36 = vector.shape_cast %35 : vector<1x32xbf16> to vector<1x1x1x32xbf16>
    %37 = vector.broadcast %36 : vector<1x1x1x32xbf16> to vector<1x16x16x32xbf16>
    %38 = arith.mulf %34, %37 : vector<1x16x16x32xbf16>
    %c0_53 = arith.constant 0 : index
    %c0_54 = arith.constant 0 : index
    %c0_55 = arith.constant 0 : index
    %c0_56 = arith.constant 0 : index
    %39 = vector.load %arg5[%c0_53, %c0_54, %c0_55, %c0_56] : memref<1x16x16x32xf32, #tpu.memory_space<vmem>>, vector<1x16x16x32xf32>
    %40 = arith.extf %38 : vector<1x16x16x32xbf16> to vector<1x16x16x32xf32>
    %41 = arith.addf %39, %40 : vector<1x16x16x32xf32>
    %c0_57 = arith.constant 0 : index
    %c0_58 = arith.constant 0 : index
    %c0_59 = arith.constant 0 : index
    %c0_60 = arith.constant 0 : index
    %42 = vector.load %arg5[%c0_57, %c0_58, %c0_59, %c0_60] : memref<1x16x16x32xf32, #tpu.memory_space<vmem>>, vector<1x16x16x32xf32>
    tpu.vector_store %arg5[%c0_57, %c0_58, %c0_59, %c0_60], %41 {strides = array<i32>} : memref<1x16x16x32xf32, #tpu.memory_space<vmem>>, vector<1x16x16x32xf32>,
    %c0_61 = arith.constant 0 : index
    %c1_62 = arith.constant 1 : index
    %c2_63 = arith.constant 2 : index
    %c0_64 = arith.constant 0 : index
    %43 = vector.load %arg1[%c0_61, %c1_62, %c2_63, %c0_64] : memref<1x18x18x32xbf16, #tpu.memory_space<vmem>>, vector<1x16x16x32xbf16>
    %c5 = arith.constant 5 : index
    %c0_65 = arith.constant 0 : index
    %44 = vector.load %arg2[%c5, %c0_65] : memref<9x32xbf16, #tpu.memory_space<vmem>>, vector<1x32xbf16>
    %45 = vector.shape_cast %44 : vector<1x32xbf16> to vector<1x1x1x32xbf16>
    %46 = vector.broadcast %45 : vector<1x1x1x32xbf16> to vector<1x16x16x32xbf16>
    %47 = arith.mulf %43, %46 : vector<1x16x16x32xbf16>
    %c0_66 = arith.constant 0 : index
    %c0_67 = arith.constant 0 : index
    %c0_68 = arith.constant 0 : index
    %c0_69 = arith.constant 0 : index
    %48 = vector.load %arg5[%c0_66, %c0_67, %c0_68, %c0_69] : memref<1x16x16x32xf32, #tpu.memory_space<vmem>>, vector<1x16x16x32xf32>
    %49 = arith.extf %47 : vector<1x16x16x32xbf16> to vector<1x16x16x32xf32>
    %50 = arith.addf %48, %49 : vector<1x16x16x32xf32>
    %c0_70 = arith.constant 0 : index
    %c0_71 = arith.constant 0 : index
    %c0_72 = arith.constant 0 : index
    %c0_73 = arith.constant 0 : index
    %51 = vector.load %arg5[%c0_70, %c0_71, %c0_72, %c0_73] : memref<1x16x16x32xf32, #tpu.memory_space<vmem>>, vector<1x16x16x32xf32>
    tpu.vector_store %arg5[%c0_70, %c0_71, %c0_72, %c0_73], %50 {strides = array<i32>} : memref<1x16x16x32xf32, #tpu.memory_space<vmem>>, vector<1x16x16x32xf32>,
    %c0_74 = arith.constant 0 : index
    %c2_75 = arith.constant 2 : index
    %c0_76 = arith.constant 0 : index
    %c0_77 = arith.constant 0 : index
    %52 = vector.load %arg1[%c0_74, %c2_75, %c0_76, %c0_77] : memref<1x18x18x32xbf16, #tpu.memory_space<vmem>>, vector<1x16x16x32xbf16>
    %c6 = arith.constant 6 : index
    %c0_78 = arith.constant 0 : index
    %53 = vector.load %arg2[%c6, %c0_78] : memref<9x32xbf16, #tpu.memory_space<vmem>>, vector<1x32xbf16>
    %54 = vector.shape_cast %53 : vector<1x32xbf16> to vector<1x1x1x32xbf16>
    %55 = vector.broadcast %54 : vector<1x1x1x32xbf16> to vector<1x16x16x32xbf16>
    %56 = arith.mulf %52, %55 : vector<1x16x16x32xbf16>
    %c0_79 = arith.constant 0 : index
    %c0_80 = arith.constant 0 : index
    %c0_81 = arith.constant 0 : index
    %c0_82 = arith.constant 0 : index
    %57 = vector.load %arg5[%c0_79, %c0_80, %c0_81, %c0_82] : memref<1x16x16x32xf32, #tpu.memory_space<vmem>>, vector<1x16x16x32xf32>
    %58 = arith.extf %56 : vector<1x16x16x32xbf16> to vector<1x16x16x32xf32>
    %59 = arith.addf %57, %58 : vector<1x16x16x32xf32>
    %c0_83 = arith.constant 0 : index
    %c0_84 = arith.constant 0 : index
    %c0_85 = arith.constant 0 : index
    %c0_86 = arith.constant 0 : index
    %60 = vector.load %arg5[%c0_83, %c0_84, %c0_85, %c0_86] : memref<1x16x16x32xf32, #tpu.memory_space<vmem>>, vector<1x16x16x32xf32>
    tpu.vector_store %arg5[%c0_83, %c0_84, %c0_85, %c0_86], %59 {strides = array<i32>} : memref<1x16x16x32xf32, #tpu.memory_space<vmem>>, vector<1x16x16x32xf32>,
    %c0_87 = arith.constant 0 : index
    %c2_88 = arith.constant 2 : index
    %c1_89 = arith.constant 1 : index
    %c0_90 = arith.constant 0 : index
    %61 = vector.load %arg1[%c0_87, %c2_88, %c1_89, %c0_90] : memref<1x18x18x32xbf16, #tpu.memory_space<vmem>>, vector<1x16x16x32xbf16>
    %c7 = arith.constant 7 : index
    %c0_91 = arith.constant 0 : index
    %62 = vector.load %arg2[%c7, %c0_91] : memref<9x32xbf16, #tpu.memory_space<vmem>>, vector<1x32xbf16>
    %63 = vector.shape_cast %62 : vector<1x32xbf16> to vector<1x1x1x32xbf16>
    %64 = vector.broadcast %63 : vector<1x1x1x32xbf16> to vector<1x16x16x32xbf16>
    %65 = arith.mulf %61, %64 : vector<1x16x16x32xbf16>
    %c0_92 = arith.constant 0 : index
    %c0_93 = arith.constant 0 : index
    %c0_94 = arith.constant 0 : index
    %c0_95 = arith.constant 0 : index
    %66 = vector.load %arg5[%c0_92, %c0_93, %c0_94, %c0_95] : memref<1x16x16x32xf32, #tpu.memory_space<vmem>>, vector<1x16x16x32xf32>
    %67 = arith.extf %65 : vector<1x16x16x32xbf16> to vector<1x16x16x32xf32>
    %68 = arith.addf %66, %67 : vector<1x16x16x32xf32>
    %c0_96 = arith.constant 0 : index
    %c0_97 = arith.constant 0 : index
    %c0_98 = arith.constant 0 : index
    %c0_99 = arith.constant 0 : index
    %69 = vector.load %arg5[%c0_96, %c0_97, %c0_98, %c0_99] : memref<1x16x16x32xf32, #tpu.memory_space<vmem>>, vector<1x16x16x32xf32>
    tpu.vector_store %arg5[%c0_96, %c0_97, %c0_98, %c0_99], %68 {strides = array<i32>} : memref<1x16x16x32xf32, #tpu.memory_space<vmem>>, vector<1x16x16x32xf32>,
    %c0_100 = arith.constant 0 : index
    %c2_101 = arith.constant 2 : index
    %c2_102 = arith.constant 2 : index
    %c0_103 = arith.constant 0 : index
    %70 = vector.load %arg1[%c0_100, %c2_101, %c2_102, %c0_103] : memref<1x18x18x32xbf16, #tpu.memory_space<vmem>>, vector<1x16x16x32xbf16>
    %c8 = arith.constant 8 : index
    %c0_104 = arith.constant 0 : index
    %71 = vector.load %arg2[%c8, %c0_104] : memref<9x32xbf16, #tpu.memory_space<vmem>>, vector<1x32xbf16>
    %72 = vector.shape_cast %71 : vector<1x32xbf16> to vector<1x1x1x32xbf16>
    %73 = vector.broadcast %72 : vector<1x1x1x32xbf16> to vector<1x16x16x32xbf16>
    %74 = arith.mulf %70, %73 : vector<1x16x16x32xbf16>
    %c0_105 = arith.constant 0 : index
    %c0_106 = arith.constant 0 : index
    %c0_107 = arith.constant 0 : index
    %c0_108 = arith.constant 0 : index
    %75 = vector.load %arg5[%c0_105, %c0_106, %c0_107, %c0_108] : memref<1x16x16x32xf32, #tpu.memory_space<vmem>>, vector<1x16x16x32xf32>
    %76 = arith.extf %74 : vector<1x16x16x32xbf16> to vector<1x16x16x32xf32>
    %77 = arith.addf %75, %76 : vector<1x16x16x32xf32>
    %c0_109 = arith.constant 0 : index
    %c0_110 = arith.constant 0 : index
    %c0_111 = arith.constant 0 : index
    %c0_112 = arith.constant 0 : index
    %78 = vector.load %arg5[%c0_109, %c0_110, %c0_111, %c0_112] : memref<1x16x16x32xf32, #tpu.memory_space<vmem>>, vector<1x16x16x32xf32>
    tpu.vector_store %arg5[%c0_109, %c0_110, %c0_111, %c0_112], %77 {strides = array<i32>} : memref<1x16x16x32xf32, #tpu.memory_space<vmem>>, vector<1x16x16x32xf32>,
    %c0_113 = arith.constant 0 : index
    %c0_114 = arith.constant 0 : index
    %79 = vector.load %arg3[%c0_113, %c0_114] : memref<128x32xbf16, #tpu.memory_space<vmem>>, vector<128x32xbf16>
    %c0_115 = arith.constant 0 : index
    %c0_116 = arith.constant 0 : index
    %c0_117 = arith.constant 0 : index
    %c0_118 = arith.constant 0 : index
    %80 = vector.load %arg5[%c0_115, %c0_116, %c0_117, %c0_118] : memref<1x16x16x32xf32, #tpu.memory_space<vmem>>, vector<1x16x16x32xf32>
    %81 = vector.shape_cast %80 : vector<1x16x16x32xf32> to vector<16x16x32xf32>
    %82 = vector.shape_cast %81 : vector<16x16x32xf32> to vector<256x32xf32>
    %83 = arith.truncf %82 : vector<256x32xf32> to vector<256x32xbf16>
    %cst = arith.constant dense<0.000000e+00> : vector<128x256xf32>
    %84 = tpu.matmul %79, %83, %cst {dimension_numbers = #tpu.dot_dimension_numbers<[1], [1], [0], [0], [0, 0, 1, 0], [], []>} : vector<128x32xbf16>, vector<256x32xbf16>, vector<128x256xf32> -> vector<128x256xf32>
    %c0_119 = arith.constant 0 : index
    %c0_120 = arith.constant 0 : index
    %c0_121 = arith.constant 0 : index
    %85 = vector.load %arg4[%c0_119, %c0_120, %c0_121] : memref<1x128x256xf32, #tpu.memory_space<vmem>>, vector<1x128x256xf32>
    %86 = vector.shape_cast %85 : vector<1x128x256xf32> to vector<128x256xf32>
    %87 = vector.shape_cast %84 : vector<128x256xf32> to vector<1x128x256xf32>
    tpu.vector_store %arg4[%c0_119, %c0_120, %c0_121], %87 {strides = array<i32>} : memref<1x128x256xf32, #tpu.memory_space<vmem>>, vector<1x128x256xf32>,
    return
  }
  func.func @transform_0(%arg0: i32) -> (i32, i32, i32, i32) {
    %c0_i32 = arith.constant 0 : i32
    %c0_i32_0 = arith.constant 0 : i32
    %c0_i32_1 = arith.constant 0 : i32
    %c0_i32_2 = arith.constant 0 : i32
    return %arg0, %c0_i32, %c0_i32_0, %c0_i32_1 : i32, i32, i32, i32
  }
  func.func @transform_1(%arg0: i32) -> (i32, i32) {
    %c0_i32 = arith.constant 0 : i32
    %c0_i32_0 = arith.constant 0 : i32
    %c0_i32_1 = arith.constant 0 : i32
    return %c0_i32, %c0_i32_0 : i32, i32
  }
  func.func @transform_2(%arg0: i32) -> (i32, i32) {
    %c0_i32 = arith.constant 0 : i32
    %c0_i32_0 = arith.constant 0 : i32
    %c0_i32_1 = arith.constant 0 : i32
    return %c0_i32, %c0_i32_0 : i32, i32
  }
  func.func @transform_3(%arg0: i32) -> (i32, i32, i32) {
    %c0_i32 = arith.constant 0 : i32
    %c0_i32_0 = arith.constant 0 : i32
    %c0_i32_1 = arith.constant 0 : i32
    return %arg0, %c0_i32, %c0_i32_0 : i32, i32, i32
  }
}

</mosaic_0001>

<bundles_post_ra>
// kernel: separable_conv2d.1
= control target key start
LH: loop header
LB: loop body
LE: loop exit
PB: predicated region body
PF: predicated region fallthrough
CT: control target
= control target key end

     0   :  { %s4889_s12 = smov 0   ;;  %s6787_s0 = inlined_call_operand.vmem [shape: bf16[2,18,18,32], index: 0, kind: input, shape index: {}]   ;;  %s6788_s1 = inlined_call_operand.vmem [shape: bf16[9,32], index: 1, kind: input, shape index: {}]   ;;  %s6789_s2 = inlined_call_operand.vmem [shape: bf16[128,32], index: 2, kind: input, shape index: {}]   ;;  %s6790_s3 = inlined_call_operand.vmem [shape: f32[2,128,256], index: 3, kind: output, shape index: {}]  }
   0x1 LB: > { %s4275_s13 = sadd.s32 4294967295, %s4867_s12   ;;  %p4279_p0 = scmp.ge.s32.totalorder %s4867_s12, 1  ;;  %s4867_s12 = sphi %s4889_s12, %s13_s12  }
   0x2   : > { %p137_p1 = scmp.lt.s32.totalorder %s4867_s12, 3 }
   0x4   : > { %p138_p2 = pnand %p4279_p0, %p137_p1 }
   0x5   : > { %p161_p3 = scmp.lt.s32.totalorder (!%p138_p2), %s4275_s13, 1 }
   0x6   : > { %141 = sbr.rel (%p138_p2) target bundleno = 827 (0x33b), region = 32 }
   0xb   : > { %v203_v0 = vld [vmem:[%s6788_s1] sm:$0x1]  ;;  %v922_v4 = vld [vmem:[%s6788_s1] sm:$0x2]  ;;  %s6792_s13 = smov (!%p161_p3, %s4275_s13), 1  ;;  %vm337_vm0 = vcmask 261120  }
   0xc   : > { %v418_v1 = vld [vmem:[%s6788_s1] sm:$0x1]  ;;  %v205_v2 = vpack.i.b16 %v203_v0, %v203_v0  ;;  %v924_v5 = vpack.i.b16 %v922_v4, %v922_v4  ;;  %v1410_v6 = vld [vmem:[%s6788_s1] sm:$0x2]  ;;  %s4852_s22 = smul.u32 216, %s6792_s13  ;;  %vm697_vm1 = vcmask 1046528  }
   0xd   : > { %v420_v3 = vshrl.u32 %v418_v1, 16  ;;  %v1412_v9 = vshrl.u32 %v1410_v6, 16  ;;  %v1689_v51 = vld [vmem:[%s6788_s1] sm:$0x4]  ;;  %vm1200_vm2 = vcmask 1045504   ;;  %s4589_s27 = sshll.u32 %s6792_s13, 8 }
   0xe   : > { %v207_v7 = vperm.slane %v205_v2, 0  ;;  %v926_v10 = vperm.slane %v924_v5, 1  ;;  %s4915_s25 = scalar_lea.vmem %s6787_s0, %s4852_s22  ;;  %v2191_v54 = vld [vmem:[%s6788_s1] sm:$0x4]  ;;  %v1691_v61 = vpack.i.b16 %v1689_v51, %v1689_v51  ;;  %s6750_s30 = scalar_lea.vmem %s6790_s3, %s4589_s27 }
   0xf   : > { %v421_v8 = vpack.i.b16 %v420_v3, %v420_v3  ;;  %v185_v13 = vld [vmem:[%s4915_s25 + $0x54] sm:$0xff]   ;;  %v393_v15 = vld [vmem:[%s4915_s25 + $0x5c] sm:$0x1]  ;;  %v1413_v18 = vpack.i.b16 %v1412_v9, %v1412_v9  ;;  %v4807_v52 = vld [vmem:[%s4915_s25 + $0x60] sm:$0xff]   ;;  %v2193_v1 = vshrl.u32 %v2191_v54, 16 }
  0x10   : > { %v4917_v12 = vunpack.c.l.bf16 %v207_v7  ;;  %v391_v14 = vld [vmem:[%s4915_s25 + $0x54] sm:$0xff]   ;;  %v4924_v17 = vunpack.c.l.bf16 %v926_v10  ;;  %v222_v19 = vunpack.c.l.bf16 %v185_v13  ;;  %v223_v20 = vunpack.c.h.bf16 %v185_v13  ;;  %v897_v25 = vld [vmem:[%s4915_s25 + $0x5c] sm:$0x1]  ;;  %v4338_v60 = vld [vmem:[%s4915_s25 + $0x68] sm:$0x1] }
  0x11   : > { %v423_v11 = vperm.slane %v421_v8, 0  ;;  %v445_v21 = vunpack.c.l.bf16 %v391_v14  ;;  %v446_v22 = vunpack.c.h.bf16 %v391_v14  ;;  %v895_v23 = vld [vmem:[%s4915_s25 + $0x54] sm:$0xe]  ;;  %v896_v24 = vld [vmem:[%s4915_s25 + $0x58] sm:$0xf]  ;;  %v447_v26 = vunpack.c.l.bf16 %v393_v15 }
  0x12   : > { %v948_v27 = vunpack.c.l.bf16 %v895_v23  ;;  %v949_v28 = vunpack.c.l.bf16 %v896_v24  ;;  %v950_v29 = vunpack.c.l.bf16 %v897_v25  ;;  %v255_v30 = vmul.f32 %v4917_v12, %v222_v19  ;;  %v201_v57 = vld [vmem:[%s4915_s25 + $0xb4] sm:$0xff]  }
  0x13   : > { %v4922_v16 = vunpack.c.l.bf16 %v423_v11  ;;  %v256_v31 = vmul.f32 %v4917_v12, %v223_v20  ;;  %v1415_v53 = vperm.slane %v1413_v18, 1  ;;  %v4948_v0 = vunpack.c.l.bf16 %v4807_v52  ;;  %v415_v14 = vld [vmem:[%s4915_s25 + $0xb4] sm:$0xff]   ;;  %v4384_v20 = vld [vmem:[%s4915_s25 + $0x60] sm:$0xe] }
  0x14   : > { %v997_v35 = vmul.f32 %v4924_v17, %v948_v27  ;;  %v998_v36 = vmul.f32 %v4924_v17, %v949_v28  ;;  %v999_v37 = vmul.f32 %v4924_v17, %v950_v29  ;;  %v287_v38 = vpack.c.bf16 %v255_v30, %v255_v30  ;;  %v4385_v28 = vld [vmem:[%s4915_s25 + $0x64] sm:$0xf]  ;;  %v4386_v29 = vld [vmem:[%s4915_s25 + $0x68] sm:$0x1] }
  0x15   : > { %v494_v32 = vmul.f32 %v4922_v16, %v445_v21  ;;  %v495_v33 = vmul.f32 %v4922_v16, %v446_v22  ;;  %v496_v34 = vmul.f32 %v4922_v16, %v447_v26  ;;  %v288_v39 = vpack.c.bf16 %v256_v31, %v256_v31 }
  0x16   : > { %v1045_v43 = vpack.c.bf16 %v997_v35, %v997_v35  ;;  %v319_v44 = vunpack.c.l.bf16 %v287_v38  ;;  %v1046_v49 = vpack.c.bf16 %v998_v36, %v998_v36  ;;  %v1047_v50 = vpack.c.bf16 %v999_v37, %v999_v37  ;;  %v417_v38 = vld [vmem:[%s4915_s25 + $0xbc] sm:$0x1] }
  0x17   : > { %v542_v40 = vpack.c.bf16 %v494_v32, %v494_v32  ;;  %v543_v41 = vpack.c.bf16 %v495_v33, %v495_v33  ;;  %v544_v42 = vpack.c.bf16 %v496_v34, %v496_v34  ;;  %v320_v45 = vunpack.c.l.bf16 %v288_v39 }
  0x18   : > { %352 = vst.msk [vmem:[#allocation2 + $0x70] sm:$0xff] %vm337_vm0, %v319_v44  ;;  %v1125_v59 = vunpack.c.l.bf16 %v1045_v43  ;;  %v1126_v62 = vunpack.c.l.bf16 %v1046_v49  ;;  %v1127_v63 = vunpack.c.l.bf16 %v1047_v50  ;;  %v4950_v2 = vunpack.c.h.bf16 %v4807_v52  ;;  %v2679_v52 = vld [vmem:[%s6788_s1] sm:$0x8] }
  0x19   : > { %v622_v46 = vunpack.c.l.bf16 %v542_v40  ;;  %v623_v47 = vunpack.c.l.bf16 %v543_v41  ;;  %v624_v48 = vunpack.c.l.bf16 %v544_v42  ;;  %353 = vst.msk [vmem:[#allocation2 + $0x78] sm:$0xff] %vm337_vm0, %v320_v45  ;;  %v4952_v3 = vunpack.c.l.bf16 %v1415_v53 }
  0x1a   : > { %v1693_v4 = vperm.slane %v1691_v61, 2  ;;  %v238_v5 = vunpack.c.l.bf16 %v201_v57  ;;  %v1717_v7 = vunpack.c.l.bf16 %v4338_v60  ;;  %v2194_v8 = vpack.i.b16 %v2193_v1, %v2193_v1 }
  0x1b   : > { %v733_v55 = vrot.slane %v622_v46, 1  ;;  %v734_v56 = vrot.slane %v623_v47, 1  ;;  %v736_v58 = vrot.slane %v624_v48, 1  ;;  %v1236_v10 = vrot.slane %v1125_v59, 2 }
  0x1c   : > { %v4956_v11 = vunpack.c.l.bf16 %v1693_v4  ;;  %v239_v13 = vunpack.c.h.bf16 %v201_v57  ;;  %v1237_v18 = vrot.slane %v1126_v62, 2  ;;  %v1239_v19 = vrot.slane %v1127_v63, 2 }
  0x1d   : > { %v735_v6 = vsel %vm697_vm1, %v733_v55, %v734_v56  ;;  %v737_v9 = vsel %vm697_vm1, %v734_v56, %v736_v58  ;;  %v2196_v21 = vperm.slane %v2194_v8, 2  ;;  %v271_v22 = vmul.f32 %v4917_v12, %v238_v5 }
  0x1e   : > { %v1463_v25 = vmul.f32 %v4948_v0, %v4952_v3  ;;  %v1464_v26 = vmul.f32 %v4950_v2, %v4952_v3  ;;  %v1764_v27 = vmul.f32 %v4948_v0, %v4956_v11  ;;  %v1765_v31 = vmul.f32 %v4950_v2, %v4956_v11 }
  0x1f   : > { %v583_v15 = vld [vmem:[#allocation2 + $0x70] sm:$0xff]  ;;  %v1766_v32 = vmul.f32 %v4956_v11, %v1717_v7  ;;  %v469_v33 = vunpack.c.l.bf16 %v415_v14  ;;  %v2218_v34 = vunpack.c.l.bf16 %v4384_v20  ;;  %v4973_v35 = vunpack.c.l.bf16 %v2196_v21 }
  0x20   : > { %v584_v23 = vld [vmem:[#allocation2 + $0x78] sm:$0xff]  ;;  %v824_v24 = vadd.f32 %v735_v6, %v583_v15  ;;  %v272_v36 = vmul.f32 %v4917_v12, %v239_v13  ;;  %v303_v37 = vpack.c.bf16 %v271_v22, %v271_v22  ;;  %v1812_v39 = vpack.c.bf16 %v1764_v27, %v1764_v27  ;;  %v919_v13 = vld [vmem:[%s4915_s25 + $0xb4] sm:$0xe]  ;;  %v4425_v21 = vld [vmem:[%s4915_s25 + $0x6c] sm:$0xff]  }
  0x21   : > { %v825_v30 = vadd.f32 %v737_v9, %v584_v23  ;;  %v2219_v40 = vunpack.c.l.bf16 %v4385_v28  ;;  %v2220_v41 = vunpack.c.l.bf16 %v4386_v29  ;;  %v470_v42 = vunpack.c.h.bf16 %v415_v14  ;;  %v920_v14 = vld [vmem:[%s4915_s25 + $0xb8] sm:$0xf]  ;;  %v2957_v22 = vld [vmem:[%s6788_s1] sm:$0x8]  ;;  %v921_v27 = vld [vmem:[%s4915_s25 + $0xbc] sm:$0x1] }
  0x22   : > { %856 = vst.msk [vmem:[#allocation2 + $0x70] sm:$0xff] %vm337_vm0, %v824_v24  ;;  %v1813_v43 = vpack.c.bf16 %v1765_v31, %v1765_v31  ;;  %v1814_v44 = vpack.c.bf16 %v1766_v32, %v1766_v32  ;;  %v304_v45 = vpack.c.bf16 %v272_v36, %v272_v36  ;;  %v335_v46 = vunpack.c.l.bf16 %v303_v37 }
  0x23   : > { %857 = vst.msk [vmem:[#allocation2 + $0x78] sm:$0xff] %vm337_vm0, %v825_v30  ;;  %v1495_v47 = vpack.c.bf16 %v1463_v25, %v1463_v25  ;;  %v1496_v48 = vpack.c.bf16 %v1464_v26, %v1464_v26  ;;  %v471_v49 = vunpack.c.l.bf16 %v417_v38  ;;  %v1238_v50 = vsel %vm1200_vm2, %v1236_v10, %v1237_v18 }
  0x24   : > { %v2267_v51 = vmul.f32 %v4973_v35, %v2218_v34  ;;  %v336_v53 = vunpack.c.l.bf16 %v304_v45  ;;  %368 = vst.msk [vmem:[#allocation2 + $0xf0] sm:$0xff] %vm337_vm0, %v335_v46  ;;  %v518_v54 = vmul.f32 %v4922_v16, %v469_v33  ;;  %v1240_v55 = vsel %vm1200_vm2, %v1237_v18, %v1239_v19 }
  0x25   : > { %v4986_v56 = vunpack.c.l.bf16 %v1812_v39  ;;  %v2268_v57 = vmul.f32 %v4973_v35, %v2219_v40  ;;  %v2269_v58 = vmul.f32 %v4973_v35, %v2220_v41  ;;  %v4990_v59 = vunpack.c.l.bf16 %v1813_v43 }
  0x26   : > { %v4992_v60 = vunpack.c.l.bf16 %v1814_v44  ;;  %v2681_v61 = vpack.i.b16 %v2679_v52, %v2679_v52  ;;  %369 = vst.msk [vmem:[#allocation2 + $0xf8] sm:$0xff] %vm337_vm0, %v336_v53  ;;  %v519_v62 = vmul.f32 %v4922_v16, %v470_v42  ;;  %v1559_v1 = vunpack.c.l.bf16 %v1495_v47  ;;  %v4464_v47 = vld [vmem:[%s4915_s25 + $0x6c] sm:$0xff]  }
  0x27   : > { %v1560_v4 = vunpack.c.l.bf16 %v1496_v48  ;;  %v520_v5 = vmul.f32 %v4922_v16, %v471_v49  ;;  %v2315_v8 = vpack.c.bf16 %v2267_v51, %v2267_v51  ;;  %v566_v10 = vpack.c.bf16 %v518_v54, %v518_v54  ;;  %v4466_v48 = vld [vmem:[%s4915_s25 + $0x74] sm:$0x1] }
  0x28   : > { %v2683_v9 = vperm.slane %v2681_v61, 3  ;;  %v2002_v18 = vrot.slane %v4986_v56, 1  ;;  %v2316_v19 = vpack.c.bf16 %v2268_v57, %v2268_v57  ;;  %v2317_v20 = vpack.c.bf16 %v2269_v58, %v2269_v58 }
  0x29   : > { %v1086_v63 = vld [vmem:[#allocation2 + $0x70] sm:$0xff]  ;;  %v2003_v23 = vrot.slane %v4990_v59, 1  ;;  %v2005_v24 = vrot.slane %v4992_v60, 1  ;;  %v2959_v25 = vshrl.u32 %v2957_v22, 16  ;;  %v567_v26 = vpack.c.bf16 %v519_v62, %v519_v62 }
  0x2a   : > { %v1087_v6 = vld [vmem:[#allocation2 + $0x78] sm:$0xff]  ;;  %v1327_v7 = vadd.f32 %v1238_v50, %v1086_v63  ;;  %v568_v28 = vpack.c.bf16 %v520_v5, %v520_v5  ;;  %v646_v29 = vunpack.c.l.bf16 %v566_v10  ;;  %v972_v30 = vunpack.c.l.bf16 %v919_v13 }
  0x2b   : > { %v1328_v15 = vadd.f32 %v1240_v55, %v1087_v6  ;;  %v973_v31 = vunpack.c.l.bf16 %v920_v14  ;;  %v2698_v32 = vunpack.c.l.bf16 %v4425_v21  ;;  %v5009_v33 = vunpack.c.l.bf16 %v2683_v9  ;;  %v599_v49 = vld [vmem:[#allocation2 + $0xf0] sm:$0xff] }
  0x2c   : > { %1359 = vst.msk [vmem:[#allocation2 + $0x70] sm:$0xff] %vm337_vm0, %v1327_v7  ;;  %v2960_v34 = vpack.i.b16 %v2959_v25, %v2959_v25  ;;  %v647_v36 = vunpack.c.l.bf16 %v567_v26  ;;  %v648_v37 = vunpack.c.l.bf16 %v568_v28  ;;  %v773_v38 = vrot.slane %v646_v29, 1  ;;  %v4811_v25 = vld [vmem:[%s4915_s25 + $0xc0] sm:$0xff]  }
  0x2d   : > { %1360 = vst.msk [vmem:[#allocation2 + $0x78] sm:$0xff] %vm337_vm0, %v1328_v15  ;;  %v974_v39 = vunpack.c.l.bf16 %v921_v27  ;;  %v1021_v40 = vmul.f32 %v4924_v17, %v972_v30  ;;  %v2395_v41 = vunpack.c.l.bf16 %v2315_v8  ;;  %v2396_v42 = vunpack.c.l.bf16 %v2316_v19  ;;  %v600_v54 = vld [vmem:[#allocation2 + $0xf8] sm:$0xff] }
  0x2e   : > { %v2962_v43 = vperm.slane %v2960_v34, 3  ;;  %v774_v44 = vrot.slane %v647_v36, 1  ;;  %v2397_v45 = vunpack.c.l.bf16 %v2317_v20  ;;  %v2699_v46 = vunpack.c.h.bf16 %v4425_v21 }
  0x2f   : > { %v776_v50 = vrot.slane %v648_v37, 1  ;;  %v1022_v51 = vmul.f32 %v4924_v17, %v973_v31  ;;  %v2731_v52 = vmul.f32 %v5009_v33, %v2698_v32  ;;  %v2984_v53 = vunpack.c.l.bf16 %v4464_v47 }
  0x30   : > { %v1023_v55 = vmul.f32 %v4924_v17, %v974_v39  ;;  %v1069_v56 = vpack.c.bf16 %v1021_v40, %v1021_v40  ;;  %v2985_v58 = vunpack.c.h.bf16 %v4464_v47  ;;  %v5017_v61 = vunpack.c.l.bf16 %v2962_v43 }
  0x31   : > { %v775_v62 = vsel %vm697_vm1, %v773_v38, %v774_v44  ;;  %v777_v63 = vsel %vm697_vm1, %v774_v44, %v776_v50  ;;  %v2986_v7 = vunpack.c.l.bf16 %v4466_v48  ;;  %v1070_v9 = vpack.c.bf16 %v1022_v51, %v1022_v51 }
  0x32   : > { %v840_v8 = vadd.f32 %v775_v62, %v599_v49  ;;  %v2004_v13 = vsel %vm697_vm1, %v2002_v18, %v2003_v23  ;;  %v2505_v14 = vrot.slane %v2395_v41, 2  ;;  %v841_v15 = vadd.f32 %v777_v63, %v600_v54  ;;  %v3460_v18 = vld [vmem:[%s6788_s1 + $0x4] sm:$0x1]  ;;  %v4362_v49 = vld [vmem:[%s4915_s25 + $0xc8] sm:$0x1] }
  0x33   : > { %v1527_v57 = vld [vmem:[#allocation2 + $0x70] sm:$0xff]  ;;  %v2506_v19 = vrot.slane %v2396_v42, 2  ;;  %v1071_v20 = vpack.c.bf16 %v1023_v55, %v1023_v55  ;;  %v1149_v21 = vunpack.c.l.bf16 %v1069_v56  ;;  %v1150_v22 = vunpack.c.l.bf16 %v1070_v9  ;;  %v4512_v42 = vld [vmem:[%s4915_s25 + $0x6c] sm:$0xe]  ;;  %v4408_v9 = vld [vmem:[%s4915_s25 + $0xc0] sm:$0xe] }
  0x34   : > { %v1528_v5 = vld [vmem:[#allocation2 + $0x78] sm:$0xff]  ;;  %v1591_v6 = vadd.f32 %v1559_v1, %v1527_v57  ;;  %v2508_v1 = vrot.slane %v2397_v45, 2  ;;  %v2732_v26 = vmul.f32 %v5009_v33, %v2699_v46  ;;  %v2763_v27 = vpack.c.bf16 %v2731_v52, %v2731_v52  ;;  %872 = vst.msk [vmem:[#allocation2 + $0xf0] sm:$0xff] %vm337_vm0, %v840_v8  ;;  %v4513_v45 = vld [vmem:[%s4915_s25 + $0x70] sm:$0xf] }
  0x35   : > { %v1592_v10 = vadd.f32 %v1560_v4, %v1528_v5  ;;  %v3033_v4 = vmul.f32 %v5017_v61, %v2984_v53  ;;  %v3034_v28 = vmul.f32 %v5017_v61, %v2985_v58  ;;  %v3035_v29 = vmul.f32 %v5017_v61, %v2986_v7  ;;  %873 = vst.msk [vmem:[#allocation2 + $0xf8] sm:$0xff] %vm337_vm0, %v841_v15  ;;  %v4514_v46 = vld [vmem:[%s4915_s25 + $0x74] sm:$0x1] }
  0x36   : > { %1623 = vst.msk [vmem:[#allocation2 + $0x70] sm:$0xff] %vm337_vm0, %v1591_v6  ;;  %v3462_v30 = vpack.i.b16 %v3460_v18, %v3460_v18  ;;  %v1151_v31 = vunpack.c.l.bf16 %v1071_v20  ;;  %v2006_v32 = vsel %vm697_vm1, %v2003_v23, %v2005_v24  ;;  %v1276_v34 = vrot.slane %v1149_v21, 2  ;;  %v4409_v20 = vld [vmem:[%s4915_s25 + $0xc4] sm:$0xf] }
  0x37   : > { %1624 = vst.msk [vmem:[#allocation2 + $0x78] sm:$0xff] %vm337_vm0, %v1592_v10  ;;  %v1277_v36 = vrot.slane %v1150_v22, 2  ;;  %v5041_v37 = vunpack.c.l.bf16 %v4811_v25  ;;  %v5044_v38 = vsel %vm1200_vm2, %v2505_v14, %v2506_v19  ;;  %v5046_v41 = vunpack.c.h.bf16 %v4811_v25 }
  0x38   : > { %v3464_v39 = vperm.slane %v3462_v30, 0  ;;  %v1279_v40 = vrot.slane %v1151_v31, 2  ;;  %v5049_v59 = vsel %vm1200_vm2, %v2506_v19, %v2508_v1  ;;  %v2764_v60 = vpack.c.bf16 %v2732_v26, %v2732_v26  ;;  %v4410_v26 = vld [vmem:[%s4915_s25 + $0xc8] sm:$0x1] }
  0x39   : > { %v5051_v23 = vunpack.c.l.bf16 %v2763_v27  ;;  %v3081_v24 = vpack.c.bf16 %v3033_v4, %v3033_v4  ;;  %v3082_v43 = vpack.c.bf16 %v3034_v28, %v3034_v28  ;;  %v3083_v44 = vpack.c.bf16 %v3035_v29, %v3035_v29 }
  0x3a   : > { %v3486_v47 = vunpack.c.l.bf16 %v4512_v42  ;;  %v5056_v48 = vunpack.c.l.bf16 %v3464_v39  ;;  %v3487_v51 = vunpack.c.l.bf16 %v4513_v45  ;;  %v3488_v52 = vunpack.c.l.bf16 %v4514_v46 }
  0x3b   : > { %v1278_v53 = vsel %vm1200_vm2, %v1276_v34, %v1277_v36  ;;  %v1479_v54 = vmul.f32 %v5041_v37, %v4952_v3  ;;  %v1280_v58 = vsel %vm1200_vm2, %v1277_v36, %v1279_v40  ;;  %v1480_v62 = vmul.f32 %v5046_v41, %v4952_v3  ;;  %v1102_v7 = vld [vmem:[#allocation2 + $0xf0] sm:$0xff] }
  0x3c   : > { %v3535_v57 = vmul.f32 %v5056_v48, %v3486_v47  ;;  %v3536_v5 = vmul.f32 %v5056_v48, %v3487_v51  ;;  %v3537_v6 = vmul.f32 %v5056_v48, %v3488_v52  ;;  %v1741_v8 = vunpack.c.l.bf16 %v4362_v49  ;;  %v1103_v14 = vld [vmem:[#allocation2 + $0xf8] sm:$0xff]  ;;  %v4441_v49 = vld [vmem:[%s4915_s25 + $0xcc] sm:$0xff]  }
  0x3d   : > { %v1853_v50 = vld [vmem:[#allocation2 + $0x70] sm:$0xff]  ;;  %v5070_v10 = vunpack.c.l.bf16 %v3081_v24  ;;  %v1343_v15 = vadd.f32 %v1278_v53, %v1102_v7  ;;  %v1788_v19 = vmul.f32 %v5041_v37, %v4956_v11  ;;  %v5078_v21 = vunpack.c.l.bf16 %v3083_v44 }
  0x3e   : > { %v1854_v55 = vld [vmem:[#allocation2 + $0x78] sm:$0xff]  ;;  %v2093_v56 = vadd.f32 %v2004_v13, %v1853_v50  ;;  %v5072_v13 = vunpack.c.l.bf16 %v3082_v43  ;;  %v1344_v22 = vadd.f32 %v1280_v58, %v1103_v14  ;;  %v1789_v25 = vmul.f32 %v5046_v41, %v4956_v11 }
  0x3f   : > { %v2094_v63 = vadd.f32 %v2006_v32, %v1854_v55  ;;  %v1790_v1 = vmul.f32 %v4956_v11, %v1741_v8  ;;  %v5084_v27 = vunpack.c.l.bf16 %v2764_v60  ;;  %v3583_v4 = vpack.c.bf16 %v3535_v57, %v3535_v57  ;;  %1375 = vst.msk [vmem:[#allocation2 + $0xf0] sm:$0xff] %vm337_vm0, %v1343_v15 }
  0x40   : > { %2125 = vst.msk [vmem:[#allocation2 + $0x70] sm:$0xff] %vm337_vm0, %v2093_v56  ;;  %v1511_v18 = vpack.c.bf16 %v1479_v54, %v1479_v54  ;;  %v2242_v28 = vunpack.c.l.bf16 %v4408_v9  ;;  %v3584_v29 = vpack.c.bf16 %v3536_v5, %v3536_v5  ;;  %v3585_v30 = vpack.c.bf16 %v3537_v6, %v3537_v6 }
  0x41   : > { %2126 = vst.msk [vmem:[#allocation2 + $0x78] sm:$0xff] %vm337_vm0, %v2094_v63  ;;  %v1512_v31 = vpack.c.bf16 %v1480_v62, %v1480_v62  ;;  %v2243_v32 = vunpack.c.l.bf16 %v4409_v20  ;;  %v3271_v34 = vrot.slane %v5070_v10, 1  ;;  %v3272_v36 = vrot.slane %v5072_v13, 1  ;;  %v4488_v63 = vld [vmem:[%s4915_s25 + $0xcc] sm:$0xff]  }
  0x42   : > { %1376 = vst.msk [vmem:[#allocation2 + $0xf8] sm:$0xff] %vm337_vm0, %v1344_v22  ;;  %v1836_v39 = vpack.c.bf16 %v1788_v19, %v1788_v19  ;;  %v2244_v40 = vunpack.c.l.bf16 %v4410_v26  ;;  %v3274_v60 = vrot.slane %v5078_v21, 1  ;;  %v1837_v24 = vpack.c.bf16 %v1789_v25, %v1789_v25  ;;  %v4490_v25 = vld [vmem:[%s4915_s25 + $0xd4] sm:$0x1] }
  0x43   : > { %v1838_v42 = vpack.c.bf16 %v1790_v1, %v1790_v1  ;;  %v2291_v43 = vmul.f32 %v4973_v35, %v2242_v28  ;;  %v3663_v44 = vunpack.c.l.bf16 %v3583_v4  ;;  %v1575_v45 = vunpack.c.l.bf16 %v1511_v18 }
  0x44   : > { %v2292_v46 = vmul.f32 %v4973_v35, %v2243_v32  ;;  %v2293_v47 = vmul.f32 %v4973_v35, %v2244_v40  ;;  %v3664_v51 = vunpack.c.l.bf16 %v3584_v29  ;;  %v3665_v52 = vunpack.c.l.bf16 %v3585_v30 }
  0x45   : > { %v1576_v53 = vunpack.c.l.bf16 %v1512_v31  ;;  %v2339_v54 = vpack.c.bf16 %v2291_v43, %v2291_v43  ;;  %v1916_v57 = vunpack.c.l.bf16 %v1836_v39  ;;  %v1917_v7 = vunpack.c.l.bf16 %v1837_v24 }
  0x46   : > { %v2340_v58 = vpack.c.bf16 %v2292_v46, %v2292_v46  ;;  %v2341_v62 = vpack.c.bf16 %v2293_v47, %v2293_v47  ;;  %v1543_v6 = vld [vmem:[#allocation2 + $0xf0] sm:$0xff]  ;;  %v1918_v8 = vunpack.c.l.bf16 %v1838_v42  ;;  %v2714_v9 = vunpack.c.l.bf16 %v4441_v49 }
  0x47   : > { %v2356_v50 = vld [vmem:[#allocation2 + $0x70] sm:$0xff]  ;;  %v3773_v10 = vrot.slane %v3663_v44, 2  ;;  %v1607_v14 = vadd.f32 %v1575_v45, %v1543_v6  ;;  %v2419_v15 = vunpack.c.l.bf16 %v2339_v54  ;;  %v2715_v22 = vunpack.c.h.bf16 %v4441_v49  ;;  %v4536_v54 = vld [vmem:[%s4915_s25 + $0xcc] sm:$0xe] }
  0x48   : > { %v2357_v55 = vld [vmem:[#allocation2 + $0x78] sm:$0xff]  ;;  %v2596_v56 = vadd.f32 %v5044_v38, %v2356_v50  ;;  %v2420_v19 = vunpack.c.l.bf16 %v2340_v58  ;;  %v4792_v38 = vld [vmem:[%s4915_s25 + $0x48] sm:$0xff]   ;;  %v2421_v21 = vunpack.c.l.bf16 %v2341_v62  ;;  %v3774_v1 = vrot.slane %v3664_v51, 2  ;;  %v4537_v62 = vld [vmem:[%s4915_s25 + $0xd0] sm:$0xf] }
  0x49   : > { %v2597_v5 = vadd.f32 %v5049_v59, %v2357_v55  ;;  %v1544_v13 = vld [vmem:[#allocation2 + $0xf8] sm:$0xff]  ;;  %v3008_v59 = vunpack.c.l.bf16 %v4488_v63  ;;  %v3776_v26 = vrot.slane %v3665_v52, 2  ;;  %1639 = vst.msk [vmem:[#allocation2 + $0xf0] sm:$0xff] %vm337_vm0, %v1607_v14  ;;  %v2042_v4 = vrot.slane %v1916_v57, 1  ;;  %v4538_v14 = vld [vmem:[%s4915_s25 + $0xd4] sm:$0x1] }
  0x4a   : > { %2628 = vst.msk [vmem:[#allocation2 + $0x70] sm:$0xff] %vm337_vm0, %v2596_v56  ;;  %v1608_v20 = vadd.f32 %v1576_v53, %v1544_v13  ;;  %v3009_v18 = vunpack.c.h.bf16 %v4488_v63  ;;  %v2043_v28 = vrot.slane %v1917_v7, 1  ;;  %v2045_v29 = vrot.slane %v1918_v8, 1 }
  0x4b   : > { %2629 = vst.msk [vmem:[#allocation2 + $0x78] sm:$0xff] %vm337_vm0, %v2597_v5  ;;  %v2747_v30 = vmul.f32 %v5009_v33, %v2714_v9  ;;  %v5105_v31 = vunpack.c.l.bf16 %v4792_v38  ;;  %v5108_v32 = vsel %vm697_vm1, %v3271_v34, %v3272_v36  ;;  %v2545_v39 = vrot.slane %v2419_v15, 2 }
  0x4c   : > { %1640 = vst.msk [vmem:[#allocation2 + $0xf8] sm:$0xff] %vm337_vm0, %v1608_v20  ;;  %v3010_v40 = vunpack.c.l.bf16 %v4490_v25  ;;  %v3057_v24 = vmul.f32 %v5017_v61, %v3008_v59  ;;  %v2546_v42 = vrot.slane %v2420_v19, 2  ;;  %v2548_v43 = vrot.slane %v2421_v21, 2 }
  0x4d   : > { %v2748_v44 = vmul.f32 %v5009_v33, %v2715_v22  ;;  %v5112_v45 = vunpack.c.h.bf16 %v4792_v38  ;;  %v5115_v46 = vsel %vm697_vm1, %v3272_v36, %v3274_v60  ;;  %v5118_v47 = vsel %vm1200_vm2, %v3773_v10, %v3774_v1  ;;  %v390_v36 = vld [vmem:[%s4915_s25 + $0x50] sm:$0x1] }
  0x4e   : > { %v5121_v34 = vsel %vm1200_vm2, %v3774_v1, %v3776_v26  ;;  %v3058_v49 = vmul.f32 %v5017_v61, %v3009_v18  ;;  %v2044_v51 = vsel %vm697_vm1, %v2042_v4, %v2043_v28  ;;  %v2046_v52 = vsel %vm697_vm1, %v2043_v28, %v2045_v29  ;;  %v892_v26 = vld [vmem:[%s4915_s25 + $0x48] sm:$0xe] }
  0x4f   : > { %v2779_v53 = vpack.c.bf16 %v2747_v30, %v2747_v30  ;;  %v253_v55 = vmul.f32 %v5105_v31, %v4917_v12  ;;  %v3059_v57 = vmul.f32 %v5017_v61, %v3010_v40  ;;  %v3105_v58 = vpack.c.bf16 %v3057_v24, %v3057_v24  ;;  %v893_v30 = vld [vmem:[%s4915_s25 + $0x4c] sm:$0xf] }
  0x50   : > { %v254_v63 = vmul.f32 %v5112_v45, %v4917_v12  ;;  %v1869_v6 = vld [vmem:[#allocation2 + $0xf0] sm:$0xff]  ;;  %v2547_v7 = vsel %vm1200_vm2, %v2545_v39, %v2546_v42  ;;  %v5138_v8 = vsel %vm1200_vm2, %v2546_v42, %v2548_v43  ;;  %v2780_v9 = vpack.c.bf16 %v2748_v44, %v2748_v44 }
  0x51   : > { %v2795_v50 = vld [vmem:[#allocation2 + $0x70] sm:$0xff]  ;;  %v3106_v13 = vpack.c.bf16 %v3058_v49, %v3058_v49  ;;  %v3510_v15 = vunpack.c.l.bf16 %v4536_v54  ;;  %v444_v19 = vunpack.c.l.bf16 %v390_v36  ;;  %v3511_v38 = vunpack.c.l.bf16 %v4537_v62 }
  0x52   : > { %v2796_v60 = vld [vmem:[#allocation2 + $0x78] sm:$0xff]  ;;  %v2859_v56 = vadd.f32 %v5051_v23, %v2795_v50  ;;  %v2109_v23 = vadd.f32 %v2044_v51, %v1869_v6  ;;  %v285_v20 = vpack.c.bf16 %v253_v55, %v253_v55  ;;  %v491_v21 = vmul.f32 %v5105_v31, %v4922_v16  ;;  %v894_v43 = vld [vmem:[%s4915_s25 + $0x50] sm:$0x1] }
  0x53   : > { %v2860_v5 = vadd.f32 %v5084_v27, %v2796_v60  ;;  %v1870_v10 = vld [vmem:[#allocation2 + $0xf8] sm:$0xff]  ;;  %v5146_v22 = vunpack.c.l.bf16 %v2779_v53  ;;  %v3107_v25 = vpack.c.bf16 %v3059_v57, %v3059_v57  ;;  %v5148_v59 = vunpack.c.l.bf16 %v3105_v58 }
  0x54   : > { %2891 = vst.msk [vmem:[#allocation2 + $0x70] sm:$0xff] %vm337_vm0, %v2859_v56  ;;  %v2110_v27 = vadd.f32 %v2046_v52, %v1870_v10  ;;  %v286_v1 = vpack.c.bf16 %v254_v63, %v254_v63  ;;  %v5152_v4 = vunpack.c.l.bf16 %v2780_v9  ;;  %v3512_v18 = vunpack.c.l.bf16 %v4538_v14 }
  0x55   : > { %2892 = vst.msk [vmem:[#allocation2 + $0x78] sm:$0xff] %vm337_vm0, %v2860_v5  ;;  %v317_v28 = vunpack.c.l.bf16 %v285_v20  ;;  %v492_v29 = vmul.f32 %v5112_v45, %v4922_v16  ;;  %v5157_v39 = vunpack.c.l.bf16 %v3106_v13  ;;  %v3559_v40 = vmul.f32 %v5056_v48, %v3510_v15 }
  0x56   : > { %2141 = vst.msk [vmem:[#allocation2 + $0xf0] sm:$0xff] %vm337_vm0, %v2109_v23  ;;  %v318_v24 = vunpack.c.l.bf16 %v286_v1  ;;  %v493_v42 = vmul.f32 %v4922_v16, %v444_v19  ;;  %v3560_v44 = vmul.f32 %v5056_v48, %v3511_v38  ;;  %v539_v49 = vpack.c.bf16 %v491_v21, %v491_v21  ;;  %v4295_v21 = vld [vmem:[%s4915_s25 + $0x54] sm:$0xff]  }
  0x57   : > { %2142 = vst.msk [vmem:[#allocation2 + $0xf8] sm:$0xff] %vm337_vm0, %v2110_v27  ;;  %v540_v50 = vpack.c.bf16 %v492_v29, %v492_v29  ;;  %v945_v51 = vunpack.c.l.bf16 %v892_v26  ;;  %v5164_v52 = vunpack.c.l.bf16 %v3107_v25  ;;  %v3311_v53 = vrot.slane %v5148_v59, 1  ;;  %v4333_v25 = vld [vmem:[%s4915_s25 + $0x54] sm:$0xff]  }
  0x58   : > { %350 = vst.msk [vmem:[#allocation2 + $0x60] sm:$0xff] %vm337_vm0, %v317_v28  ;;  %v541_v54 = vpack.c.bf16 %v493_v42, %v493_v42  ;;  %v946_v55 = vunpack.c.l.bf16 %v893_v30  ;;  %v3561_v60 = vmul.f32 %v5056_v48, %v3512_v18  ;;  %v619_v56 = vunpack.c.l.bf16 %v539_v49 }
  0x59   : > { %351 = vst.msk [vmem:[#allocation2 + $0x68] sm:$0xff] %vm337_vm0, %v318_v24  ;;  %v620_v57 = vunpack.c.l.bf16 %v540_v50  ;;  %v947_v58 = vunpack.c.l.bf16 %v894_v43  ;;  %v3607_v5 = vpack.c.bf16 %v3559_v40, %v3559_v40  ;;  %v994_v9 = vmul.f32 %v4924_v17, %v945_v51  ;;  %v4335_v24 = vld [vmem:[%s4915_s25 + $0x5c] sm:$0x1] }
  0x5a   : > { %v621_v6 = vunpack.c.l.bf16 %v541_v54  ;;  %v3608_v13 = vpack.c.bf16 %v3560_v44, %v3560_v44  ;;  %v728_v14 = vrot.slane %v619_v56, 1  ;;  %v995_v20 = vmul.f32 %v4924_v17, %v946_v55 }
  0x5b   : > { %v3122_v36 = vld [vmem:[#allocation2 + $0x70] sm:$0xff]  ;;  %v729_v15 = vrot.slane %v620_v57, 1  ;;  %v3609_v1 = vpack.c.bf16 %v3561_v60, %v3561_v60  ;;  %v1042_v18 = vpack.c.bf16 %v994_v9, %v994_v9  ;;  %v5181_v28 = vunpack.c.l.bf16 %v3607_v5 }
  0x5c   : > { %v3123_v62 = vld [vmem:[#allocation2 + $0x78] sm:$0xff]  ;;  %v3362_v63 = vadd.f32 %v5108_v32, %v3122_v36  ;;  %v731_v38 = vrot.slane %v621_v6, 1  ;;  %v996_v32 = vmul.f32 %v4924_v17, %v947_v58  ;;  %v1043_v30 = vpack.c.bf16 %v995_v20, %v995_v20 }
  0x5d   : > { %v3363_v10 = vadd.f32 %v5115_v46, %v3123_v62  ;;  %v2372_v23 = vld [vmem:[#allocation2 + $0xf0] sm:$0xff]  ;;  %v730_v26 = vsel %vm697_vm1, %v728_v14, %v729_v15  ;;  %v1122_v44 = vunpack.c.l.bf16 %v1042_v18  ;;  %v1712_v49 = vunpack.c.l.bf16 %v4333_v25  ;;  %v4382_v14 = vld [vmem:[%s4915_s25 + $0x58] sm:$0xf]  ;;  %v4383_v20 = vld [vmem:[%s4915_s25 + $0x5c] sm:$0x1] }
  0x5e   : > { %3394 = vst.msk [vmem:[#allocation2 + $0x70] sm:$0xff] %vm337_vm0, %v3362_v63  ;;  %v2373_v19 = vld [vmem:[#allocation2 + $0xf8] sm:$0xff]  ;;  %v2612_v27 = vadd.f32 %v2547_v7, %v2372_v23  ;;  %v732_v29 = vsel %vm697_vm1, %v729_v15, %v731_v38  ;;  %v1044_v40 = vpack.c.bf16 %v996_v32, %v996_v32  ;;  %v1123_v51 = vunpack.c.l.bf16 %v1043_v30  ;;  %v4381_v23 = vld [vmem:[%s4915_s25 + $0x54] sm:$0xe] }
  0x5f   : > { %3395 = vst.msk [vmem:[#allocation2 + $0x78] sm:$0xff] %vm337_vm0, %v3363_v10  ;;  %v2613_v46 = vadd.f32 %v5138_v8, %v2373_v19  ;;  %v581_v7 = vld [vmem:[#allocation2 + $0x60] sm:$0xff]  ;;  %v1428_v8 = vunpack.c.l.bf16 %v4295_v21  ;;  %v1429_v55 = vunpack.c.h.bf16 %v4295_v21  ;;  %v3312_v36 = vrot.slane %v5157_v39, 1 }
  0x60   : > { %2644 = vst.msk [vmem:[#allocation2 + $0xf0] sm:$0xff] %vm337_vm0, %v2612_v27  ;;  %v582_v42 = vld [vmem:[#allocation2 + $0x68] sm:$0xff]  ;;  %v822_v43 = vadd.f32 %v730_v26, %v581_v7  ;;  %v1124_v54 = vunpack.c.l.bf16 %v1044_v40  ;;  %v3314_v60 = vrot.slane %v5164_v52, 1  ;;  %v1713_v56 = vunpack.c.h.bf16 %v4333_v25 }
  0x61   : > { %2645 = vst.msk [vmem:[#allocation2 + $0xf8] sm:$0xff] %vm337_vm0, %v2613_v46  ;;  %v823_v50 = vadd.f32 %v732_v29, %v582_v42  ;;  %v1714_v57 = vunpack.c.l.bf16 %v4335_v24  ;;  %v5189_v58 = vunpack.c.l.bf16 %v3608_v13  ;;  %v1231_v62 = vrot.slane %v1122_v44, 2  ;;  %v4796_v29 = vld [vmem:[%s4915_s25 + $0xa8] sm:$0xff]  }
  0x62   : > { %854 = vst.msk [vmem:[#allocation2 + $0x60] sm:$0xff] %vm337_vm0, %v822_v43  ;;  %v1232_v63 = vrot.slane %v1123_v51, 2  ;;  %v1761_v5 = vmul.f32 %v4956_v11, %v1712_v49  ;;  %v3689_v9 = vunpack.c.l.bf16 %v3609_v1  ;;  %v1234_v10 = vrot.slane %v1124_v54, 2 }
  0x63   : > { %855 = vst.msk [vmem:[#allocation2 + $0x68] sm:$0xff] %vm337_vm0, %v823_v50  ;;  %v1762_v39 = vmul.f32 %v4956_v11, %v1713_v56  ;;  %v1763_v52 = vmul.f32 %v4956_v11, %v1714_v57  ;;  %v3813_v19 = vrot.slane %v5181_v28, 2  ;;  %v1461_v27 = vmul.f32 %v4952_v3, %v1428_v8 }
  0x64   : > { %v1462_v38 = vmul.f32 %v4952_v3, %v1429_v55  ;;  %v1809_v25 = vpack.c.bf16 %v1761_v5, %v1761_v5  ;;  %v2215_v7 = vunpack.c.l.bf16 %v4381_v23  ;;  %v2216_v28 = vunpack.c.l.bf16 %v4382_v14 }
  0x65   : > { %v3624_v6 = vld [vmem:[#allocation2 + $0x70] sm:$0xff]  ;;  %v1810_v46 = vpack.c.bf16 %v1762_v39, %v1762_v39  ;;  %v1811_v1 = vpack.c.bf16 %v1763_v52, %v1763_v52  ;;  %v1235_v40 = vsel %vm1200_vm2, %v1232_v63, %v1234_v10  ;;  %v2217_v24 = vunpack.c.l.bf16 %v4383_v20 }
  0x66   : > { %v3625_v15 = vld [vmem:[#allocation2 + $0x78] sm:$0xff]  ;;  %v3864_v13 = vadd.f32 %v5118_v47, %v3624_v6  ;;  %v1233_v47 = vsel %vm1200_vm2, %v1231_v62, %v1232_v63  ;;  %v1889_v43 = vunpack.c.l.bf16 %v1809_v25  ;;  %v3816_v8 = vrot.slane %v3689_v9, 2 }
  0x67   : > { %v3865_v32 = vadd.f32 %v5121_v34, %v3625_v15  ;;  %v2811_v21 = vld [vmem:[#allocation2 + $0xf0] sm:$0xff]  ;;  %v3814_v34 = vrot.slane %v5189_v58, 2  ;;  %v1891_v44 = vunpack.c.l.bf16 %v1811_v1  ;;  %v1493_v51 = vpack.c.bf16 %v1461_v27, %v1461_v27 }
  0x68   : > { %3896 = vst.msk [vmem:[#allocation2 + $0x70] sm:$0xff] %vm337_vm0, %v3864_v13  ;;  %v2812_v26 = vld [vmem:[#allocation2 + $0xf8] sm:$0xff]  ;;  %v2875_v18 = vadd.f32 %v5146_v22, %v2811_v21  ;;  %v1890_v22 = vunpack.c.l.bf16 %v1810_v46  ;;  %v5213_v54 = vunpack.c.l.bf16 %v4796_v29  ;;  %v1494_v55 = vpack.c.bf16 %v1462_v38, %v1462_v38  ;;  %v414_v58 = vld [vmem:[%s4915_s25 + $0xb0] sm:$0x1] }
  0x69   : > { %3897 = vst.msk [vmem:[#allocation2 + $0x78] sm:$0xff] %vm337_vm0, %v3865_v32  ;;  %v2876_v30 = vadd.f32 %v5152_v4, %v2812_v26  ;;  %v1084_v42 = vld [vmem:[#allocation2 + $0x60] sm:$0xff]  ;;  %v2264_v56 = vmul.f32 %v4973_v35, %v2215_v7  ;;  %v2265_v57 = vmul.f32 %v4973_v35, %v2216_v28  ;;  %v3313_v62 = vsel %vm697_vm1, %v3311_v53, %v3312_v36 }
  0x6a   : > { %2907 = vst.msk [vmem:[#allocation2 + $0xf0] sm:$0xff] %vm337_vm0, %v2875_v18  ;;  %v1085_v49 = vld [vmem:[#allocation2 + $0x68] sm:$0xff]  ;;  %v1325_v50 = vadd.f32 %v1233_v47, %v1084_v42  ;;  %v3315_v63 = vsel %vm697_vm1, %v3312_v36, %v3314_v60  ;;  %v5223_v5 = vsel %vm1200_vm2, %v3813_v19, %v3814_v34  ;;  %v2266_v6 = vmul.f32 %v4973_v35, %v2217_v24  ;;  %v4831_v7 = vld [vmem:[%s4915_s25 + $0x60] sm:$0xff]  }
  0x6b   : > { %2908 = vst.msk [vmem:[#allocation2 + $0xf8] sm:$0xff] %vm337_vm0, %v2876_v30  ;;  %v1326_v4 = vadd.f32 %v1235_v40, %v1085_v49  ;;  %v1997_v9 = vrot.slane %v1889_v43, 1  ;;  %v1998_v10 = vrot.slane %v1890_v22, 1  ;;  %v2000_v39 = vrot.slane %v1891_v44, 1  ;;  %v916_v44 = vld [vmem:[%s4915_s25 + $0xa8] sm:$0xe] }
  0x6c   : > { %1357 = vst.msk [vmem:[#allocation2 + $0x60] sm:$0xff] %vm337_vm0, %v1325_v50  ;;  %v5228_v52 = vunpack.c.h.bf16 %v4796_v29  ;;  %v5231_v59 = vsel %vm1200_vm2, %v3814_v34, %v3816_v8  ;;  %v1557_v53 = vunpack.c.l.bf16 %v1493_v51  ;;  %v269_v36 = vmul.f32 %v5213_v54, %v4917_v12  ;;  %v4463_v50 = vld [vmem:[%s4915_s25 + $0x68] sm:$0x1] }
  0x6d   : > { %1358 = vst.msk [vmem:[#allocation2 + $0x68] sm:$0xff] %vm337_vm0, %v1326_v4  ;;  %v468_v60 = vunpack.c.l.bf16 %v414_v58  ;;  %v1558_v15 = vunpack.c.l.bf16 %v1494_v55  ;;  %v2312_v13 = vpack.c.bf16 %v2264_v56, %v2264_v56  ;;  %v2313_v19 = vpack.c.bf16 %v2265_v57, %v2265_v57  ;;  %v917_v55 = vld [vmem:[%s4915_s25 + $0xac] sm:$0xf] }
  0x6e   : > { %v270_v27 = vmul.f32 %v5228_v52, %v4917_v12  ;;  %v301_v32 = vpack.c.bf16 %v269_v36, %v269_v36  ;;  %v515_v21 = vmul.f32 %v5213_v54, %v4922_v16  ;;  %v516_v25 = vmul.f32 %v5228_v52, %v4922_v16 }
  0x6f   : > { %v3944_v23 = vld [vmem:[#allocation2 + $0x70] sm:$0xff]  ;;  %v5242_v26 = vsel %vm697_vm1, %v1997_v9, %v1998_v10  ;;  %v5245_v18 = vsel %vm697_vm1, %v1998_v10, %v2000_v39  ;;  %v2314_v47 = vpack.c.bf16 %v2266_v6, %v2266_v6  ;;  %v5251_v30 = vmul.f32 %v4948_v0, %v5009_v33 }
  0x70   : > { %v3945_v14 = vld [vmem:[#allocation2 + $0x78] sm:$0xff]  ;;  %v517_v34 = vmul.f32 %v4922_v16, %v468_v60  ;;  %v5255_v24 = vunpack.c.l.bf16 %v2312_v13  ;;  %v5259_v42 = vmul.f32 %v4950_v2, %v5009_v33  ;;  %v302_v43 = vpack.c.bf16 %v270_v27, %v270_v27  ;;  %v918_v10 = vld [vmem:[%s4915_s25 + $0xb0] sm:$0x1] }
  0x71   : > { %v3969_v38 = vpack.c.bf16 %v3945_v14, %v3944_v23  ;;  %v3138_v20 = vld [vmem:[#allocation2 + $0xf0] sm:$0xff]  ;;  %v333_v22 = vunpack.c.l.bf16 %v301_v32  ;;  %v4772_v49 = vunpack.c.l.bf16 %v4831_v7  ;;  %v563_v51 = vpack.c.bf16 %v515_v21, %v515_v21 }
  0x72   : > { %v3139_v46 = vld [vmem:[#allocation2 + $0xf8] sm:$0xff]  ;;  %v3378_v1 = vadd.f32 %v3313_v62, %v3138_v20  ;;  %v564_v4 = vpack.c.bf16 %v516_v25, %v516_v25  ;;  %v5265_v57 = vunpack.c.l.bf16 %v2313_v19  ;;  %v4773_v58 = vunpack.c.h.bf16 %v4831_v7 }
  0x73   : > { %v4064_v28 = vsel %vm337_vm0, %v3969_v38, 0  ;;  %v3379_v29 = vadd.f32 %v3315_v63, %v3139_v46  ;;  %v1525_v40 = vld [vmem:[#allocation2 + $0x60] sm:$0xff]  ;;  %v334_v62 = vunpack.c.l.bf16 %v302_v43  ;;  %366 = vst.msk [vmem:[#allocation2 + $0xe0] sm:$0xff] %vm337_vm0, %v333_v22  ;;  %v5269_v2 = vunpack.c.l.bf16 %v2314_v47  ;;  %v4511_v22 = vld [vmem:[%s4915_s25 + $0x68] sm:$0x1] }
  0x74   : > { %4090 = vmatpush.bf16.xpose.msra.mxu0 %v4064_v28  ;;  %4836 = vmatpush.bf16.xpose.msra.mxu2 %v4064_v28  ;;  %3410 = vst.msk [vmem:[#allocation2 + $0xf0] sm:$0xff] %vm337_vm0, %v3378_v1  ;;  %v1526_v0 = vld [vmem:[#allocation2 + $0x68] sm:$0xff]  ;;  %v1589_v8 = vadd.f32 %v1557_v53, %v1525_v40  ;;  %v565_v63 = vpack.c.bf16 %v517_v34, %v517_v34  ;;  %v643_v6 = vunpack.c.l.bf16 %v563_v51  ;;  %v644_v9 = vunpack.c.l.bf16 %v564_v4  ;;  %v4510_v43 = vld [vmem:[%s4915_s25 + $0x64] sm:$0xf] }
  0x75   : > { %3411 = vst.msk [vmem:[#allocation2 + $0xf8] sm:$0xff] %vm337_vm0, %v3379_v29  ;;  %v1590_v56 = vadd.f32 %v1558_v15, %v1526_v0  ;;  %v2500_v39 = vrot.slane %v5255_v24, 2  ;;  %v2983_v23 = vunpack.c.l.bf16 %v4463_v50  ;;  %v969_v53 = vunpack.c.l.bf16 %v916_v44  ;;  %v4509_v29 = vld [vmem:[%s4915_s25 + $0x60] sm:$0xe] }
  0x76   : > { %1621 = vst.msk [vmem:[#allocation2 + $0x60] sm:$0xff] %vm337_vm0, %v1589_v8  ;;  %v970_v36 = vunpack.c.l.bf16 %v917_v55  ;;  %v3030_v60 = vmul.f32 %v4772_v49, %v5017_v61  ;;  %v645_v14 = vunpack.c.l.bf16 %v565_v63  ;;  %v768_v15 = vrot.slane %v643_v6, 1 }
  0x77   : > { %1622 = vst.msk [vmem:[#allocation2 + $0x68] sm:$0xff] %vm337_vm0, %v1590_v56  ;;  %v769_v13 = vrot.slane %v644_v9, 1  ;;  %v2761_v19 = vpack.c.bf16 %v5251_v30, %v5251_v30  ;;  %v5279_v27 = vmul.f32 %v4773_v58, %v5017_v61  ;;  %v971_v38 = vunpack.c.l.bf16 %v918_v10 }
  0x78   : > { %367 = vst.msk [vmem:[#allocation2 + $0xe8] sm:$0xff] %vm337_vm0, %v334_v62  ;;  %v1018_v20 = vmul.f32 %v4924_v17, %v969_v53  ;;  %v2501_v21 = vrot.slane %v5265_v57, 2  ;;  %v2503_v25 = vrot.slane %v5269_v2, 2  ;;  %v771_v46 = vrot.slane %v645_v14, 1 }
  0x79   : > { %v1019_v1 = vmul.f32 %v4924_v17, %v970_v36  ;;  %v3032_v28 = vmul.f32 %v5017_v61, %v2983_v23  ;;  %v770_v30 = vsel %vm697_vm1, %v768_v15, %v769_v13  ;;  %v1020_v34 = vmul.f32 %v4924_v17, %v971_v38 }
  0x7a   : > { %v3078_v24 = vpack.c.bf16 %v3030_v60, %v3030_v60  ;;  %v3483_v44 = vunpack.c.l.bf16 %v4509_v29  ;;  %v597_v0 = vld [vmem:[#allocation2 + $0xe0] sm:$0xff]  ;;  %v1066_v8 = vpack.c.bf16 %v1018_v20, %v1018_v20  ;;  %v3484_v50 = vunpack.c.l.bf16 %v4510_v43 }
  0x7b   : > { %v3640_v32 = vld [vmem:[#allocation2 + $0xf0] sm:$0xff]  ;;  %v3485_v51 = vunpack.c.l.bf16 %v4511_v22  ;;  %v772_v4 = vsel %vm697_vm1, %v769_v13, %v771_v46  ;;  %v838_v57 = vadd.f32 %v770_v30, %v597_v0  ;;  %v1067_v58 = vpack.c.bf16 %v1019_v1, %v1019_v1 }
  0x7c   : > { %v3641_v47 = vld [vmem:[#allocation2 + $0xf8] sm:$0xff]  ;;  %v3880_v7 = vadd.f32 %v5223_v5, %v3640_v32  ;;  %v3079_v5 = vpack.c.bf16 %v5279_v27, %v5279_v27  ;;  %v3532_v56 = vmul.f32 %v5056_v48, %v3483_v44  ;;  %v3533_v2 = vmul.f32 %v5056_v48, %v3484_v50 }
  0x7d   : > { %v3881_v40 = vadd.f32 %v5231_v59, %v3641_v47  ;;  %v1851_v49 = vld [vmem:[#allocation2 + $0x60] sm:$0xff]  ;;  %v3534_v63 = vmul.f32 %v5056_v48, %v3485_v51  ;;  %v1068_v9 = vpack.c.bf16 %v1020_v34, %v1020_v34  ;;  %v3080_v10 = vpack.c.bf16 %v3032_v28, %v3032_v28  ;;  %v4357_v13 = vld [vmem:[%s4915_s25 + $0xb4] sm:$0xff]   ;;  %870 = vst.msk [vmem:[#allocation2 + $0xe0] sm:$0xff] %vm337_vm0, %v838_v57  ;;  %v4359_v28 = vld [vmem:[%s4915_s25 + $0xbc] sm:$0x1] }
  0x7e   : > { %3912 = vst.msk [vmem:[#allocation2 + $0xf0] sm:$0xff] %vm337_vm0, %v3880_v7  ;;  %v1852_v59 = vld [vmem:[#allocation2 + $0x68] sm:$0xff]  ;;  %v2091_v55 = vadd.f32 %v5242_v26, %v1851_v49  ;;  %v1146_v53 = vunpack.c.l.bf16 %v1066_v8  ;;  %v1147_v36 = vunpack.c.l.bf16 %v1067_v58  ;;  %v4311_v26 = vld [vmem:[%s4915_s25 + $0xb4] sm:$0xff]   ;;  %v5306_v60 = vunpack.c.l.bf16 %v3078_v24 }
  0x7f   : > { %3913 = vst.msk [vmem:[#allocation2 + $0xf8] sm:$0xff] %vm337_vm0, %v3881_v40  ;;  %v2092_v62 = vadd.f32 %v5245_v18, %v1852_v59  ;;  %v598_v6 = vld [vmem:[#allocation2 + $0xe8] sm:$0xff]  ;;  %v3580_v18 = vpack.c.bf16 %v3532_v56, %v3532_v56  ;;  %v3581_v14 = vpack.c.bf16 %v3533_v2, %v3533_v2  ;;  %v1148_v15 = vunpack.c.l.bf16 %v1068_v9  ;;  %v4406_v59 = vld [vmem:[%s4915_s25 + $0xb8] sm:$0xf] }
  0x80   : > { %2123 = vst.msk [vmem:[#allocation2 + $0x60] sm:$0xff] %vm337_vm0, %v2091_v55  ;;  %v839_v23 = vadd.f32 %v772_v4, %v598_v6  ;;  %v2502_v27 = vsel %vm1200_vm2, %v2500_v39, %v2501_v21  ;;  %v2504_v38 = vsel %vm1200_vm2, %v2501_v21, %v2503_v25  ;;  %v2762_v20 = vpack.c.bf16 %v5259_v42, %v5259_v42  ;;  %v4407_v55 = vld [vmem:[%s4915_s25 + $0xbc] sm:$0x1] }
  0x81   : > { %2124 = vst.msk [vmem:[#allocation2 + $0x68] sm:$0xff] %vm337_vm0, %v2092_v62  ;;  %v3582_v32 = vpack.c.bf16 %v3534_v63, %v3534_v63  ;;  %v1271_v46 = vrot.slane %v1146_v53, 2  ;;  %v1272_v1 = vrot.slane %v1147_v36, 2  ;;  %v1444_v47 = vunpack.c.l.bf16 %v4311_v26 }
  0x82   : > { %871 = vst.msk [vmem:[#allocation2 + $0xe8] sm:$0xff] %vm337_vm0, %v839_v23  ;;  %v1445_v7 = vunpack.c.h.bf16 %v4311_v26  ;;  %v5316_v30 = vunpack.c.l.bf16 %v2761_v19  ;;  %v3159_v39 = vunpack.c.l.bf16 %v3079_v5  ;;  %v1274_v34 = vrot.slane %v1148_v15, 2  ;;  %v4405_v19 = vld [vmem:[%s4915_s25 + $0xb4] sm:$0xe] }
  0x83   : > { %v1736_v21 = vunpack.c.l.bf16 %v4357_v13  ;;  %v3160_v42 = vunpack.c.l.bf16 %v3080_v10  ;;  %v3266_v40 = vrot.slane %v5306_v60, 1  ;;  %v5319_v24 = vunpack.c.l.bf16 %v3580_v18 }
  0x84   : > { %v5321_v43 = vunpack.c.l.bf16 %v3581_v14  ;;  %v5323_v44 = vunpack.c.l.bf16 %v3582_v32  ;;  %v1737_v0 = vunpack.c.h.bf16 %v4357_v13  ;;  %v1738_v8 = vunpack.c.l.bf16 %v4359_v28  ;;  %v1100_v6 = vld [vmem:[#allocation2 + $0xe0] sm:$0xff] }
  0x85   : > { %v3960_v29 = vld [vmem:[#allocation2 + $0xf0] sm:$0xff]  ;;  %v1273_v5 = vsel %vm1200_vm2, %v1271_v46, %v1272_v1  ;;  %v1477_v50 = vmul.f32 %v4952_v3, %v1444_v47  ;;  %v1478_v51 = vmul.f32 %v4952_v3, %v1445_v7  ;;  %v1785_v4 = vmul.f32 %v4956_v11, %v1736_v21  ;;  %v181_v14 = vld [vmem:[%s4915_s25 + $0x3c] sm:$0xff]  }
  0x86   : > { %v3961_v25 = vld [vmem:[#allocation2 + $0xf8] sm:$0xff]  ;;  %v1275_v62 = vsel %vm1200_vm2, %v1272_v1, %v1274_v34  ;;  %v1786_v2 = vmul.f32 %v4956_v11, %v1737_v0  ;;  %v1787_v9 = vmul.f32 %v4956_v11, %v1738_v8  ;;  %v2239_v23 = vunpack.c.l.bf16 %v4405_v19 }
  0x87   : > { %v3977_v22 = vpack.c.bf16 %v3961_v25, %v3960_v29  ;;  %v2354_v49 = vld [vmem:[#allocation2 + $0x60] sm:$0xff]  ;;  %v1833_v10 = vpack.c.bf16 %v1785_v4, %v1785_v4  ;;  %v1341_v36 = vadd.f32 %v1273_v5, %v1100_v6  ;;  %v2240_v60 = vunpack.c.l.bf16 %v4406_v59 }
  0x88   : > { %v2355_v57 = vld [vmem:[#allocation2 + $0x68] sm:$0xff]  ;;  %v2594_v58 = vadd.f32 %v2502_v27, %v2354_v49  ;;  %v1834_v26 = vpack.c.bf16 %v1786_v2, %v1786_v2  ;;  %v2241_v18 = vunpack.c.l.bf16 %v4407_v55  ;;  %v3267_v15 = vrot.slane %v3159_v39, 1 }
  0x89   : > { %v4088_v56 = vsel %vm337_vm0, %v3977_v22, 0  ;;  %v2595_v63 = vadd.f32 %v2504_v38, %v2355_v57  ;;  %v1101_v53 = vld [vmem:[#allocation2 + $0xe8] sm:$0xff]  ;;  %v3269_v13 = vrot.slane %v3160_v42, 1  ;;  %v1509_v32 = vpack.c.bf16 %v1477_v50, %v1477_v50  ;;  %1373 = vst.msk [vmem:[#allocation2 + $0xe0] sm:$0xff] %vm337_vm0, %v1341_v36 }
  0x8a   : > { %4139 = vmatpush.bf16.xpose.msra.mxu1 %v4088_v56  ;;  %4844 = vmatpush.bf16.xpose.msra.mxu3 %v4088_v56  ;;  %2626 = vst.msk [vmem:[#allocation2 + $0x60] sm:$0xff] %vm337_vm0, %v2594_v58  ;;  %v1342_v27 = vadd.f32 %v1275_v62, %v1101_v53  ;;  %v2826_v38 = vunpack.c.l.bf16 %v2762_v20  ;;  %v1510_v46 = vpack.c.bf16 %v1478_v51, %v1478_v51  ;;  %v1913_v7 = vunpack.c.l.bf16 %v1833_v10  ;;  %v387_v10 = vld [vmem:[%s4915_s25 + $0x44] sm:$0x1] }
  0x8b   : > { %2627 = vst.msk [vmem:[#allocation2 + $0x68] sm:$0xff] %vm337_vm0, %v2595_v63  ;;  %v1835_v1 = vpack.c.bf16 %v1787_v9, %v1787_v9  ;;  %v2288_v47 = vmul.f32 %v4973_v35, %v2239_v23  ;;  %v1914_v28 = vunpack.c.l.bf16 %v1834_v26  ;;  %v2289_v29 = vmul.f32 %v4973_v35, %v2240_v60  ;;  %v385_v9 = vld [vmem:[%s4915_s25 + $0x3c] sm:$0xff]   ;;  %v4487_v60 = vld [vmem:[%s4915_s25 + $0xc8] sm:$0x1] }
  0x8c   : > { %1374 = vst.msk [vmem:[#allocation2 + $0xe8] sm:$0xff] %vm337_vm0, %v1342_v27  ;;  %v218_v34 = vunpack.c.l.bf16 %v181_v14  ;;  %v3768_v21 = vrot.slane %v5319_v24, 2  ;;  %v3769_v39 = vrot.slane %v5321_v43, 2  ;;  %v3771_v25 = vrot.slane %v5323_v44, 2 }
  0x8d   : > { %v2290_v20 = vmul.f32 %v4973_v35, %v2241_v18  ;;  %v5348_v42 = vsel %vm697_vm1, %v3266_v40, %v3267_v15  ;;  %v5351_v22 = vsel %vm697_vm1, %v3267_v15, %v3269_v13  ;;  %v1573_v0 = vunpack.c.l.bf16 %v1509_v32 }
  0x8e   : > { %v219_v8 = vunpack.c.h.bf16 %v181_v14  ;;  %v1574_v19 = vunpack.c.l.bf16 %v1510_v46  ;;  %v1915_v49 = vunpack.c.l.bf16 %v1835_v1  ;;  %v2336_v5 = vpack.c.bf16 %v2288_v47, %v2288_v47  ;;  %v889_v1 = vld [vmem:[%s4915_s25 + $0x3c] sm:$0xe] }
  0x8f   : > { %v5355_v24 = vmul.f32 %v5041_v37, %v5009_v33  ;;  %v2037_v44 = vrot.slane %v1913_v7, 1  ;;  %v2038_v50 = vrot.slane %v1914_v28, 1  ;;  %v2337_v51 = vpack.c.bf16 %v2289_v29, %v2289_v29 }
  0x90   : > { %v251_v40 = vmul.f32 %v4917_v12, %v218_v34  ;;  %v5360_v55 = vsel %vm1200_vm2, %v3768_v21, %v3769_v39  ;;  %v5363_v56 = vsel %vm1200_vm2, %v3769_v39, %v3771_v25  ;;  %v2338_v57 = vpack.c.bf16 %v2290_v20, %v2290_v20  ;;  %v1541_v62 = vld [vmem:[#allocation2 + $0xe0] sm:$0xff] }
  0x91   : > { %v2793_v43 = vld [vmem:[#allocation2 + $0x60] sm:$0xff]  ;;  %v5367_v2 = vmul.f32 %v5046_v41, %v5009_v33  ;;  %v252_v63 = vmul.f32 %v4917_v12, %v219_v8  ;;  %v1605_v23 = vadd.f32 %v1573_v0, %v1541_v62  ;;  %v2040_v53 = vrot.slane %v1915_v49, 1 }
  0x92   : > { %v2794_v4 = vld [vmem:[#allocation2 + $0x68] sm:$0xff]  ;;  %v2857_v59 = vadd.f32 %v5316_v30, %v2793_v43  ;;  %v283_v6 = vpack.c.bf16 %v251_v40, %v251_v40  ;;  %v5373_v36 = vunpack.c.l.bf16 %v2336_v5  ;;  %v2777_v26 = vpack.c.bf16 %v5355_v24, %v5355_v24  ;;  %v890_v20 = vld [vmem:[%s4915_s25 + $0x40] sm:$0xf] }
  0x93   : > { %v2858_v58 = vadd.f32 %v2826_v38, %v2794_v4  ;;  %v1542_v30 = vld [vmem:[#allocation2 + $0xe8] sm:$0xff]  ;;  %v2039_v14 = vsel %vm697_vm1, %v2037_v44, %v2038_v50  ;;  %v5380_v15 = vunpack.c.l.bf16 %v2337_v51  ;;  %v284_v13 = vpack.c.bf16 %v252_v63, %v252_v63  ;;  %1637 = vst.msk [vmem:[#allocation2 + $0xe0] sm:$0xff] %vm337_vm0, %v1605_v23 }
  0x94   : > { %2889 = vst.msk [vmem:[#allocation2 + $0x60] sm:$0xff] %vm337_vm0, %v2857_v59  ;;  %v1606_v18 = vadd.f32 %v1574_v19, %v1542_v30  ;;  %v5383_v27 = vunpack.c.l.bf16 %v2338_v57  ;;  %v315_v32 = vunpack.c.l.bf16 %v283_v6  ;;  %v439_v38 = vunpack.c.l.bf16 %v385_v9  ;;  %v4533_v59 = vld [vmem:[%s4915_s25 + $0xc0] sm:$0xe]  ;;  %v4534_v6 = vld [vmem:[%s4915_s25 + $0xc4] sm:$0xf] }
  0x95   : > { %2890 = vst.msk [vmem:[#allocation2 + $0x68] sm:$0xff] %vm337_vm0, %v2858_v58  ;;  %v440_v46 = vunpack.c.h.bf16 %v385_v9  ;;  %v3007_v47 = vunpack.c.l.bf16 %v4487_v60  ;;  %v3054_v7 = vmul.f32 %v5041_v37, %v5017_v61  ;;  %v316_v28 = vunpack.c.l.bf16 %v284_v13  ;;  %v4535_v9 = vld [vmem:[%s4915_s25 + $0xc8] sm:$0x1] }
  0x96   : > { %1638 = vst.msk [vmem:[#allocation2 + $0xe8] sm:$0xff] %vm337_vm0, %v1606_v18  ;;  %v441_v29 = vunpack.c.l.bf16 %v387_v10  ;;  %v2041_v34 = vsel %vm697_vm1, %v2038_v50, %v2040_v53  ;;  %v2778_v21 = vpack.c.bf16 %v5367_v2, %v5367_v2  ;;  %v488_v39 = vmul.f32 %v4922_v16, %v439_v38  ;;  %v891_v50 = vld [vmem:[%s4915_s25 + $0x44] sm:$0x1] }
  0x97   : > { %348 = vst.msk [vmem:[#allocation2 + $0x50] sm:$0xff] %vm337_vm0, %v315_v32  ;;  %v489_v25 = vmul.f32 %v4922_v16, %v440_v46  ;;  %v2540_v0 = vrot.slane %v5373_v36, 2  ;;  %v2541_v37 = vrot.slane %v5380_v15, 2  ;;  %v942_v19 = vunpack.c.l.bf16 %v889_v1  ;;  %v4332_v15 = vld [vmem:[%s4915_s25 + $0x50] sm:$0x1] }
  0x98   : > { %349 = vst.msk [vmem:[#allocation2 + $0x58] sm:$0xff] %vm337_vm0, %v316_v28  ;;  %v490_v8 = vmul.f32 %v4922_v16, %v441_v29  ;;  %v2543_v49 = vrot.slane %v5383_v27, 2  ;;  %v3055_v5 = vmul.f32 %v5046_v41, %v5017_v61  ;;  %v536_v43 = vpack.c.bf16 %v488_v39, %v488_v39 }
  0x99   : > { %v537_v44 = vpack.c.bf16 %v489_v25, %v489_v25  ;;  %v3056_v40 = vmul.f32 %v5017_v61, %v3007_v47  ;;  %v3102_v4 = vpack.c.bf16 %v3054_v7, %v3054_v7  ;;  %v943_v58 = vunpack.c.l.bf16 %v890_v20 }
  0x9a   : > { %v538_v57 = vpack.c.bf16 %v490_v8, %v490_v8  ;;  %v3507_v10 = vunpack.c.l.bf16 %v4533_v59  ;;  %v616_v30 = vunpack.c.l.bf16 %v536_v43  ;;  %v1867_v53 = vld [vmem:[#allocation2 + $0xe0] sm:$0xff]  ;;  %v3508_v36 = vunpack.c.l.bf16 %v4534_v6 }
  0x9b   : > { %v3120_v51 = vld [vmem:[#allocation2 + $0x60] sm:$0xff]  ;;  %v617_v23 = vunpack.c.l.bf16 %v537_v44  ;;  %v944_v60 = vunpack.c.l.bf16 %v891_v50  ;;  %v991_v18 = vmul.f32 %v4924_v17, %v942_v19  ;;  %v2107_v27 = vadd.f32 %v2039_v14, %v1867_v53 }
  0x9c   : > { %v3121_v62 = vld [vmem:[#allocation2 + $0x68] sm:$0xff]  ;;  %v3360_v63 = vadd.f32 %v5348_v42, %v3120_v51  ;;  %v3103_v32 = vpack.c.bf16 %v3055_v5, %v3055_v5  ;;  %v3509_v38 = vunpack.c.l.bf16 %v4535_v9  ;;  %v618_v46 = vunpack.c.l.bf16 %v538_v57 }
  0x9d   : > { %v3361_v41 = vadd.f32 %v5351_v22, %v3121_v62  ;;  %v1868_v13 = vld [vmem:[#allocation2 + $0xe8] sm:$0xff]  ;;  %v3556_v1 = vmul.f32 %v5056_v48, %v3507_v10  ;;  %v723_v7 = vrot.slane %v616_v30, 1  ;;  %v724_v22 = vrot.slane %v617_v23, 1  ;;  %2139 = vst.msk [vmem:[#allocation2 + $0xe0] sm:$0xff] %vm337_vm0, %v2107_v27 }
  0x9e   : > { %3392 = vst.msk [vmem:[#allocation2 + $0x60] sm:$0xff] %vm337_vm0, %v3360_v63  ;;  %v2108_v42 = vadd.f32 %v2041_v34, %v1868_v13  ;;  %v579_v47 = vld [vmem:[#allocation2 + $0x50] sm:$0xff]  ;;  %v3557_v28 = vmul.f32 %v5056_v48, %v3508_v36  ;;  %v3558_v29 = vmul.f32 %v5056_v48, %v3509_v38  ;;  %v726_v25 = vrot.slane %v618_v46, 1 }
  0x9f   : > { %3393 = vst.msk [vmem:[#allocation2 + $0x68] sm:$0xff] %vm337_vm0, %v3361_v41  ;;  %v580_v39 = vld [vmem:[#allocation2 + $0x58] sm:$0xff]  ;;  %v992_v14 = vmul.f32 %v4924_v17, %v943_v58  ;;  %v3104_v20 = vpack.c.bf16 %v3056_v40, %v3056_v40  ;;  %v725_v34 = vsel %vm697_vm1, %v723_v7, %v724_v22  ;;  %v993_v8 = vmul.f32 %v4924_v17, %v944_v60  ;;  %v4380_v7 = vld [vmem:[%s4915_s25 + $0x50] sm:$0x1] }
  0xa0   : > { %2140 = vst.msk [vmem:[#allocation2 + $0xe8] sm:$0xff] %vm337_vm0, %v2108_v42  ;;  %v1039_v19 = vpack.c.bf16 %v991_v18, %v991_v18  ;;  %v5421_v5 = vunpack.c.l.bf16 %v3102_v4  ;;  %v5423_v43 = vunpack.c.l.bf16 %v3103_v32  ;;  %v727_v44 = vsel %vm697_vm1, %v724_v22, %v726_v25  ;;  %v4378_v32 = vld [vmem:[%s4915_s25 + $0x48] sm:$0xe] }
  0xa1   : > { %v820_v50 = vadd.f32 %v725_v34, %v579_v47  ;;  %v2542_v51 = vsel %vm1200_vm2, %v2540_v0, %v2541_v37  ;;  %v821_v59 = vadd.f32 %v727_v44, %v580_v39  ;;  %v1040_v57 = vpack.c.bf16 %v992_v14, %v992_v14  ;;  %v4379_v47 = vld [vmem:[%s4915_s25 + $0x4c] sm:$0xf] }
  0xa2   : > { %v1041_v58 = vpack.c.bf16 %v993_v8, %v993_v8  ;;  %v3604_v40 = vpack.c.bf16 %v3556_v1, %v3556_v1  ;;  %v3605_v62 = vpack.c.bf16 %v3557_v28, %v3557_v28  ;;  %v3606_v63 = vpack.c.bf16 %v3558_v29, %v3558_v29 }
  0xa3   : > { %852 = vst.msk [vmem:[#allocation2 + $0x50] sm:$0xff] %vm337_vm0, %v820_v50  ;;  %v1119_v4 = vunpack.c.l.bf16 %v1039_v19  ;;  %v2544_v9 = vsel %vm1200_vm2, %v2541_v37, %v2543_v49  ;;  %v5433_v10 = vunpack.c.l.bf16 %v3104_v20  ;;  %v1120_v0 = vunpack.c.l.bf16 %v1040_v57 }
  0xa4   : > { %853 = vst.msk [vmem:[#allocation2 + $0x58] sm:$0xff] %vm337_vm0, %v821_v59  ;;  %v1121_v30 = vunpack.c.l.bf16 %v1041_v58  ;;  %v3306_v53 = vrot.slane %v5421_v5, 1  ;;  %v3307_v36 = vrot.slane %v5423_v43, 1  ;;  %v2370_v49 = vld [vmem:[#allocation2 + $0xe0] sm:$0xff]  ;;  %v1459_v27 = vmul.f32 %v5105_v31, %v4952_v3 }
  0xa5   : > { %v3622_v6 = vld [vmem:[#allocation2 + $0x60] sm:$0xff]  ;;  %v1226_v60 = vrot.slane %v1119_v4, 2  ;;  %v1227_v18 = vrot.slane %v1120_v0, 2  ;;  %v2610_v38 = vadd.f32 %v2542_v51, %v2370_v49  ;;  %v5445_v46 = vunpack.c.l.bf16 %v3604_v40  ;;  %v4421_v0 = vld [vmem:[%s4915_s25 + $0x54] sm:$0xff]  }
  0xa6   : > { %v3623_v23 = vld [vmem:[#allocation2 + $0x68] sm:$0xff]  ;;  %v3862_v41 = vadd.f32 %v5360_v55, %v3622_v6  ;;  %v1229_v13 = vrot.slane %v1121_v30, 2  ;;  %v5447_v42 = vunpack.c.l.bf16 %v3605_v62  ;;  %v5449_v1 = vunpack.c.l.bf16 %v3606_v63 }
  0xa7   : > { %v3863_v37 = vadd.f32 %v5363_v56, %v3623_v23  ;;  %v2371_v55 = vld [vmem:[#allocation2 + $0xe8] sm:$0xff]  ;;  %v1228_v22 = vsel %vm1200_vm2, %v1226_v60, %v1227_v18  ;;  %v1460_v28 = vmul.f32 %v5112_v45, %v4952_v3  ;;  %v1711_v29 = vunpack.c.l.bf16 %v4332_v15  ;;  %2642 = vst.msk [vmem:[#allocation2 + $0xe0] sm:$0xff] %vm337_vm0, %v2610_v38 }
  0xa8   : > { %3894 = vst.msk [vmem:[#allocation2 + $0x60] sm:$0xff] %vm337_vm0, %v3862_v41  ;;  %v2611_v56 = vadd.f32 %v2544_v9, %v2371_v55  ;;  %v1230_v39 = vsel %vm1200_vm2, %v1227_v18, %v1229_v13  ;;  %v1758_v25 = vmul.f32 %v5105_v31, %v4956_v11  ;;  %v1759_v14 = vmul.f32 %v5112_v45, %v4956_v11 }
  0xa9   : > { %3895 = vst.msk [vmem:[#allocation2 + $0x68] sm:$0xff] %vm337_vm0, %v3863_v37  ;;  %v2212_v20 = vunpack.c.l.bf16 %v4378_v32  ;;  %v1491_v8 = vpack.c.bf16 %v1459_v27, %v1459_v27  ;;  %v1760_v19 = vmul.f32 %v4956_v11, %v1711_v29  ;;  %v2213_v5 = vunpack.c.l.bf16 %v4379_v47  ;;  %v197_v32 = vld [vmem:[%s4915_s25 + $0x9c] sm:$0xff]   ;;  %v4458_v29 = vld [vmem:[%s4915_s25 + $0x54] sm:$0xff]  }
  0xaa   : > { %2643 = vst.msk [vmem:[#allocation2 + $0xe8] sm:$0xff] %vm337_vm0, %v2611_v56  ;;  %v1082_v34 = vld [vmem:[#allocation2 + $0x50] sm:$0xff]  ;;  %v2214_v44 = vunpack.c.l.bf16 %v4380_v7  ;;  %v1806_v59 = vpack.c.bf16 %v1758_v25, %v1758_v25  ;;  %v1807_v57 = vpack.c.bf16 %v1759_v14, %v1759_v14  ;;  %v2841_v31 = vunpack.c.l.bf16 %v2777_v26 }
  0xab   : > { %v1083_v50 = vld [vmem:[#allocation2 + $0x58] sm:$0xff]  ;;  %v1323_v51 = vadd.f32 %v1228_v22, %v1082_v34  ;;  %v2261_v58 = vmul.f32 %v4973_v35, %v2212_v20  ;;  %v1492_v40 = vpack.c.bf16 %v1460_v28, %v1460_v28  ;;  %v1808_v62 = vpack.c.bf16 %v1760_v19, %v1760_v19 }
  0xac   : > { %v1324_v45 = vadd.f32 %v1230_v39, %v1083_v50  ;;  %v2842_v63 = vunpack.c.l.bf16 %v2778_v21  ;;  %v1886_v4 = vunpack.c.l.bf16 %v1806_v59  ;;  %v2262_v6 = vmul.f32 %v4973_v35, %v2213_v5  ;;  %v409_v19 = vld [vmem:[%s4915_s25 + $0x9c] sm:$0xff]  }
  0xad   : > { %1355 = vst.msk [vmem:[#allocation2 + $0x50] sm:$0xff] %vm337_vm0, %v1323_v51  ;;  %v2263_v9 = vmul.f32 %v4973_v35, %v2214_v44  ;;  %v5479_v24 = vsel %vm697_vm1, %v3306_v53, %v3307_v36  ;;  %v3309_v26 = vrot.slane %v5433_v10, 1  ;;  %v1887_v2 = vunpack.c.l.bf16 %v1807_v57  ;;  %v411_v51 = vld [vmem:[%s4915_s25 + $0xa4] sm:$0x1] }
  0xae   : > { %1356 = vst.msk [vmem:[#allocation2 + $0x58] sm:$0xff] %vm337_vm0, %v1324_v45  ;;  %v2309_v21 = vpack.c.bf16 %v2261_v58, %v2261_v58  ;;  %v3808_v41 = vrot.slane %v5445_v46, 2  ;;  %v3809_v60 = vrot.slane %v5447_v42, 2  ;;  %v3811_v15 = vrot.slane %v5449_v1, 2  ;;  %v2809_v18 = vld [vmem:[#allocation2 + $0xe0] sm:$0xff] }
  0xaf   : > { %v3942_v30 = vld [vmem:[#allocation2 + $0x60] sm:$0xff]  ;;  %v1555_v37 = vunpack.c.l.bf16 %v1491_v8  ;;  %v1556_v13 = vunpack.c.l.bf16 %v1492_v40  ;;  %v1888_v27 = vunpack.c.l.bf16 %v1808_v62  ;;  %v2694_v53 = vunpack.c.l.bf16 %v4421_v0  ;;  %v4460_v45 = vld [vmem:[%s4915_s25 + $0x5c] sm:$0x1] }
  0xb0   : > { %v3943_v23 = vld [vmem:[#allocation2 + $0x68] sm:$0xff]  ;;  %v2873_v55 = vadd.f32 %v2841_v31, %v2809_v18  ;;  %v1992_v38 = vrot.slane %v1886_v4, 1  ;;  %v2310_v47 = vpack.c.bf16 %v2262_v6, %v2262_v6  ;;  %v2311_v7 = vpack.c.bf16 %v2263_v9, %v2263_v9 }
  0xb1   : > { %v3968_v49 = vpack.c.bf16 %v3943_v23, %v3942_v30  ;;  %v2810_v10 = vld [vmem:[#allocation2 + $0xe8] sm:$0xff]  ;;  %v1993_v42 = vrot.slane %v1887_v2, 1  ;;  %v5488_v22 = vunpack.c.l.bf16 %v2309_v21  ;;  %v3310_v1 = vsel %vm697_vm1, %v3307_v36, %v3309_v26 }
  0xb2   : > { %v2874_v46 = vadd.f32 %v2842_v63, %v2810_v10  ;;  %2905 = vst.msk [vmem:[#allocation2 + $0xe0] sm:$0xff] %vm337_vm0, %v2873_v55  ;;  %v5495_v28 = vsel %vm1200_vm2, %v3808_v41, %v3809_v60  ;;  %v234_v39 = vunpack.c.l.bf16 %v197_v32  ;;  %v5500_v25 = vsel %vm1200_vm2, %v3809_v60, %v3811_v15 }
  0xb3   : > { %v4061_v56 = vsel %vm337_vm0, %v3968_v49, 0  ;;  %v1995_v20 = vrot.slane %v1888_v27, 1  ;;  %v2695_v34 = vunpack.c.h.bf16 %v4421_v0  ;;  %v235_v8 = vunpack.c.h.bf16 %v197_v32 }
  0xb4   : > { %4091 = vmatpush.bf16.xpose.msra.mxu0 %v4061_v56  ;;  %4837 = vmatpush.bf16.xpose.msra.mxu2 %v4061_v56  ;;  %2906 = vst.msk [vmem:[#allocation2 + $0xe8] sm:$0xff] %vm337_vm0, %v2874_v46  ;;  %v1523_v14 = vld [vmem:[#allocation2 + $0x50] sm:$0xff]  ;;  %v5503_v36 = vunpack.c.l.bf16 %v2310_v47  ;;  %v5505_v44 = vunpack.c.l.bf16 %v2311_v7  ;;  %v5508_v50 = vmul.f32 %v5009_v33, %v2694_v53  ;;  %v1994_v57 = vsel %vm697_vm1, %v1992_v38, %v1993_v42  ;;  %v4507_v56 = vld [vmem:[%s4915_s25 + $0x58] sm:$0xf]  ;;  %v4508_v46 = vld [vmem:[%s4915_s25 + $0x5c] sm:$0x1] }
  0xb5   : > { %v1524_v43 = vld [vmem:[#allocation2 + $0x58] sm:$0xff]  ;;  %v1587_v5 = vadd.f32 %v1555_v37, %v1523_v14  ;;  %v2495_v58 = vrot.slane %v5488_v22, 2  ;;  %v2978_v31 = vunpack.c.l.bf16 %v4458_v29  ;;  %v267_v40 = vmul.f32 %v4917_v12, %v234_v39  ;;  %v4506_v47 = vld [vmem:[%s4915_s25 + $0x54] sm:$0xe] }
  0xb6   : > { %v1588_v59 = vadd.f32 %v1556_v13, %v1524_v43  ;;  %v268_v62 = vmul.f32 %v4917_v12, %v235_v8  ;;  %v463_v63 = vunpack.c.l.bf16 %v409_v19  ;;  %v464_v4 = vunpack.c.h.bf16 %v409_v19  ;;  %v913_v8 = vld [vmem:[%s4915_s25 + $0x9c] sm:$0xe] }
  0xb7   : > { %1619 = vst.msk [vmem:[#allocation2 + $0x50] sm:$0xff] %vm337_vm0, %v1587_v5  ;;  %v1996_v6 = vsel %vm697_vm1, %v1993_v42, %v1995_v20  ;;  %v5520_v9 = vmul.f32 %v5009_v33, %v2695_v34  ;;  %v2979_v0 = vunpack.c.h.bf16 %v4458_v29  ;;  %v465_v30 = vunpack.c.l.bf16 %v411_v51  ;;  %v915_v51 = vld [vmem:[%s4915_s25 + $0xa4] sm:$0x1] }
  0xb8   : > { %1620 = vst.msk [vmem:[#allocation2 + $0x58] sm:$0xff] %vm337_vm0, %v1588_v59  ;;  %v299_v26 = vpack.c.bf16 %v267_v40, %v267_v40  ;;  %v300_v2 = vpack.c.bf16 %v268_v62, %v268_v62  ;;  %v512_v21 = vmul.f32 %v4922_v16, %v463_v63  ;;  %v513_v23 = vmul.f32 %v4922_v16, %v464_v4 }
  0xb9   : > { %v3136_v41 = vld [vmem:[#allocation2 + $0xe0] sm:$0xff]  ;;  %v2496_v60 = vrot.slane %v5503_v36, 2  ;;  %v2980_v15 = vunpack.c.l.bf16 %v4460_v45  ;;  %v3027_v37 = vmul.f32 %v5017_v61, %v2978_v31  ;;  %v514_v49 = vmul.f32 %v4922_v16, %v465_v30 }
  0xba   : > { %v3376_v13 = vadd.f32 %v5479_v24, %v3136_v41  ;;  %v2498_v27 = vrot.slane %v5505_v44, 2  ;;  %v331_v53 = vunpack.c.l.bf16 %v299_v26  ;;  %v560_v32 = vpack.c.bf16 %v512_v21, %v512_v21 }
  0xbb   : > { %v3137_v18 = vld [vmem:[#allocation2 + $0xe8] sm:$0xff]  ;;  %v2759_v55 = vpack.c.bf16 %v5508_v50, %v5508_v50  ;;  %v3028_v38 = vmul.f32 %v5017_v61, %v2979_v0  ;;  %v332_v7 = vunpack.c.l.bf16 %v300_v2  ;;  %v3480_v42 = vunpack.c.l.bf16 %v4506_v47  ;;  %v914_v50 = vld [vmem:[%s4915_s25 + $0xa0] sm:$0xf] }
  0xbc   : > { %v3377_v10 = vadd.f32 %v3310_v1, %v3137_v18  ;;  %3408 = vst.msk [vmem:[#allocation2 + $0xe0] sm:$0xff] %vm337_vm0, %v3376_v13  ;;  %v561_v22 = vpack.c.bf16 %v513_v23, %v513_v23  ;;  %v562_v24 = vpack.c.bf16 %v514_v49, %v514_v49  ;;  %v640_v29 = vunpack.c.l.bf16 %v560_v32 }
  0xbd   : > { %v2760_v39 = vpack.c.bf16 %v5520_v9, %v5520_v9  ;;  %v3029_v14 = vmul.f32 %v5017_v61, %v2980_v15  ;;  %v3075_v20 = vpack.c.bf16 %v3027_v37, %v3027_v37  ;;  %v3481_v34 = vunpack.c.l.bf16 %v4507_v56  ;;  %364 = vst.msk [vmem:[#allocation2 + $0xd0] sm:$0xff] %vm337_vm0, %v331_v53 }
  0xbe   : > { %3409 = vst.msk [vmem:[#allocation2 + $0xe8] sm:$0xff] %vm337_vm0, %v3377_v10  ;;  %v1849_v1 = vld [vmem:[#allocation2 + $0x50] sm:$0xff]  ;;  %v3482_v5 = vunpack.c.l.bf16 %v4508_v46  ;;  %v641_v36 = vunpack.c.l.bf16 %v561_v22  ;;  %v642_v44 = vunpack.c.l.bf16 %v562_v24  ;;  %v2497_v31 = vsel %vm1200_vm2, %v2495_v58, %v2496_v60 }
  0xbf   : > { %v1850_v19 = vld [vmem:[#allocation2 + $0x58] sm:$0xff]  ;;  %v2089_v43 = vadd.f32 %v1994_v57, %v1849_v1  ;;  %v3076_v45 = vpack.c.bf16 %v3028_v38, %v3028_v38  ;;  %365 = vst.msk [vmem:[#allocation2 + $0xd8] sm:$0xff] %vm337_vm0, %v332_v7  ;;  %v763_v40 = vrot.slane %v640_v29, 1  ;;  %v3529_v62 = vmul.f32 %v5056_v48, %v3480_v42 }
  0xc0   : > { %v2090_v59 = vadd.f32 %v1996_v6, %v1850_v19  ;;  %v764_v63 = vrot.slane %v641_v36, 1  ;;  %v766_v57 = vrot.slane %v642_v44, 1  ;;  %v966_v4 = vunpack.c.l.bf16 %v913_v8  ;;  %v4402_v36 = vld [vmem:[%s4915_s25 + $0xa8] sm:$0xe] }
  0xc1   : > { %2121 = vst.msk [vmem:[#allocation2 + $0x50] sm:$0xff] %vm337_vm0, %v2089_v43  ;;  %v2499_v0 = vsel %vm1200_vm2, %v2496_v60, %v2498_v27  ;;  %v3530_v30 = vmul.f32 %v5056_v48, %v3481_v34  ;;  %v967_v6 = vunpack.c.l.bf16 %v914_v50  ;;  %v968_v26 = vunpack.c.l.bf16 %v915_v51 }
  0xc2   : > { %2122 = vst.msk [vmem:[#allocation2 + $0x58] sm:$0xff] %vm337_vm0, %v2090_v59  ;;  %v3077_v58 = vpack.c.bf16 %v3029_v14, %v3029_v14  ;;  %v3155_v2 = vunpack.c.l.bf16 %v3075_v20  ;;  %v3531_v21 = vmul.f32 %v5056_v48, %v3482_v5  ;;  %v1015_v23 = vmul.f32 %v4924_v17, %v966_v4 }
  0xc3   : > { %v3638_v41 = vld [vmem:[#allocation2 + $0xe0] sm:$0xff]  ;;  %v5553_v15 = vunpack.c.l.bf16 %v3076_v45  ;;  %v765_v37 = vsel %vm697_vm1, %v763_v40, %v764_v63  ;;  %v1016_v49 = vmul.f32 %v4924_v17, %v967_v6  ;;  %v1017_v18 = vmul.f32 %v4924_v17, %v968_v26  ;;  %v4403_v45 = vld [vmem:[%s4915_s25 + $0xac] sm:$0xf] }
  0xc4   : > { %v3878_v13 = vadd.f32 %v5495_v28, %v3638_v41  ;;  %v3577_v27 = vpack.c.bf16 %v3529_v62, %v3529_v62  ;;  %v767_v53 = vsel %vm697_vm1, %v764_v63, %v766_v57  ;;  %v1063_v32 = vpack.c.bf16 %v1015_v23, %v1015_v23  ;;  %v595_v7 = vld [vmem:[#allocation2 + $0xd0] sm:$0xff] }
  0xc5   : > { %v3639_v60 = vld [vmem:[#allocation2 + $0xe8] sm:$0xff]  ;;  %v5561_v38 = vunpack.c.l.bf16 %v2759_v55  ;;  %v3578_v47 = vpack.c.bf16 %v3530_v30, %v3530_v30  ;;  %v1064_v56 = vpack.c.bf16 %v1016_v49, %v1016_v49  ;;  %v3579_v46 = vpack.c.bf16 %v3531_v21, %v3531_v21  ;;  %v4356_v28 = vld [vmem:[%s4915_s25 + $0xb0] sm:$0x1] }
  0xc6   : > { %v3879_v10 = vadd.f32 %v5500_v25, %v3639_v60  ;;  %3910 = vst.msk [vmem:[#allocation2 + $0xe0] sm:$0xff] %vm337_vm0, %v3878_v13  ;;  %v596_v42 = vld [vmem:[#allocation2 + $0xd8] sm:$0xff]  ;;  %v836_v22 = vadd.f32 %v765_v37, %v595_v7  ;;  %v1065_v24 = vpack.c.bf16 %v1017_v18, %v1017_v18  ;;  %v1143_v29 = vunpack.c.l.bf16 %v1063_v32  ;;  %v4404_v57 = vld [vmem:[%s4915_s25 + $0xb0] sm:$0x1] }
  0xc7   : > { %v5566_v14 = vunpack.c.l.bf16 %v3077_v58  ;;  %v3261_v25 = vrot.slane %v3155_v2, 1  ;;  %v837_v55 = vadd.f32 %v767_v53, %v596_v42  ;;  %v1144_v20 = vunpack.c.l.bf16 %v1064_v56  ;;  %v4791_v37 = vld [vmem:[%s4915_s25 + $0x30] sm:$0xff]  }
  0xc8   : > { %3911 = vst.msk [vmem:[#allocation2 + $0xe8] sm:$0xff] %vm337_vm0, %v3879_v10  ;;  %v2352_v1 = vld [vmem:[#allocation2 + $0x50] sm:$0xff]  ;;  %v3262_v19 = vrot.slane %v5553_v15, 1  ;;  %v5569_v43 = vunpack.c.l.bf16 %v3577_v27  ;;  %v1145_v5 = vunpack.c.l.bf16 %v1065_v24  ;;  %v1266_v50 = vrot.slane %v1143_v29, 2 }
  0xc9   : > { %v2353_v34 = vld [vmem:[#allocation2 + $0x58] sm:$0xff]  ;;  %v2592_v8 = vadd.f32 %v2497_v31, %v2352_v1  ;;  %868 = vst.msk [vmem:[#allocation2 + $0xd0] sm:$0xff] %vm337_vm0, %v836_v22  ;;  %v1267_v51 = vrot.slane %v1144_v20, 2  ;;  %v1735_v59 = vunpack.c.l.bf16 %v4356_v28  ;;  %v2824_v31 = vunpack.c.l.bf16 %v2760_v39 }
  0xca   : > { %v2593_v44 = vadd.f32 %v2499_v0, %v2353_v34  ;;  %869 = vst.msk [vmem:[#allocation2 + $0xd8] sm:$0xff] %vm337_vm0, %v837_v55  ;;  %v5579_v40 = vunpack.c.l.bf16 %v3578_v47  ;;  %v5581_v62 = vunpack.c.l.bf16 %v3579_v46  ;;  %v1269_v63 = vrot.slane %v1145_v5, 2  ;;  %v384_v34 = vld [vmem:[%s4915_s25 + $0x38] sm:$0x1] }
  0xcb   : > { %2624 = vst.msk [vmem:[#allocation2 + $0x50] sm:$0xff] %vm337_vm0, %v2592_v8  ;;  %v3264_v4 = vrot.slane %v5566_v14, 1  ;;  %v1782_v0 = vmul.f32 %v5213_v54, %v4956_v11  ;;  %v1783_v30 = vmul.f32 %v5228_v52, %v4956_v11  ;;  %v2236_v6 = vunpack.c.l.bf16 %v4402_v36 }
  0xcc   : > { %2625 = vst.msk [vmem:[#allocation2 + $0x58] sm:$0xff] %vm337_vm0, %v2593_v44  ;;  %v5591_v9 = vsel %vm697_vm1, %v3261_v25, %v3262_v19  ;;  %v3763_v39 = vrot.slane %v5569_v43, 2  ;;  %v1784_v26 = vmul.f32 %v4956_v11, %v1735_v59  ;;  %v2237_v58 = vunpack.c.l.bf16 %v4403_v45 }
  0xcd   : > { %v3958_v2 = vld [vmem:[#allocation2 + $0xe0] sm:$0xff]  ;;  %v1268_v21 = vsel %vm1200_vm2, %v1266_v50, %v1267_v51  ;;  %v1475_v23 = vmul.f32 %v5213_v54, %v4952_v3  ;;  %v2238_v41 = vunpack.c.l.bf16 %v4404_v57  ;;  %v2285_v15 = vmul.f32 %v4973_v35, %v2236_v6  ;;  %v5638_v57 = vld [vmem:[%s4915_s25 + $0xb4] sm:$0xff]  }
  0xce   : > { %v3764_v18 = vrot.slane %v5579_v40, 2  ;;  %v3766_v60 = vrot.slane %v5581_v62, 2  ;;  %v1270_v13 = vsel %vm1200_vm2, %v1267_v51, %v1269_v63  ;;  %v2286_v27 = vmul.f32 %v4973_v35, %v2237_v58  ;;  %v4482_v6 = vld [vmem:[%s4915_s25 + $0xb4] sm:$0xff]  }
  0xcf   : > { %v3959_v49 = vld [vmem:[#allocation2 + $0xe8] sm:$0xff]  ;;  %v1476_v10 = vmul.f32 %v5228_v52, %v4952_v3  ;;  %v1830_v47 = vpack.c.bf16 %v1782_v0, %v1782_v0  ;;  %v1831_v54 = vpack.c.bf16 %v1783_v30, %v1783_v30  ;;  %v1832_v46 = vpack.c.bf16 %v1784_v26, %v1784_v26 }
  0xd0   : > { %v3976_v53 = vpack.c.bf16 %v3959_v49, %v3958_v2  ;;  %v1098_v32 = vld [vmem:[#allocation2 + $0xd0] sm:$0xff]  ;;  %v2287_v42 = vmul.f32 %v4973_v35, %v2238_v41  ;;  %v5607_v22 = vunpack.c.l.bf16 %v4791_v37  ;;  %v2333_v1 = vpack.c.bf16 %v2285_v15, %v2285_v15 }
  0xd1   : > { %v1099_v7 = vld [vmem:[#allocation2 + $0xd8] sm:$0xff]  ;;  %v1339_v56 = vadd.f32 %v1268_v21, %v1098_v32  ;;  %v5610_v14 = vunpack.c.h.bf16 %v4791_v37  ;;  %v1507_v55 = vpack.c.bf16 %v1475_v23, %v1475_v23  ;;  %v2334_v20 = vpack.c.bf16 %v2286_v27, %v2286_v27 }
  0xd2   : > { %v4085_v24 = vsel %vm337_vm0, %v3976_v53, 0  ;;  %v2791_v29 = vld [vmem:[#allocation2 + $0x50] sm:$0xff]  ;;  %v1340_v28 = vadd.f32 %v1270_v13, %v1099_v7  ;;  %v3265_v43 = vsel %vm697_vm1, %v3262_v19, %v3264_v4  ;;  %v1508_v5 = vpack.c.bf16 %v1476_v10, %v1476_v10 }
  0xd3   : > { %4140 = vmatpush.bf16.xpose.msra.mxu1 %v4085_v24  ;;  %4845 = vmatpush.bf16.xpose.msra.mxu3 %v4085_v24  ;;  %v2792_v52 = vld [vmem:[#allocation2 + $0x58] sm:$0xff]  ;;  %v2855_v25 = vadd.f32 %v5561_v38, %v2791_v29  ;;  %1371 = vst.msk [vmem:[#allocation2 + $0xd0] sm:$0xff] %vm337_vm0, %v1339_v56  ;;  %v5617_v36 = vunpack.c.l.bf16 %v1830_v47  ;;  %v5620_v44 = vunpack.c.l.bf16 %v1831_v54  ;;  %v5622_v38 = vunpack.c.l.bf16 %v1832_v46 }
  0xd4   : > { %v2856_v8 = vadd.f32 %v2824_v31, %v2792_v52  ;;  %1372 = vst.msk [vmem:[#allocation2 + $0xd8] sm:$0xff] %vm337_vm0, %v1340_v28  ;;  %v2335_v50 = vpack.c.bf16 %v2287_v42, %v2287_v42  ;;  %v249_v51 = vmul.f32 %v5607_v22, %v4917_v12  ;;  %v5628_v19 = vsel %vm1200_vm2, %v3763_v39, %v3764_v18  ;;  %v4484_v54 = vld [vmem:[%s4915_s25 + $0xbc] sm:$0x1]  ;;  %v886_v42 = vld [vmem:[%s4915_s25 + $0x30] sm:$0xe] }
  0xd5   : > { %2887 = vst.msk [vmem:[#allocation2 + $0x50] sm:$0xff] %vm337_vm0, %v2855_v25  ;;  %v2413_v59 = vunpack.c.l.bf16 %v2333_v1  ;;  %v250_v45 = vmul.f32 %v5610_v14, %v4917_v12  ;;  %v438_v31 = vunpack.c.l.bf16 %v384_v34  ;;  %v5633_v40 = vsel %vm1200_vm2, %v3764_v18, %v3766_v60  ;;  %v887_v25 = vld [vmem:[%s4915_s25 + $0x34] sm:$0xf] }
  0xd6   : > { %2888 = vst.msk [vmem:[#allocation2 + $0x58] sm:$0xff] %vm337_vm0, %v2856_v8  ;;  %v1571_v62 = vunpack.c.l.bf16 %v1507_v55  ;;  %v5635_v63 = vunpack.c.l.bf16 %v2334_v20  ;;  %v281_v4 = vpack.c.bf16 %v249_v51, %v249_v51  ;;  %v1572_v0 = vunpack.c.l.bf16 %v1508_v5  ;;  %v888_v5 = vld [vmem:[%s4915_s25 + $0x38] sm:$0x1] }
  0xd7   : > { %v2032_v30 = vrot.slane %v5617_v36, 1  ;;  %v485_v39 = vmul.f32 %v5607_v22, %v4922_v16  ;;  %v486_v26 = vmul.f32 %v5610_v14, %v4922_v16  ;;  %v2033_v58 = vrot.slane %v5620_v44, 1 }
  0xd8   : > { %v2035_v2 = vrot.slane %v5622_v38, 1  ;;  %v2415_v21 = vunpack.c.l.bf16 %v2335_v50  ;;  %v282_v23 = vpack.c.bf16 %v250_v45, %v250_v45  ;;  %v2535_v15 = vrot.slane %v2413_v59, 2 }
  0xd9   : > { %v2710_v37 = vunpack.c.l.bf16 %v5638_v57  ;;  %v313_v49 = vunpack.c.l.bf16 %v281_v4  ;;  %v487_v18 = vmul.f32 %v4922_v16, %v438_v31  ;;  %v2536_v27 = vrot.slane %v5635_v63, 2  ;;  %v4531_v4 = vld [vmem:[%s4915_s25 + $0xb8] sm:$0xf] }
  0xda   : > { %v1539_v41 = vld [vmem:[#allocation2 + $0xd0] sm:$0xff]  ;;  %v2711_v53 = vunpack.c.h.bf16 %v5638_v57  ;;  %v3002_v32 = vunpack.c.l.bf16 %v4482_v6  ;;  %v3003_v7 = vunpack.c.h.bf16 %v4482_v6  ;;  %v533_v56 = vpack.c.bf16 %v485_v39, %v485_v39 }
  0xdb   : > { %v1540_v60 = vld [vmem:[#allocation2 + $0xd8] sm:$0xff]  ;;  %v1603_v13 = vadd.f32 %v1571_v62, %v1539_v41  ;;  %346 = vst.msk [vmem:[#allocation2 + $0x40] sm:$0xff] %vm337_vm0, %v313_v49  ;;  %v534_v46 = vpack.c.bf16 %v486_v26, %v486_v26  ;;  %v2538_v28 = vrot.slane %v2415_v21, 2  ;;  %v314_v1 = vunpack.c.l.bf16 %v282_v23  ;;  %v4530_v57 = vld [vmem:[%s4915_s25 + $0xb4] sm:$0xe] }
  0xdc   : > { %v3118_v10 = vld [vmem:[#allocation2 + $0x50] sm:$0xff]  ;;  %v1604_v47 = vadd.f32 %v1572_v0, %v1540_v60  ;;  %v535_v52 = vpack.c.bf16 %v487_v18, %v487_v18  ;;  %v5660_v20 = vmul.f32 %v5009_v33, %v2710_v37  ;;  %v613_v34 = vunpack.c.l.bf16 %v533_v56 }
  0xdd   : > { %v3119_v24 = vld [vmem:[#allocation2 + $0x58] sm:$0xff]  ;;  %v3358_v29 = vadd.f32 %v5591_v9, %v3118_v10  ;;  %1635 = vst.msk [vmem:[#allocation2 + $0xd0] sm:$0xff] %vm337_vm0, %v1603_v13  ;;  %v614_v8 = vunpack.c.l.bf16 %v534_v46  ;;  %v3004_v9 = vunpack.c.l.bf16 %v4484_v54  ;;  %v3051_v36 = vmul.f32 %v5017_v61, %v3002_v32 }
  0xde   : > { %v3359_v55 = vadd.f32 %v3265_v43, %v3119_v24  ;;  %1636 = vst.msk [vmem:[#allocation2 + $0xd8] sm:$0xff] %vm337_vm0, %v1604_v47  ;;  %v615_v44 = vunpack.c.l.bf16 %v535_v52  ;;  %v939_v38 = vunpack.c.l.bf16 %v886_v42  ;;  %v3052_v43 = vmul.f32 %v5017_v61, %v3003_v7  ;;  %v4532_v54 = vld [vmem:[%s4915_s25 + $0xbc] sm:$0x1] }
  0xdf   : > { %3390 = vst.msk [vmem:[#allocation2 + $0x50] sm:$0xff] %vm337_vm0, %v3358_v29  ;;  %v718_v50 = vrot.slane %v613_v34, 1  ;;  %v719_v51 = vrot.slane %v614_v8, 1  ;;  %v940_v59 = vunpack.c.l.bf16 %v887_v25  ;;  %v2034_v45 = vsel %vm697_vm1, %v2032_v30, %v2033_v58  ;;  %v4291_v52 = vld [vmem:[%s4915_s25 + $0x3c] sm:$0xff]  }
  0xe0   : > { %3391 = vst.msk [vmem:[#allocation2 + $0x58] sm:$0xff] %vm337_vm0, %v3359_v55  ;;  %v2036_v31 = vsel %vm697_vm1, %v2033_v58, %v2035_v2  ;;  %v5670_v62 = vsel %vm1200_vm2, %v2535_v15, %v2536_v27  ;;  %v941_v63 = vunpack.c.l.bf16 %v888_v5  ;;  %v721_v6 = vrot.slane %v615_v44, 1  ;;  %v4327_v5 = vld [vmem:[%s4915_s25 + $0x3c] sm:$0xff]  }
  0xe1   : > { %347 = vst.msk [vmem:[#allocation2 + $0x48] sm:$0xff] %vm337_vm0, %v314_v1  ;;  %v720_v0 = vsel %vm697_vm1, %v718_v50, %v719_v51  ;;  %v988_v39 = vmul.f32 %v4924_v17, %v939_v38  ;;  %v989_v26 = vmul.f32 %v4924_v17, %v940_v59  ;;  %v5679_v21 = vsel %vm1200_vm2, %v2536_v27, %v2538_v28 }
  0xe2   : > { %v2744_v30 = vmul.f32 %v5009_v33, %v2711_v53  ;;  %v2775_v58 = vpack.c.bf16 %v5660_v20, %v5660_v20  ;;  %v3053_v2 = vmul.f32 %v5017_v61, %v3004_v9  ;;  %v577_v23 = vld [vmem:[#allocation2 + $0x40] sm:$0xff]  ;;  %v3099_v15 = vpack.c.bf16 %v3051_v36, %v3051_v36 }
  0xe3   : > { %v3100_v37 = vpack.c.bf16 %v3052_v43, %v3052_v43  ;;  %v818_v49 = vadd.f32 %v720_v0, %v577_v23  ;;  %v990_v18 = vmul.f32 %v4924_v17, %v941_v63  ;;  %v3504_v32 = vunpack.c.l.bf16 %v4530_v57  ;;  %v4375_v23 = vld [vmem:[%s4915_s25 + $0x3c] sm:$0xe] }
  0xe4   : > { %v1865_v41 = vld [vmem:[#allocation2 + $0xd0] sm:$0xff]  ;;  %v3505_v27 = vunpack.c.l.bf16 %v4531_v4  ;;  %v1036_v10 = vpack.c.bf16 %v988_v39, %v988_v39  ;;  %v722_v7 = vsel %vm697_vm1, %v719_v51, %v721_v6  ;;  %v1037_v56 = vpack.c.bf16 %v989_v26, %v989_v26  ;;  %v4329_v51 = vld [vmem:[%s4915_s25 + $0x44] sm:$0x1] }
  0xe5   : > { %v1866_v60 = vld [vmem:[#allocation2 + $0xd8] sm:$0xff]  ;;  %v2105_v13 = vadd.f32 %v2034_v45, %v1865_v41  ;;  %850 = vst.msk [vmem:[#allocation2 + $0x40] sm:$0xff] %vm337_vm0, %v818_v49  ;;  %v1038_v46 = vpack.c.bf16 %v990_v18, %v990_v18  ;;  %v2776_v29 = vpack.c.bf16 %v2744_v30, %v2744_v30  ;;  %v3101_v28 = vpack.c.bf16 %v3053_v2, %v3053_v2 }
  0xe6   : > { %v3620_v53 = vld [vmem:[#allocation2 + $0x50] sm:$0xff]  ;;  %v2106_v47 = vadd.f32 %v2036_v31, %v1866_v60  ;;  %v1116_v1 = vunpack.c.l.bf16 %v1036_v10  ;;  %v5694_v55 = vunpack.c.l.bf16 %v3099_v15  ;;  %v1117_v34 = vunpack.c.l.bf16 %v1037_v56  ;;  %v4376_v60 = vld [vmem:[%s4915_s25 + $0x40] sm:$0xf] }
  0xe7   : > { %v3621_v42 = vld [vmem:[#allocation2 + $0x58] sm:$0xff]  ;;  %v3860_v24 = vadd.f32 %v5628_v19, %v3620_v53  ;;  %2137 = vst.msk [vmem:[#allocation2 + $0xd0] sm:$0xff] %vm337_vm0, %v2105_v13  ;;  %v1118_v8 = vunpack.c.l.bf16 %v1038_v46  ;;  %v5698_v19 = vunpack.c.l.bf16 %v3100_v37  ;;  %v3506_v9 = vunpack.c.l.bf16 %v4532_v54 }
  0xe8   : > { %v3861_v25 = vadd.f32 %v5633_v40, %v3621_v42  ;;  %2138 = vst.msk [vmem:[#allocation2 + $0xd8] sm:$0xff] %vm337_vm0, %v2106_v47  ;;  %v578_v20 = vld [vmem:[#allocation2 + $0x48] sm:$0xff]  ;;  %v1221_v44 = vrot.slane %v1116_v1, 2  ;;  %v3553_v40 = vmul.f32 %v5056_v48, %v3504_v32  ;;  %v3554_v38 = vmul.f32 %v5056_v48, %v3505_v27  ;;  %v4377_v47 = vld [vmem:[%s4915_s25 + $0x44] sm:$0x1] }
  0xe9   : > { %3892 = vst.msk [vmem:[#allocation2 + $0x50] sm:$0xff] %vm337_vm0, %v3860_v24  ;;  %v819_v36 = vadd.f32 %v722_v7, %v578_v20  ;;  %v1222_v43 = vrot.slane %v1117_v34, 2  ;;  %v1424_v50 = vunpack.c.l.bf16 %v4291_v52  ;;  %v5704_v59 = vunpack.c.l.bf16 %v2775_v58 }
  0xea   : > { %3893 = vst.msk [vmem:[#allocation2 + $0x58] sm:$0xff] %vm337_vm0, %v3861_v25  ;;  %v5706_v45 = vunpack.c.l.bf16 %v2776_v29  ;;  %v3181_v31 = vunpack.c.l.bf16 %v3101_v28  ;;  %v1706_v63 = vunpack.c.l.bf16 %v4327_v5  ;;  %v3301_v57 = vrot.slane %v5694_v55, 1 }
  0xeb   : > { %851 = vst.msk [vmem:[#allocation2 + $0x48] sm:$0xff] %vm337_vm0, %v819_v36  ;;  %v1223_v4 = vsel %vm1200_vm2, %v1221_v44, %v1222_v43  ;;  %v1224_v0 = vrot.slane %v1118_v8, 2  ;;  %v1457_v6 = vmul.f32 %v4952_v3, %v1424_v50  ;;  %v3555_v39 = vmul.f32 %v5056_v48, %v3506_v9 }
  0xec   : > { %v1080_v26 = vld [vmem:[#allocation2 + $0x40] sm:$0xff]  ;;  %v1425_v30 = vunpack.c.h.bf16 %v4291_v52  ;;  %v1707_v58 = vunpack.c.h.bf16 %v4327_v5  ;;  %v1708_v2 = vunpack.c.l.bf16 %v4329_v51  ;;  %v3302_v15 = vrot.slane %v5698_v19, 1 }
  0xed   : > { %v3601_v37 = vpack.c.bf16 %v3553_v40, %v3553_v40  ;;  %v3602_v49 = vpack.c.bf16 %v3554_v38, %v3554_v38  ;;  %v1321_v18 = vadd.f32 %v1223_v4, %v1080_v26  ;;  %v1755_v27 = vmul.f32 %v4956_v11, %v1706_v63  ;;  %v4795_v38 = vld [vmem:[%s4915_s25 + $0x90] sm:$0xff]  }
  0xee   : > { %v2368_v41 = vld [vmem:[#allocation2 + $0xd0] sm:$0xff]  ;;  %v1756_v10 = vmul.f32 %v4956_v11, %v1707_v58  ;;  %v1757_v53 = vmul.f32 %v4956_v11, %v1708_v2  ;;  %v1225_v56 = vsel %vm1200_vm2, %v1222_v43, %v1224_v0  ;;  %v1489_v46 = vpack.c.bf16 %v1457_v6, %v1457_v6 }
  0xef   : > { %v2369_v13 = vld [vmem:[#allocation2 + $0xd8] sm:$0xff]  ;;  %v2608_v32 = vadd.f32 %v5670_v62, %v2368_v41  ;;  %1353 = vst.msk [vmem:[#allocation2 + $0x40] sm:$0xff] %vm337_vm0, %v1321_v18  ;;  %v2209_v42 = vunpack.c.l.bf16 %v4375_v23  ;;  %v3304_v62 = vrot.slane %v3181_v31, 1  ;;  %v3603_v29 = vpack.c.bf16 %v3555_v39, %v3555_v39  ;;  %v5737_v31 = vld [vmem:[%s4915_s25 + $0x48] sm:$0xff]  }
  0xf0   : > { %v3940_v54 = vld [vmem:[#allocation2 + $0x50] sm:$0xff]  ;;  %v2609_v7 = vadd.f32 %v5679_v21, %v2369_v13  ;;  %v1458_v28 = vmul.f32 %v4952_v3, %v1425_v30  ;;  %v2210_v1 = vunpack.c.l.bf16 %v4376_v60  ;;  %v3681_v25 = vunpack.c.l.bf16 %v3601_v37 }
  0xf1   : > { %v3941_v24 = vld [vmem:[#allocation2 + $0x58] sm:$0xff]  ;;  %2640 = vst.msk [vmem:[#allocation2 + $0xd0] sm:$0xff] %vm337_vm0, %v2608_v32  ;;  %v3682_v21 = vunpack.c.l.bf16 %v3602_v49  ;;  %v2211_v20 = vunpack.c.l.bf16 %v4377_v47  ;;  %v1803_v8 = vpack.c.bf16 %v1755_v27, %v1755_v27  ;;  %v1804_v5 = vpack.c.bf16 %v1756_v10, %v1756_v10 }
  0xf2   : > { %v3967_v52 = vpack.c.bf16 %v3941_v24, %v3940_v54  ;;  %2641 = vst.msk [vmem:[#allocation2 + $0xd8] sm:$0xff] %vm337_vm0, %v2609_v7  ;;  %v1081_v55 = vld [vmem:[#allocation2 + $0x48] sm:$0xff]  ;;  %v1805_v19 = vpack.c.bf16 %v1757_v53, %v1757_v53  ;;  %v1553_v36 = vunpack.c.l.bf16 %v1489_v46  ;;  %v2258_v44 = vmul.f32 %v4973_v35, %v2209_v42  ;;  %v408_v46 = vld [vmem:[%s4915_s25 + $0x98] sm:$0x1] }
  0xf3   : > { %v1322_v34 = vadd.f32 %v1225_v56, %v1081_v55  ;;  %v2259_v40 = vmul.f32 %v4973_v35, %v2210_v1  ;;  %v5732_v43 = vsel %vm697_vm1, %v3301_v57, %v3302_v15  ;;  %v1490_v50 = vpack.c.bf16 %v1458_v28, %v1458_v28 }
  0xf4   : > { %v4058_v9 = vsel %vm337_vm0, %v3967_v52, 0  ;;  %v2260_v51 = vmul.f32 %v4973_v35, %v2211_v20  ;;  %v5740_v63 = vsel %vm697_vm1, %v3302_v15, %v3304_v62  ;;  %v3683_v4 = vunpack.c.l.bf16 %v3603_v29 }
  0xf5   : > { %4092 = vmatpush.bf16.xpose.msra.mxu0 %v4058_v9  ;;  %4838 = vmatpush.bf16.xpose.msra.mxu2 %v4058_v9  ;;  %1354 = vst.msk [vmem:[#allocation2 + $0x48] sm:$0xff] %vm337_vm0, %v1322_v34  ;;  %v3803_v0 = vrot.slane %v3681_v25, 2  ;;  %v3804_v6 = vrot.slane %v3682_v21, 2  ;;  %v1883_v26 = vunpack.c.l.bf16 %v1803_v8  ;;  %v1884_v30 = vunpack.c.l.bf16 %v1804_v5  ;;  %v4457_v5 = vld [vmem:[%s4915_s25 + $0x50] sm:$0x1] }
  0xf6   : > { %v1521_v39 = vld [vmem:[#allocation2 + $0x40] sm:$0xff]  ;;  %v1885_v58 = vunpack.c.l.bf16 %v1805_v19  ;;  %v5742_v2 = vunpack.c.l.bf16 %v4795_v38  ;;  %v2306_v41 = vpack.c.bf16 %v2258_v44, %v2258_v44  ;;  %v2307_v37 = vpack.c.bf16 %v2259_v40, %v2259_v40 }
  0xf7   : > { %v1585_v23 = vadd.f32 %v1553_v36, %v1521_v39  ;;  %v4736_v49 = vunpack.c.l.bf16 %v5737_v31  ;;  %v1554_v60 = vunpack.c.l.bf16 %v1490_v50  ;;  %v2308_v13 = vpack.c.bf16 %v2260_v51, %v2260_v51  ;;  %v910_v51 = vld [vmem:[%s4915_s25 + $0x90] sm:$0xe] }
  0xf8   : > { %v2807_v57 = vld [vmem:[#allocation2 + $0xd0] sm:$0xff]  ;;  %v5746_v32 = vunpack.c.h.bf16 %v4795_v38  ;;  %v5750_v10 = vsel %vm1200_vm2, %v3803_v0, %v3804_v6  ;;  %v3806_v53 = vrot.slane %v3683_v4, 2  ;;  %v4737_v47 = vunpack.c.h.bf16 %v5737_v31 }
  0xf9   : > { %v2808_v18 = vld [vmem:[#allocation2 + $0xd8] sm:$0xff]  ;;  %v2871_v15 = vadd.f32 %v5704_v59, %v2807_v57  ;;  %1617 = vst.msk [vmem:[#allocation2 + $0x40] sm:$0xff] %vm337_vm0, %v1585_v23  ;;  %v1987_v54 = vrot.slane %v1883_v26, 1  ;;  %v1988_v7 = vrot.slane %v1884_v30, 1  ;;  %v265_v59 = vmul.f32 %v5742_v2, %v4917_v12  ;;  %v911_v30 = vld [vmem:[%s4915_s25 + $0x94] sm:$0xf] }
  0xfa   : > { %v2872_v27 = vadd.f32 %v5706_v45, %v2808_v18  ;;  %v266_v56 = vmul.f32 %v5746_v32, %v4917_v12  ;;  %v1990_v42 = vrot.slane %v1885_v58, 1  ;;  %v2386_v24 = vunpack.c.l.bf16 %v2306_v41 }
  0xfb   : > { %2903 = vst.msk [vmem:[#allocation2 + $0xd0] sm:$0xff] %vm337_vm0, %v2871_v15  ;;  %v2387_v62 = vunpack.c.l.bf16 %v2307_v37  ;;  %v2725_v29 = vmul.f32 %v4736_v49, %v5009_v33  ;;  %v2388_v1 = vunpack.c.l.bf16 %v2308_v13  ;;  %v297_v52 = vpack.c.bf16 %v265_v59, %v265_v59 }
  0xfc   : > { %2904 = vst.msk [vmem:[#allocation2 + $0xd8] sm:$0xff] %vm337_vm0, %v2872_v27  ;;  %v1522_v45 = vld [vmem:[#allocation2 + $0x48] sm:$0xff]  ;;  %v298_v25 = vpack.c.bf16 %v266_v56, %v266_v56  ;;  %v5765_v21 = vsel %vm1200_vm2, %v3804_v6, %v3806_v53  ;;  %v2726_v55 = vmul.f32 %v4737_v47, %v5009_v33  ;;  %v462_v20 = vunpack.c.l.bf16 %v408_v46  ;;  %v912_v27 = vld [vmem:[%s4915_s25 + $0x98] sm:$0x1] }
  0xfd   : > { %v1586_v28 = vadd.f32 %v1554_v60, %v1522_v45  ;;  %v509_v34 = vmul.f32 %v5742_v2, %v4922_v16  ;;  %v1989_v8 = vsel %vm697_vm1, %v1987_v54, %v1988_v7  ;;  %v329_v19 = vunpack.c.l.bf16 %v297_v52  ;;  %v4503_v56 = vld [vmem:[%s4915_s25 + $0x48] sm:$0xe] }
  0xfe   : > { %v330_v9 = vunpack.c.l.bf16 %v298_v25  ;;  %v510_v36 = vmul.f32 %v5746_v32, %v4922_v16  ;;  %v2490_v44 = vrot.slane %v2386_v24, 2  ;;  %v2491_v40 = vrot.slane %v2387_v62, 2  ;;  %v4505_v25 = vld [vmem:[%s4915_s25 + $0x50] sm:$0x1] }
  0xff   : > { %1618 = vst.msk [vmem:[#allocation2 + $0x48] sm:$0xff] %vm337_vm0, %v1586_v28  ;;  %v511_v38 = vmul.f32 %v4922_v16, %v462_v20  ;;  %v557_v50 = vpack.c.bf16 %v509_v34, %v509_v34  ;;  %v1991_v0 = vsel %vm697_vm1, %v1988_v7, %v1990_v42  ;;  %v2493_v6 = vrot.slane %v2388_v1, 2  ;;  %v4504_v42 = vld [vmem:[%s4915_s25 + $0x4c] sm:$0xf] }
 0x100   : > { %v1847_v4 = vld [vmem:[#allocation2 + $0x40] sm:$0xff]  ;;  %v2757_v39 = vpack.c.bf16 %v2725_v29, %v2725_v29  ;;  %362 = vst.msk [vmem:[#allocation2 + $0xc0] sm:$0xff] %vm337_vm0, %v329_v19  ;;  %v558_v26 = vpack.c.bf16 %v510_v36, %v510_v36  ;;  %v2758_v23 = vpack.c.bf16 %v2726_v55, %v2726_v55  ;;  %v2977_v41 = vunpack.c.l.bf16 %v4457_v5 }
 0x101   : > { %v2087_v57 = vadd.f32 %v1989_v8, %v1847_v4  ;;  %363 = vst.msk [vmem:[#allocation2 + $0xc8] sm:$0xff] %vm337_vm0, %v330_v9  ;;  %v559_v37 = vpack.c.bf16 %v511_v38, %v511_v38  ;;  %v637_v60 = vunpack.c.l.bf16 %v557_v50  ;;  %v963_v53 = vunpack.c.l.bf16 %v910_v51 }
 0x102   : > { %v3134_v58 = vld [vmem:[#allocation2 + $0xd0] sm:$0xff]  ;;  %v638_v13 = vunpack.c.l.bf16 %v558_v26  ;;  %v2492_v7 = vsel %vm1200_vm2, %v2490_v44, %v2491_v40  ;;  %v3024_v59 = vmul.f32 %v4736_v49, %v5017_v61  ;;  %v964_v46 = vunpack.c.l.bf16 %v911_v30 }
 0x103   : > { %v3135_v18 = vld [vmem:[#allocation2 + $0xd8] sm:$0xff]  ;;  %v3374_v15 = vadd.f32 %v5732_v43, %v3134_v58  ;;  %2119 = vst.msk [vmem:[#allocation2 + $0x40] sm:$0xff] %vm337_vm0, %v2087_v57  ;;  %v5794_v43 = vsel %vm1200_vm2, %v2491_v40, %v2493_v6  ;;  %v5796_v45 = vunpack.c.l.bf16 %v2757_v39  ;;  %v758_v24 = vrot.slane %v637_v60, 1 }
 0x104   : > { %v3375_v54 = vadd.f32 %v5740_v63, %v3135_v18  ;;  %v639_v63 = vunpack.c.l.bf16 %v559_v37  ;;  %v3025_v49 = vmul.f32 %v4737_v47, %v5017_v61  ;;  %v5804_v29 = vmul.f32 %v5017_v61, %v2977_v41  ;;  %v4307_v6 = vld [vmem:[%s4915_s25 + $0x9c] sm:$0xff]  }
 0x105   : > { %3406 = vst.msk [vmem:[#allocation2 + $0xd0] sm:$0xff] %vm337_vm0, %v3374_v15  ;;  %v759_v28 = vrot.slane %v638_v13, 1  ;;  %v965_v1 = vunpack.c.l.bf16 %v912_v27  ;;  %v3477_v55 = vunpack.c.l.bf16 %v4503_v56  ;;  %v1012_v34 = vmul.f32 %v4924_v17, %v963_v53  ;;  %v4353_v56 = vld [vmem:[%s4915_s25 + $0xa4] sm:$0x1] }
 0x106   : > { %3407 = vst.msk [vmem:[#allocation2 + $0xd8] sm:$0xff] %vm337_vm0, %v3375_v54  ;;  %v1848_v62 = vld [vmem:[#allocation2 + $0x48] sm:$0xff]  ;;  %v761_v20 = vrot.slane %v639_v63, 1  ;;  %v3072_v8 = vpack.c.bf16 %v3024_v59, %v3024_v59  ;;  %v3478_v5 = vunpack.c.l.bf16 %v4504_v42  ;;  %v1013_v31 = vmul.f32 %v4924_v17, %v964_v46  ;;  %v4351_v59 = vld [vmem:[%s4915_s25 + $0x9c] sm:$0xff]  }
 0x107   : > { %v2088_v52 = vadd.f32 %v1991_v0, %v1848_v62  ;;  %v593_v19 = vld [vmem:[#allocation2 + $0xc0] sm:$0xff]  ;;  %v760_v9 = vsel %vm697_vm1, %v758_v24, %v759_v28  ;;  %v5811_v47 = vunpack.c.l.bf16 %v2758_v23  ;;  %v1014_v38 = vmul.f32 %v4924_v17, %v965_v1 }
 0x108   : > { %v594_v36 = vld [vmem:[#allocation2 + $0xc8] sm:$0xff]  ;;  %v762_v44 = vsel %vm697_vm1, %v759_v28, %v761_v20  ;;  %v834_v40 = vadd.f32 %v760_v9, %v593_v19  ;;  %v3073_v50 = vpack.c.bf16 %v3025_v49, %v3025_v49  ;;  %v3479_v51 = vunpack.c.l.bf16 %v4505_v25  ;;  %v4399_v25 = vld [vmem:[%s4915_s25 + $0x9c] sm:$0xe] }
 0x109   : > { %2120 = vst.msk [vmem:[#allocation2 + $0x48] sm:$0xff] %vm337_vm0, %v2088_v52  ;;  %v835_v4 = vadd.f32 %v762_v44, %v594_v36  ;;  %v1060_v0 = vpack.c.bf16 %v1012_v34, %v1012_v34  ;;  %v3074_v26 = vpack.c.bf16 %v5804_v29, %v5804_v29  ;;  %v3526_v30 = vmul.f32 %v5056_v48, %v3477_v55  ;;  %v4400_v55 = vld [vmem:[%s4915_s25 + $0xa0] sm:$0xf] }
 0x10a   : > { %v2350_v39 = vld [vmem:[#allocation2 + $0x40] sm:$0xff]  ;;  %866 = vst.msk [vmem:[#allocation2 + $0xc0] sm:$0xff] %vm337_vm0, %v834_v40  ;;  %v1061_v58 = vpack.c.bf16 %v1013_v31, %v1013_v31  ;;  %v1062_v57 = vpack.c.bf16 %v1014_v38, %v1014_v38  ;;  %v5820_v37 = vunpack.c.l.bf16 %v3072_v8  ;;  %v3527_v18 = vmul.f32 %v5056_v48, %v3478_v5 }
 0x10b   : > { %v2590_v41 = vadd.f32 %v2492_v7, %v2350_v39  ;;  %867 = vst.msk [vmem:[#allocation2 + $0xc8] sm:$0xff] %vm337_vm0, %v835_v4  ;;  %v1140_v15 = vunpack.c.l.bf16 %v1060_v0  ;;  %v1440_v54 = vunpack.c.l.bf16 %v4307_v6  ;;  %v3528_v7 = vmul.f32 %v5056_v48, %v3479_v51  ;;  %v4401_v40 = vld [vmem:[%s4915_s25 + $0xa4] sm:$0x1] }
 0x10c   : > { %v3636_v23 = vld [vmem:[#allocation2 + $0xd0] sm:$0xff]  ;;  %v1141_v27 = vunpack.c.l.bf16 %v1061_v58  ;;  %v1142_v53 = vunpack.c.l.bf16 %v1062_v57  ;;  %v1441_v63 = vunpack.c.h.bf16 %v4307_v6  ;;  %v5831_v24 = vunpack.c.l.bf16 %v3073_v50 }
 0x10d   : > { %v3637_v60 = vld [vmem:[#allocation2 + $0xd8] sm:$0xff]  ;;  %v3876_v13 = vadd.f32 %v5750_v10, %v3636_v23  ;;  %2622 = vst.msk [vmem:[#allocation2 + $0x40] sm:$0xff] %vm337_vm0, %v2590_v41  ;;  %v1261_v42 = vrot.slane %v1140_v15, 2  ;;  %v3574_v10 = vpack.c.bf16 %v3526_v30, %v3526_v30  ;;  %v1730_v28 = vunpack.c.l.bf16 %v4351_v59 }
 0x10e   : > { %v3877_v46 = vadd.f32 %v5765_v21, %v3637_v60  ;;  %v1262_v62 = vrot.slane %v1141_v27, 2  ;;  %v1264_v49 = vrot.slane %v1142_v53, 2  ;;  %v3575_v21 = vpack.c.bf16 %v3527_v18, %v3527_v18 }
 0x10f   : > { %3908 = vst.msk [vmem:[#allocation2 + $0xd0] sm:$0xff] %vm337_vm0, %v3876_v13  ;;  %v1731_v1 = vunpack.c.h.bf16 %v4351_v59  ;;  %v1732_v52 = vunpack.c.l.bf16 %v4353_v56  ;;  %v1473_v5 = vmul.f32 %v4952_v3, %v1440_v54  ;;  %v3576_v19 = vpack.c.bf16 %v3528_v7, %v3528_v7 }
 0x110   : > { %3909 = vst.msk [vmem:[#allocation2 + $0xd8] sm:$0xff] %vm337_vm0, %v3877_v46  ;;  %v2351_v29 = vld [vmem:[#allocation2 + $0x48] sm:$0xff]  ;;  %v1263_v34 = vsel %vm1200_vm2, %v1261_v42, %v1262_v62  ;;  %v1265_v8 = vsel %vm1200_vm2, %v1262_v62, %v1264_v49  ;;  %v1474_v31 = vmul.f32 %v4952_v3, %v1441_v63  ;;  %v1779_v36 = vmul.f32 %v4956_v11, %v1730_v28 }
 0x111   : > { %v2591_v20 = vadd.f32 %v5794_v43, %v2351_v29  ;;  %v1096_v9 = vld [vmem:[#allocation2 + $0xc0] sm:$0xff]  ;;  %v1780_v44 = vmul.f32 %v4956_v11, %v1731_v1  ;;  %v1781_v43 = vmul.f32 %v4956_v11, %v1732_v52  ;;  %v2233_v51 = vunpack.c.l.bf16 %v4399_v25  ;;  %v5855_v62 = vld [vmem:[%s4915_s25 + $0xa8] sm:$0xff]  }
 0x112   : > { %v1097_v38 = vld [vmem:[#allocation2 + $0xc8] sm:$0xff]  ;;  %v1337_v50 = vadd.f32 %v1263_v34, %v1096_v9  ;;  %v2234_v4 = vunpack.c.l.bf16 %v4400_v55  ;;  %v3154_v0 = vunpack.c.l.bf16 %v3074_v26  ;;  %v3654_v6 = vunpack.c.l.bf16 %v3574_v10 }
 0x113   : > { %2623 = vst.msk [vmem:[#allocation2 + $0x48] sm:$0xff] %vm337_vm0, %v2591_v20  ;;  %v3655_v39 = vunpack.c.l.bf16 %v3575_v21  ;;  %v1338_v30 = vadd.f32 %v1265_v8, %v1097_v38  ;;  %v1505_v57 = vpack.c.bf16 %v1473_v5, %v1473_v5  ;;  %v2235_v23 = vunpack.c.l.bf16 %v4401_v40  ;;  %v177_v38 = vld [vmem:[%s4915_s25 + $0x24] sm:$0xff]  }
 0x114   : > { %v2789_v58 = vld [vmem:[#allocation2 + $0x40] sm:$0xff]  ;;  %1369 = vst.msk [vmem:[#allocation2 + $0xc0] sm:$0xff] %vm337_vm0, %v1337_v50  ;;  %v2282_v41 = vmul.f32 %v4973_v35, %v2233_v51  ;;  %v2283_v18 = vmul.f32 %v4973_v35, %v2234_v4  ;;  %v3656_v13 = vunpack.c.l.bf16 %v3576_v19  ;;  %v1506_v26 = vpack.c.bf16 %v1474_v31, %v1474_v31 }
 0x115   : > { %v2853_v60 = vadd.f32 %v5796_v45, %v2789_v58  ;;  %1370 = vst.msk [vmem:[#allocation2 + $0xc8] sm:$0xff] %vm337_vm0, %v1338_v30  ;;  %v1827_v27 = vpack.c.bf16 %v1779_v36, %v1779_v36  ;;  %v3256_v54 = vrot.slane %v5820_v37, 1  ;;  %v3257_v59 = vrot.slane %v5831_v24, 1 }
 0x116   : > { %v3956_v15 = vld [vmem:[#allocation2 + $0xd0] sm:$0xff]  ;;  %v1828_v56 = vpack.c.bf16 %v1780_v44, %v1780_v44  ;;  %v1829_v46 = vpack.c.bf16 %v1781_v43, %v1781_v43  ;;  %v3259_v42 = vrot.slane %v3154_v0, 1  ;;  %v3758_v63 = vrot.slane %v3654_v6, 2 }
 0x117   : > { %v3957_v53 = vld [vmem:[#allocation2 + $0xd8] sm:$0xff]  ;;  %2885 = vst.msk [vmem:[#allocation2 + $0x40] sm:$0xff] %vm337_vm0, %v2853_v60  ;;  %v3759_v10 = vrot.slane %v3655_v39, 2  ;;  %v1569_v45 = vunpack.c.l.bf16 %v1505_v57  ;;  %v2284_v49 = vmul.f32 %v4973_v35, %v2235_v23  ;;  %v2330_v29 = vpack.c.bf16 %v2282_v41, %v2282_v41  ;;  %v381_v57 = vld [vmem:[%s4915_s25 + $0x2c] sm:$0x1] }
 0x118   : > { %v3975_v7 = vpack.c.bf16 %v3957_v53, %v3956_v15  ;;  %v2331_v21 = vpack.c.bf16 %v2283_v18, %v2283_v18  ;;  %v3761_v1 = vrot.slane %v3656_v13, 2  ;;  %v1570_v24 = vunpack.c.l.bf16 %v1506_v26 }
 0x119   : > { %v1907_v52 = vunpack.c.l.bf16 %v1827_v27  ;;  %v1908_v55 = vunpack.c.l.bf16 %v1828_v56  ;;  %v1909_v20 = vunpack.c.l.bf16 %v1829_v46  ;;  %v4752_v34 = vunpack.c.l.bf16 %v5855_v62  ;;  %v4481_v27 = vld [vmem:[%s4915_s25 + $0xb0] sm:$0x1] }
 0x11a   : > { %v4082_v28 = vsel %vm337_vm0, %v3975_v7, 0  ;;  %v2790_v37 = vld [vmem:[#allocation2 + $0x48] sm:$0xff]  ;;  %v3258_v8 = vsel %vm697_vm1, %v3256_v54, %v3257_v59  ;;  %v3260_v5 = vsel %vm697_vm1, %v3257_v59, %v3259_v42  ;;  %v2332_v36 = vpack.c.bf16 %v2284_v49, %v2284_v49 }
 0x11b   : > { %4141 = vmatpush.bf16.xpose.msra.mxu1 %v4082_v28  ;;  %4846 = vmatpush.bf16.xpose.msra.mxu3 %v4082_v28  ;;  %v2854_v25 = vadd.f32 %v5811_v47, %v2790_v37  ;;  %v1537_v19 = vld [vmem:[#allocation2 + $0xc0] sm:$0xff]  ;;  %v2410_v44 = vunpack.c.l.bf16 %v2330_v29  ;;  %v5864_v40 = vunpack.c.l.bf16 %v2331_v21  ;;  %v5869_v50 = vsel %vm1200_vm2, %v3758_v63, %v3759_v10  ;;  %v4527_v49 = vld [vmem:[%s4915_s25 + $0xa8] sm:$0xe] }
 0x11c   : > { %v1538_v9 = vld [vmem:[#allocation2 + $0xc8] sm:$0xff]  ;;  %v1601_v31 = vadd.f32 %v1569_v45, %v1537_v19  ;;  %v5872_v43 = vsel %vm1200_vm2, %v3759_v10, %v3761_v1  ;;  %v2027_v4 = vrot.slane %v1907_v52, 1  ;;  %v2028_v6 = vrot.slane %v1908_v55, 1 }
 0x11d   : > { %2886 = vst.msk [vmem:[#allocation2 + $0x48] sm:$0xff] %vm337_vm0, %v2854_v25  ;;  %v379_v47 = vld [vmem:[%s4915_s25 + $0x24] sm:$0xff]   ;;  %v1602_v51 = vadd.f32 %v1570_v24, %v1538_v9  ;;  %v2030_v39 = vrot.slane %v1909_v20, 1  ;;  %v4753_v30 = vunpack.c.h.bf16 %v5855_v62  ;;  %v5877_v58 = vmul.f32 %v4752_v34, %v5009_v33  ;;  %v4528_v52 = vld [vmem:[%s4915_s25 + $0xac] sm:$0xf] }
 0x11e   : > { %v3116_v0 = vld [vmem:[#allocation2 + $0x40] sm:$0xff]  ;;  %1633 = vst.msk [vmem:[#allocation2 + $0xc0] sm:$0xff] %vm337_vm0, %v1601_v31  ;;  %v214_v41 = vunpack.c.l.bf16 %v177_v38  ;;  %v215_v18 = vunpack.c.h.bf16 %v177_v38  ;;  %v433_v15 = vunpack.c.l.bf16 %v379_v47  ;;  %v5881_v60 = vunpack.c.l.bf16 %v2332_v36 }
 0x11f   : > { %v3356_v23 = vadd.f32 %v3258_v8, %v3116_v0  ;;  %1634 = vst.msk [vmem:[#allocation2 + $0xc8] sm:$0xff] %vm337_vm0, %v1602_v51  ;;  %v2530_v13 = vrot.slane %v2410_v44, 2  ;;  %v2531_v26 = vrot.slane %v5864_v40, 2  ;;  %v434_v53 = vunpack.c.h.bf16 %v379_v47  ;;  %v883_v31 = vld [vmem:[%s4915_s25 + $0x24] sm:$0xe] }
 0x120   : > { %v247_v54 = vmul.f32 %v4917_v12, %v214_v41  ;;  %v248_v59 = vmul.f32 %v4917_v12, %v215_v18  ;;  %v435_v56 = vunpack.c.l.bf16 %v381_v57  ;;  %v482_v46 = vmul.f32 %v4922_v16, %v433_v15  ;;  %v4529_v44 = vld [vmem:[%s4915_s25 + $0xb0] sm:$0x1]  ;;  %v885_v41 = vld [vmem:[%s4915_s25 + $0x2c] sm:$0x1] }
 0x121   : > { %3388 = vst.msk [vmem:[#allocation2 + $0x40] sm:$0xff] %vm337_vm0, %v3356_v23  ;;  %v2029_v7 = vsel %vm697_vm1, %v2027_v4, %v2028_v6  ;;  %v2031_v42 = vsel %vm697_vm1, %v2028_v6, %v2030_v39  ;;  %v5892_v63 = vmul.f32 %v4753_v30, %v5009_v33  ;;  %v483_v10 = vmul.f32 %v4922_v16, %v434_v53  ;;  %v884_v6 = vld [vmem:[%s4915_s25 + $0x28] sm:$0xf] }
 0x122   : > { %v3001_v45 = vunpack.c.l.bf16 %v4481_v27  ;;  %v279_v29 = vpack.c.bf16 %v247_v54, %v247_v54  ;;  %v280_v21 = vpack.c.bf16 %v248_v59, %v248_v59  ;;  %v484_v28 = vmul.f32 %v4922_v16, %v435_v56 }
 0x123   : > { %v2773_v1 = vpack.c.bf16 %v5877_v58, %v5877_v58  ;;  %v3048_v24 = vmul.f32 %v4752_v34, %v5017_v61  ;;  %v530_v25 = vpack.c.bf16 %v482_v46, %v482_v46  ;;  %v2532_v20 = vsel %vm1200_vm2, %v2530_v13, %v2531_v26 }
 0x124   : > { %v3117_v62 = vld [vmem:[#allocation2 + $0x48] sm:$0xff]  ;;  %v2533_v8 = vrot.slane %v5881_v60, 2  ;;  %v3049_v19 = vmul.f32 %v4753_v30, %v5017_v61  ;;  %v311_v9 = vunpack.c.l.bf16 %v279_v29  ;;  %v3501_v40 = vunpack.c.l.bf16 %v4527_v49 }
 0x125   : > { %v3357_v37 = vadd.f32 %v3260_v5, %v3117_v62  ;;  %v1863_v55 = vld [vmem:[#allocation2 + $0xc0] sm:$0xff]  ;;  %v312_v34 = vunpack.c.l.bf16 %v280_v21  ;;  %v531_v38 = vpack.c.bf16 %v483_v10, %v483_v10  ;;  %v3050_v51 = vmul.f32 %v5017_v61, %v3001_v45 }
 0x126   : > { %v1864_v5 = vld [vmem:[#allocation2 + $0xc8] sm:$0xff]  ;;  %v2103_v36 = vadd.f32 %v2029_v7, %v1863_v55  ;;  %v3502_v4 = vunpack.c.l.bf16 %v4528_v52  ;;  %344 = vst.msk [vmem:[#allocation2 + $0x30] sm:$0xff] %vm337_vm0, %v311_v9  ;;  %v532_v0 = vpack.c.bf16 %v484_v28, %v484_v28  ;;  %v3096_v30 = vpack.c.bf16 %v3048_v24, %v3048_v24 }
 0x127   : > { %3389 = vst.msk [vmem:[#allocation2 + $0x48] sm:$0xff] %vm337_vm0, %v3357_v37  ;;  %v2104_v47 = vadd.f32 %v2031_v42, %v1864_v5  ;;  %v610_v57 = vunpack.c.l.bf16 %v530_v25  ;;  %v611_v23 = vunpack.c.l.bf16 %v531_v38  ;;  %v936_v18 = vunpack.c.l.bf16 %v883_v31 }
 0x128   : > { %v3618_v39 = vld [vmem:[#allocation2 + $0x40] sm:$0xff]  ;;  %2135 = vst.msk [vmem:[#allocation2 + $0xc0] sm:$0xff] %vm337_vm0, %v2103_v36  ;;  %v3097_v60 = vpack.c.bf16 %v3049_v19, %v3049_v19  ;;  %v3503_v13 = vunpack.c.l.bf16 %v4529_v44  ;;  %v612_v27 = vunpack.c.l.bf16 %v532_v0  ;;  %v3550_v53 = vmul.f32 %v5056_v48, %v3501_v40 }
 0x129   : > { %v3858_v15 = vadd.f32 %v5869_v50, %v3618_v39  ;;  %2136 = vst.msk [vmem:[#allocation2 + $0xc8] sm:$0xff] %vm337_vm0, %v2104_v47  ;;  %v713_v54 = vrot.slane %v610_v57, 1  ;;  %v714_v59 = vrot.slane %v611_v23, 1  ;;  %v937_v56 = vunpack.c.l.bf16 %v884_v6  ;;  %v4326_v39 = vld [vmem:[%s4915_s25 + $0x38] sm:$0x1] }
 0x12a   : > { %345 = vst.msk [vmem:[#allocation2 + $0x38] sm:$0xff] %vm337_vm0, %v312_v34  ;;  %v2534_v46 = vsel %vm1200_vm2, %v2531_v26, %v2533_v8  ;;  %v3551_v7 = vmul.f32 %v5056_v48, %v3502_v4  ;;  %v716_v42 = vrot.slane %v612_v27, 1  ;;  %v938_v50 = vunpack.c.l.bf16 %v885_v41 }
 0x12b   : > { %3890 = vst.msk [vmem:[#allocation2 + $0x40] sm:$0xff] %vm337_vm0, %v3858_v15  ;;  %v3098_v10 = vpack.c.bf16 %v3050_v51, %v3050_v51  ;;  %v715_v62 = vsel %vm697_vm1, %v713_v54, %v714_v59  ;;  %v985_v45 = vmul.f32 %v4924_v17, %v936_v18  ;;  %v986_v49 = vmul.f32 %v4924_v17, %v937_v56  ;;  %v4372_v56 = vld [vmem:[%s4915_s25 + $0x30] sm:$0xe] }
 0x12c   : > { %v3176_v21 = vunpack.c.l.bf16 %v3096_v30  ;;  %v5922_v28 = vunpack.c.l.bf16 %v3097_v60  ;;  %v3552_v37 = vmul.f32 %v5056_v48, %v3503_v13  ;;  %v987_v24 = vmul.f32 %v4924_v17, %v938_v50 }
 0x12d   : > { %v3598_v52 = vpack.c.bf16 %v3550_v53, %v3550_v53  ;;  %v575_v25 = vld [vmem:[#allocation2 + $0x30] sm:$0xff]  ;;  %v1033_v55 = vpack.c.bf16 %v985_v45, %v985_v45  ;;  %v1034_v8 = vpack.c.bf16 %v986_v49, %v986_v49  ;;  %v3599_v9 = vpack.c.bf16 %v3551_v7, %v3551_v7 }
 0x12e   : > { %v3619_v29 = vld [vmem:[#allocation2 + $0x48] sm:$0xff]  ;;  %v717_v31 = vsel %vm697_vm1, %v714_v59, %v716_v42  ;;  %v816_v5 = vadd.f32 %v715_v62, %v575_v25  ;;  %v1035_v36 = vpack.c.bf16 %v987_v24, %v987_v24  ;;  %v2774_v34 = vpack.c.bf16 %v5892_v63, %v5892_v63  ;;  %v4374_v24 = vld [vmem:[%s4915_s25 + $0x38] sm:$0x1] }
 0x12f   : > { %v3859_v26 = vadd.f32 %v5872_v43, %v3619_v29  ;;  %v2366_v19 = vld [vmem:[#allocation2 + $0xc0] sm:$0xff]  ;;  %v1113_v38 = vunpack.c.l.bf16 %v1033_v55  ;;  %v1114_v43 = vunpack.c.l.bf16 %v1034_v8  ;;  %v3178_v51 = vunpack.c.l.bf16 %v3098_v10 }
 0x130   : > { %v2367_v44 = vld [vmem:[#allocation2 + $0xc8] sm:$0xff]  ;;  %v2606_v40 = vadd.f32 %v2532_v20, %v2366_v19  ;;  %v3296_v4 = vrot.slane %v3176_v21, 1  ;;  %848 = vst.msk [vmem:[#allocation2 + $0x30] sm:$0xff] %vm337_vm0, %v816_v5  ;;  %v1115_v6 = vunpack.c.l.bf16 %v1035_v36  ;;  %v3297_v30 = vrot.slane %v5922_v28, 1 }
 0x131   : > { %3891 = vst.msk [vmem:[#allocation2 + $0x48] sm:$0xff] %vm337_vm0, %v3859_v26  ;;  %v2607_v47 = vadd.f32 %v2534_v46, %v2367_v44  ;;  %v576_v0 = vld [vmem:[#allocation2 + $0x38] sm:$0xff]  ;;  %v1216_v20 = vrot.slane %v1113_v38, 2  ;;  %v1217_v23 = vrot.slane %v1114_v43, 2  ;;  %v3600_v63 = vpack.c.bf16 %v3552_v37, %v3552_v37  ;;  %v193_v10 = vld [vmem:[%s4915_s25 + $0x84] sm:$0xff]  }
 0x132   : > { %2638 = vst.msk [vmem:[#allocation2 + $0xc0] sm:$0xff] %vm337_vm0, %v2606_v40  ;;  %v817_v57 = vadd.f32 %v717_v31, %v576_v0  ;;  %v3678_v41 = vunpack.c.l.bf16 %v3598_v52  ;;  %v5936_v18 = vunpack.c.l.bf16 %v3599_v9  ;;  %v1455_v15 = vmul.f32 %v5607_v22, %v4952_v3  ;;  %v3938_v13 = vld [vmem:[#allocation2 + $0x40] sm:$0xff]  ;;  %v4373_v37 = vld [vmem:[%s4915_s25 + $0x34] sm:$0xf] }
 0x133   : > { %2639 = vst.msk [vmem:[#allocation2 + $0xc8] sm:$0xff] %vm337_vm0, %v2607_v47  ;;  %v1705_v60 = vunpack.c.l.bf16 %v4326_v39  ;;  %v2837_v27 = vunpack.c.l.bf16 %v2773_v1  ;;  %v2838_v53 = vunpack.c.l.bf16 %v2774_v34  ;;  %v1219_v54 = vrot.slane %v1115_v6, 2  ;;  %v403_v47 = vld [vmem:[%s4915_s25 + $0x84] sm:$0xff]  }
 0x134   : > { %849 = vst.msk [vmem:[#allocation2 + $0x38] sm:$0xff] %vm337_vm0, %v817_v57  ;;  %v1752_v59 = vmul.f32 %v5607_v22, %v4956_v11  ;;  %v5948_v46 = vsel %vm697_vm1, %v3296_v4, %v3297_v30  ;;  %v3299_v7 = vrot.slane %v3178_v51, 1  ;;  %v1218_v42 = vsel %vm1200_vm2, %v1216_v20, %v1217_v23 }
 0x135   : > { %v1753_v50 = vmul.f32 %v5610_v14, %v4956_v11  ;;  %v5954_v1 = vunpack.c.l.bf16 %v3600_v63  ;;  %v3798_v62 = vrot.slane %v3678_v41, 2  ;;  %v3799_v45 = vrot.slane %v5936_v18, 2 }
 0x136   : > { %v1456_v22 = vmul.f32 %v5610_v14, %v4952_v3  ;;  %v1487_v21 = vpack.c.bf16 %v1455_v15, %v1455_v15  ;;  %v1754_v28 = vmul.f32 %v4956_v11, %v1705_v60  ;;  %v2206_v26 = vunpack.c.l.bf16 %v4372_v56 }
 0x137   : > { %v1078_v29 = vld [vmem:[#allocation2 + $0x30] sm:$0xff]  ;;  %v1220_v25 = vsel %vm1200_vm2, %v1217_v23, %v1219_v54  ;;  %v1800_v8 = vpack.c.bf16 %v1752_v59, %v1752_v59  ;;  %v230_v19 = vunpack.c.l.bf16 %v193_v10  ;;  %v1801_v14 = vpack.c.bf16 %v1753_v50, %v1753_v50  ;;  %v405_v23 = vld [vmem:[%s4915_s25 + $0x8c] sm:$0x1] }
 0x138   : > { %v3939_v58 = vld [vmem:[#allocation2 + $0x48] sm:$0xff]  ;;  %v1319_v55 = vadd.f32 %v1218_v42, %v1078_v29  ;;  %v231_v36 = vunpack.c.h.bf16 %v193_v10  ;;  %v3300_v40 = vsel %vm697_vm1, %v3297_v30, %v3299_v7  ;;  %v2207_v38 = vunpack.c.l.bf16 %v4373_v37 }
 0x139   : > { %v3966_v49 = vpack.c.bf16 %v3939_v58, %v3938_v13  ;;  %v2805_v52 = vld [vmem:[#allocation2 + $0xc0] sm:$0xff]  ;;  %v2208_v43 = vunpack.c.l.bf16 %v4374_v24  ;;  %v3801_v51 = vrot.slane %v5954_v1, 2  ;;  %v1488_v0 = vpack.c.bf16 %v1456_v22, %v1456_v22 }
 0x13a   : > { %v2806_v31 = vld [vmem:[#allocation2 + $0xc8] sm:$0xff]  ;;  %v2869_v5 = vadd.f32 %v2837_v27, %v2805_v52  ;;  %1351 = vst.msk [vmem:[#allocation2 + $0x30] sm:$0xff] %vm337_vm0, %v1319_v55  ;;  %v1802_v6 = vpack.c.bf16 %v1754_v28, %v1754_v28  ;;  %v5973_v39 = vsel %vm1200_vm2, %v3798_v62, %v3799_v45  ;;  %v1551_v30 = vunpack.c.l.bf16 %v1487_v21  ;;  %v907_v28 = vld [vmem:[%s4915_s25 + $0x84] sm:$0xe] }
 0x13b   : > { %v4055_v9 = vsel %vm337_vm0, %v3966_v49, 0  ;;  %v2870_v44 = vadd.f32 %v2838_v53, %v2806_v31  ;;  %v1079_v34 = vld [vmem:[#allocation2 + $0x38] sm:$0xff]  ;;  %v2255_v57 = vmul.f32 %v4973_v35, %v2206_v26  ;;  %v263_v20 = vmul.f32 %v4917_v12, %v230_v19  ;;  %v908_v31 = vld [vmem:[%s4915_s25 + $0x88] sm:$0xf] }
 0x13c   : > { %4093 = vmatpush.bf16.xpose.msra.mxu0 %v4055_v9  ;;  %4839 = vmatpush.bf16.xpose.msra.mxu2 %v4055_v9  ;;  %2901 = vst.msk [vmem:[#allocation2 + $0xc0] sm:$0xff] %vm337_vm0, %v2869_v5  ;;  %v1320_v4 = vadd.f32 %v1220_v25, %v1079_v34  ;;  %v1880_v63 = vunpack.c.l.bf16 %v1800_v8  ;;  %v5979_v41 = vunpack.c.l.bf16 %v1801_v14  ;;  %v264_v15 = vmul.f32 %v4917_v12, %v231_v36  ;;  %v4417_v36 = vld [vmem:[%s4915_s25 + $0x3c] sm:$0xff]   ;;  %v909_v34 = vld [vmem:[%s4915_s25 + $0x8c] sm:$0x1] }
 0x13d   : > { %2902 = vst.msk [vmem:[#allocation2 + $0xc8] sm:$0xff] %vm337_vm0, %v2870_v44  ;;  %v457_v60 = vunpack.c.l.bf16 %v403_v47  ;;  %v2256_v13 = vmul.f32 %v4973_v35, %v2207_v38  ;;  %v2257_v27 = vmul.f32 %v4973_v35, %v2208_v43  ;;  %v295_v53 = vpack.c.bf16 %v263_v20, %v263_v20 }
 0x13e   : > { %1352 = vst.msk [vmem:[#allocation2 + $0x38] sm:$0xff] %vm337_vm0, %v1320_v4  ;;  %v458_v54 = vunpack.c.h.bf16 %v403_v47  ;;  %v1552_v59 = vunpack.c.l.bf16 %v1488_v0  ;;  %v5984_v56 = vunpack.c.l.bf16 %v1802_v6  ;;  %v296_v7 = vpack.c.bf16 %v264_v15, %v264_v15  ;;  %v4452_v47 = vld [vmem:[%s4915_s25 + $0x3c] sm:$0xff]  }
 0x13f   : > { %v459_v42 = vunpack.c.l.bf16 %v405_v23  ;;  %v2303_v50 = vpack.c.bf16 %v2255_v57, %v2255_v57  ;;  %v327_v10 = vunpack.c.l.bf16 %v295_v53  ;;  %v506_v58 = vmul.f32 %v4922_v16, %v457_v60  ;;  %v4454_v53 = vld [vmem:[%s4915_s25 + $0x44] sm:$0x1] }
 0x140   : > { %v507_v1 = vmul.f32 %v4922_v16, %v458_v54  ;;  %v1982_v22 = vrot.slane %v1880_v63, 1  ;;  %v1983_v49 = vrot.slane %v5979_v41, 1  ;;  %v328_v29 = vunpack.c.l.bf16 %v296_v7 }
 0x141   : > { %v1519_v62 = vld [vmem:[#allocation2 + $0x30] sm:$0xff]  ;;  %v508_v21 = vmul.f32 %v4922_v16, %v459_v42  ;;  %v5994_v24 = vsel %vm1200_vm2, %v3799_v45, %v3801_v51  ;;  %v2304_v52 = vpack.c.bf16 %v2256_v13, %v2256_v13  ;;  %v2305_v25 = vpack.c.bf16 %v2257_v27, %v2257_v27  ;;  %360 = vst.msk [vmem:[#allocation2 + $0xb0] sm:$0xff] %vm337_vm0, %v327_v10 }
 0x142   : > { %v1583_v26 = vadd.f32 %v1551_v30, %v1519_v62  ;;  %v1985_v19 = vrot.slane %v5984_v56, 1  ;;  %361 = vst.msk [vmem:[#allocation2 + $0xb8] sm:$0xff] %vm337_vm0, %v328_v29  ;;  %v554_v9 = vpack.c.bf16 %v506_v58, %v506_v58  ;;  %v555_v18 = vpack.c.bf16 %v507_v1, %v507_v1 }
 0x143   : > { %v3132_v37 = vld [vmem:[#allocation2 + $0xc0] sm:$0xff]  ;;  %v2383_v14 = vunpack.c.l.bf16 %v2303_v50  ;;  %v556_v44 = vpack.c.bf16 %v508_v21, %v508_v21  ;;  %v960_v38 = vunpack.c.l.bf16 %v907_v28  ;;  %v1984_v43 = vsel %vm697_vm1, %v1982_v22, %v1983_v49 }
 0x144   : > { %v3133_v55 = vld [vmem:[#allocation2 + $0xc8] sm:$0xff]  ;;  %v3372_v8 = vadd.f32 %v5948_v46, %v3132_v37  ;;  %1615 = vst.msk [vmem:[#allocation2 + $0x30] sm:$0xff] %vm337_vm0, %v1583_v26  ;;  %v634_v51 = vunpack.c.l.bf16 %v554_v9  ;;  %v635_v4 = vunpack.c.l.bf16 %v555_v18  ;;  %v2385_v0 = vunpack.c.l.bf16 %v2305_v25 }
 0x145   : > { %v3373_v45 = vadd.f32 %v3300_v40, %v3133_v55  ;;  %v1520_v5 = vld [vmem:[#allocation2 + $0x38] sm:$0xff]  ;;  %v2384_v40 = vunpack.c.l.bf16 %v2304_v52  ;;  %v636_v6 = vunpack.c.l.bf16 %v556_v44  ;;  %v961_v30 = vunpack.c.l.bf16 %v908_v31 }
 0x146   : > { %3404 = vst.msk [vmem:[#allocation2 + $0xc0] sm:$0xff] %vm337_vm0, %v3372_v8  ;;  %v1584_v46 = vadd.f32 %v1552_v59, %v1520_v5  ;;  %v2690_v57 = vunpack.c.l.bf16 %v4417_v36  ;;  %v753_v20 = vrot.slane %v634_v51, 1  ;;  %v754_v23 = vrot.slane %v635_v4, 1  ;;  %v4500_v5 = vld [vmem:[%s4915_s25 + $0x3c] sm:$0xe] }
 0x147   : > { %3405 = vst.msk [vmem:[#allocation2 + $0xc8] sm:$0xff] %vm337_vm0, %v3373_v45  ;;  %v962_v63 = vunpack.c.l.bf16 %v909_v34  ;;  %v2485_v15 = vrot.slane %v2383_v14, 2  ;;  %v2972_v60 = vunpack.c.l.bf16 %v4452_v47  ;;  %v756_v13 = vrot.slane %v636_v6, 1  ;;  %v4502_v4 = vld [vmem:[%s4915_s25 + $0x44] sm:$0x1] }
 0x148   : > { %1616 = vst.msk [vmem:[#allocation2 + $0x38] sm:$0xff] %vm337_vm0, %v1584_v46  ;;  %v1009_v27 = vmul.f32 %v4924_v17, %v960_v38  ;;  %v2973_v54 = vunpack.c.h.bf16 %v4452_v47  ;;  %v591_v59 = vld [vmem:[#allocation2 + $0xb0] sm:$0xff]  ;;  %v755_v56 = vsel %vm697_vm1, %v753_v20, %v754_v23  ;;  %v1010_v7 = vmul.f32 %v4924_v17, %v961_v30  ;;  %v4350_v47 = vld [vmem:[%s4915_s25 + $0x98] sm:$0x1] }
 0x149   : > { %v1011_v42 = vmul.f32 %v4924_v17, %v962_v63  ;;  %v2486_v50 = vrot.slane %v2384_v40, 2  ;;  %v2691_v10 = vunpack.c.h.bf16 %v4417_v36  ;;  %v592_v58 = vld [vmem:[#allocation2 + $0xb8] sm:$0xff]  ;;  %v757_v1 = vsel %vm697_vm1, %v754_v23, %v756_v13  ;;  %v4501_v36 = vld [vmem:[%s4915_s25 + $0x40] sm:$0xf] }
 0x14a   : > { %v832_v62 = vadd.f32 %v755_v56, %v591_v59  ;;  %v2488_v29 = vrot.slane %v2385_v0, 2  ;;  %v833_v21 = vadd.f32 %v757_v1, %v592_v58  ;;  %v1057_v28 = vpack.c.bf16 %v1009_v27, %v1009_v27  ;;  %v4396_v58 = vld [vmem:[%s4915_s25 + $0x90] sm:$0xe]  ;;  %v4397_v1 = vld [vmem:[%s4915_s25 + $0x94] sm:$0xf] }
 0x14b   : > { %v1845_v22 = vld [vmem:[#allocation2 + $0x30] sm:$0xff]  ;;  %v1058_v37 = vpack.c.bf16 %v1010_v7, %v1010_v7  ;;  %v1986_v52 = vsel %vm697_vm1, %v1983_v49, %v1985_v19  ;;  %v2974_v55 = vunpack.c.l.bf16 %v4454_v53  ;;  %v3021_v8 = vmul.f32 %v5017_v61, %v2972_v60 }
 0x14c   : > { %v2085_v25 = vadd.f32 %v1984_v43, %v1845_v22  ;;  %864 = vst.msk [vmem:[#allocation2 + $0xb0] sm:$0xff] %vm337_vm0, %v832_v62  ;;  %v6024_v31 = vmul.f32 %v5009_v33, %v2690_v57  ;;  %v3022_v45 = vmul.f32 %v5017_v61, %v2973_v54  ;;  %v1059_v41 = vpack.c.bf16 %v1011_v42, %v1011_v42 }
 0x14d   : > { %v3634_v26 = vld [vmem:[#allocation2 + $0xc0] sm:$0xff]  ;;  %865 = vst.msk [vmem:[#allocation2 + $0xb8] sm:$0xff] %vm337_vm0, %v833_v21  ;;  %v2487_v14 = vsel %vm1200_vm2, %v2485_v15, %v2486_v50  ;;  %v1137_v44 = vunpack.c.l.bf16 %v1057_v28  ;;  %v2489_v38 = vsel %vm1200_vm2, %v2486_v50, %v2488_v29  ;;  %v1138_v46 = vunpack.c.l.bf16 %v1058_v37  ;;  %v4398_v37 = vld [vmem:[%s4915_s25 + $0x98] sm:$0x1] }
 0x14e   : > { %v3635_v9 = vld [vmem:[#allocation2 + $0xc8] sm:$0xff]  ;;  %v3874_v18 = vadd.f32 %v5973_v39, %v3634_v26  ;;  %2117 = vst.msk [vmem:[#allocation2 + $0x30] sm:$0xff] %vm337_vm0, %v2085_v25  ;;  %v6033_v39 = vmul.f32 %v5009_v33, %v2691_v10  ;;  %v1139_v43 = vunpack.c.l.bf16 %v1059_v41  ;;  %v3069_v51 = vpack.c.bf16 %v3021_v8, %v3021_v8 }
 0x14f   : > { %v3875_v49 = vadd.f32 %v5994_v24, %v3635_v9  ;;  %v1846_v19 = vld [vmem:[#allocation2 + $0x38] sm:$0xff]  ;;  %v6041_v24 = vmul.f32 %v5017_v61, %v2974_v55  ;;  %v3474_v40 = vunpack.c.l.bf16 %v4500_v5  ;;  %v1256_v0 = vrot.slane %v1137_v44, 2 }
 0x150   : > { %3906 = vst.msk [vmem:[#allocation2 + $0xc0] sm:$0xff] %vm337_vm0, %v3874_v18  ;;  %v2086_v34 = vadd.f32 %v1986_v52, %v1846_v19  ;;  %v3070_v6 = vpack.c.bf16 %v3022_v45, %v3022_v45  ;;  %v3475_v30 = vunpack.c.l.bf16 %v4501_v36  ;;  %v1257_v57 = vrot.slane %v1138_v46, 2 }
 0x151   : > { %3907 = vst.msk [vmem:[#allocation2 + $0xc8] sm:$0xff] %vm337_vm0, %v3875_v49  ;;  %v1259_v20 = vrot.slane %v1139_v43, 2  ;;  %v2755_v23 = vpack.c.bf16 %v6024_v31, %v6024_v31  ;;  %v2756_v63 = vpack.c.bf16 %v6033_v39, %v6033_v39  ;;  %v1471_v15 = vmul.f32 %v5742_v2, %v4952_v3 }
 0x152   : > { %2118 = vst.msk [vmem:[#allocation2 + $0x38] sm:$0xff] %vm337_vm0, %v2086_v34  ;;  %v1729_v60 = vunpack.c.l.bf16 %v4350_v47  ;;  %v3476_v13 = vunpack.c.l.bf16 %v4502_v4  ;;  %v1258_v53 = vsel %vm1200_vm2, %v1256_v0, %v1257_v57  ;;  %v1472_v59 = vmul.f32 %v5746_v32, %v4952_v3 }
 0x153   : > { %v1094_v27 = vld [vmem:[#allocation2 + $0xb0] sm:$0xff]  ;;  %v1260_v54 = vsel %vm1200_vm2, %v1257_v57, %v1259_v20  ;;  %v3071_v56 = vpack.c.bf16 %v6041_v24, %v6041_v24  ;;  %v6057_v7 = vunpack.c.l.bf16 %v3069_v51  ;;  %v3523_v42 = vmul.f32 %v5056_v48, %v3474_v40 }
 0x154   : > { %v1095_v50 = vld [vmem:[#allocation2 + $0xb8] sm:$0xff]  ;;  %v1335_v10 = vadd.f32 %v1258_v53, %v1094_v27  ;;  %v6062_v22 = vunpack.c.l.bf16 %v3070_v6  ;;  %v3524_v29 = vmul.f32 %v5056_v48, %v3475_v30  ;;  %v1776_v28 = vmul.f32 %v5742_v2, %v4956_v11 }
 0x155   : > { %v2348_v62 = vld [vmem:[#allocation2 + $0x30] sm:$0xff]  ;;  %v1336_v21 = vadd.f32 %v1260_v54, %v1095_v50  ;;  %v1503_v25 = vpack.c.bf16 %v1471_v15, %v1471_v15  ;;  %v1777_v55 = vmul.f32 %v5746_v32, %v4956_v11  ;;  %v1778_v8 = vmul.f32 %v4956_v11, %v1729_v60 }
 0x156   : > { %v2588_v52 = vadd.f32 %v2487_v14, %v2348_v62  ;;  %1367 = vst.msk [vmem:[#allocation2 + $0xb0] sm:$0xff] %vm337_vm0, %v1335_v10  ;;  %v3525_v18 = vmul.f32 %v5056_v48, %v3476_v13  ;;  %v1504_v31 = vpack.c.bf16 %v1472_v59, %v1472_v59  ;;  %v2230_v45 = vunpack.c.l.bf16 %v4396_v58  ;;  %v4433_v13 = vld [vmem:[%s4915_s25 + $0x9c] sm:$0xff]  }
 0x157   : > { %v3954_v26 = vld [vmem:[#allocation2 + $0xc0] sm:$0xff]  ;;  %1368 = vst.msk [vmem:[#allocation2 + $0xb8] sm:$0xff] %vm337_vm0, %v1336_v21  ;;  %v2231_v5 = vunpack.c.l.bf16 %v4397_v1  ;;  %v3571_v49 = vpack.c.bf16 %v3523_v42, %v3523_v42  ;;  %v1824_v19 = vpack.c.bf16 %v1776_v28, %v1776_v28  ;;  %v2232_v14 = vunpack.c.l.bf16 %v4398_v37 }
 0x158   : > { %v3955_v9 = vld [vmem:[#allocation2 + $0xc8] sm:$0xff]  ;;  %2620 = vst.msk [vmem:[#allocation2 + $0x30] sm:$0xff] %vm337_vm0, %v2588_v52  ;;  %v1825_v36 = vpack.c.bf16 %v1777_v55, %v1777_v55  ;;  %v2279_v32 = vmul.f32 %v4973_v35, %v2230_v45  ;;  %v3572_v46 = vpack.c.bf16 %v3524_v29, %v3524_v29  ;;  %v1567_v43 = vunpack.c.l.bf16 %v1503_v25 }
 0x159   : > { %v3974_v2 = vpack.c.bf16 %v3955_v9, %v3954_v26  ;;  %v2349_v41 = vld [vmem:[#allocation2 + $0x38] sm:$0xff]  ;;  %v2280_v44 = vmul.f32 %v4973_v35, %v2231_v5  ;;  %v1826_v47 = vpack.c.bf16 %v1778_v8, %v1778_v8  ;;  %v3573_v24 = vpack.c.bf16 %v3525_v18, %v3525_v18 }
 0x15a   : > { %v2589_v39 = vadd.f32 %v2489_v38, %v2349_v41  ;;  %v1568_v51 = vunpack.c.l.bf16 %v1504_v31  ;;  %v2281_v4 = vmul.f32 %v4973_v35, %v2232_v14  ;;  %v2819_v38 = vunpack.c.l.bf16 %v2755_v23  ;;  %v4476_v8 = vld [vmem:[%s4915_s25 + $0x9c] sm:$0xff]  }
 0x15b   : > { %v4079_v34 = vsel %vm337_vm0, %v3974_v2, 0  ;;  %v3151_v40 = vunpack.c.l.bf16 %v3071_v56  ;;  %v3251_v0 = vrot.slane %v6057_v7, 1  ;;  %v3252_v6 = vrot.slane %v6062_v22, 1  ;;  %v4790_v7 = vld [vmem:[%s4915_s25 + $0x18] sm:$0xff]   ;;  %v378_v14 = vld [vmem:[%s4915_s25 + $0x20] sm:$0x1] }
 0x15c   : > { %4142 = vmatpush.bf16.xpose.msra.mxu1 %v4079_v34  ;;  %4847 = vmatpush.bf16.xpose.msra.mxu3 %v4079_v34  ;;  %2621 = vst.msk [vmem:[#allocation2 + $0x38] sm:$0xff] %vm337_vm0, %v2589_v39  ;;  %v1904_v57 = vunpack.c.l.bf16 %v1824_v19  ;;  %v1905_v20 = vunpack.c.l.bf16 %v1825_v36  ;;  %v2327_v15 = vpack.c.bf16 %v2279_v32, %v2279_v32  ;;  %v2328_v60 = vpack.c.bf16 %v2280_v44, %v2280_v44  ;;  %v4478_v44 = vld [vmem:[%s4915_s25 + $0xa4] sm:$0x1] }
 0x15d   : > { %v1535_v30 = vld [vmem:[#allocation2 + $0xb0] sm:$0xff]  ;;  %v2820_v27 = vunpack.c.l.bf16 %v2756_v63  ;;  %v3651_v53 = vunpack.c.l.bf16 %v3571_v49  ;;  %v1906_v42 = vunpack.c.l.bf16 %v1826_v47  ;;  %v3652_v10 = vunpack.c.l.bf16 %v3572_v46 }
 0x15e   : > { %v1536_v54 = vld [vmem:[#allocation2 + $0xb8] sm:$0xff]  ;;  %v1599_v59 = vadd.f32 %v1567_v43, %v1535_v30  ;;  %v3653_v23 = vunpack.c.l.bf16 %v3573_v24  ;;  %v2329_v58 = vpack.c.bf16 %v2281_v4, %v2281_v4  ;;  %v3253_v62 = vsel %vm697_vm1, %v3251_v0, %v3252_v6 }
 0x15f   : > { %v2787_v50 = vld [vmem:[#allocation2 + $0x30] sm:$0xff]  ;;  %v1600_v56 = vadd.f32 %v1568_v51, %v1536_v54  ;;  %v3254_v22 = vrot.slane %v3151_v40, 1  ;;  %v2706_v29 = vunpack.c.l.bf16 %v4433_v13  ;;  %v2022_v63 = vrot.slane %v1904_v57, 1  ;;  %v4524_v54 = vld [vmem:[%s4915_s25 + $0x9c] sm:$0xe] }
 0x160   : > { %v2851_v1 = vadd.f32 %v2819_v38, %v2787_v50  ;;  %1631 = vst.msk [vmem:[#allocation2 + $0xb0] sm:$0xff] %vm337_vm0, %v1599_v59  ;;  %v2023_v21 = vrot.slane %v1905_v20, 1  ;;  %v2407_v28 = vunpack.c.l.bf16 %v2327_v15  ;;  %v2408_v37 = vunpack.c.l.bf16 %v2328_v60  ;;  %v880_v60 = vld [vmem:[%s4915_s25 + $0x18] sm:$0xe] }
 0x161   : > { %1632 = vst.msk [vmem:[#allocation2 + $0xb8] sm:$0xff] %vm337_vm0, %v1600_v56  ;;  %v3753_v52 = vrot.slane %v3651_v53, 2  ;;  %v2025_v25 = vrot.slane %v1906_v42, 1  ;;  %v2707_v55 = vunpack.c.h.bf16 %v4433_v13  ;;  %v6089_v9 = vunpack.c.l.bf16 %v4790_v7 }
 0x162   : > { %2883 = vst.msk [vmem:[#allocation2 + $0x30] sm:$0xff] %vm337_vm0, %v2851_v1  ;;  %v3754_v31 = vrot.slane %v3652_v10, 2  ;;  %v3756_v45 = vrot.slane %v3653_v23, 2  ;;  %v2409_v5 = vunpack.c.l.bf16 %v2329_v58  ;;  %v3255_v2 = vsel %vm697_vm1, %v3252_v6, %v3254_v22  ;;  %v4525_v58 = vld [vmem:[%s4915_s25 + $0xa0] sm:$0xf] }
 0x163   : > { %v2788_v26 = vld [vmem:[#allocation2 + $0x38] sm:$0xff]  ;;  %v6093_v41 = vmul.f32 %v5009_v33, %v2706_v29  ;;  %v6095_v49 = vunpack.c.h.bf16 %v4790_v7  ;;  %v245_v19 = vmul.f32 %v6089_v9, %v4917_v12  ;;  %v2024_v39 = vsel %vm697_vm1, %v2022_v63, %v2023_v21 }
 0x164   : > { %v2852_v18 = vadd.f32 %v2820_v27, %v2788_v26  ;;  %v2525_v36 = vrot.slane %v2407_v28, 2  ;;  %v2526_v32 = vrot.slane %v2408_v37, 2  ;;  %v2996_v34 = vunpack.c.l.bf16 %v4476_v8  ;;  %v881_v7 = vld [vmem:[%s4915_s25 + $0x1c] sm:$0xf]  ;;  %v4526_v28 = vld [vmem:[%s4915_s25 + $0xa4] sm:$0x1] }
 0x165   : > { %v2026_v46 = vsel %vm697_vm1, %v2023_v21, %v2025_v25  ;;  %v6105_v43 = vmul.f32 %v5009_v33, %v2707_v55  ;;  %v2997_v47 = vunpack.c.h.bf16 %v4476_v8  ;;  %v246_v24 = vmul.f32 %v6095_v49, %v4917_v12  ;;  %v882_v25 = vld [vmem:[%s4915_s25 + $0x20] sm:$0x1] }
 0x166   : > { %2884 = vst.msk [vmem:[#allocation2 + $0x38] sm:$0xff] %vm337_vm0, %v2852_v18  ;;  %v6110_v51 = vsel %vm1200_vm2, %v3753_v52, %v3754_v31  ;;  %v6113_v4 = vsel %vm1200_vm2, %v3754_v31, %v3756_v45  ;;  %v2528_v40 = vrot.slane %v2409_v5, 2  ;;  %v277_v0 = vpack.c.bf16 %v245_v19, %v245_v19 }
 0x167   : > { %v1861_v38 = vld [vmem:[#allocation2 + $0xb0] sm:$0xff]  ;;  %v2771_v57 = vpack.c.bf16 %v6093_v41, %v6093_v41  ;;  %v2998_v20 = vunpack.c.l.bf16 %v4478_v44  ;;  %v432_v15 = vunpack.c.l.bf16 %v378_v14  ;;  %v2527_v53 = vsel %vm1200_vm2, %v2525_v36, %v2526_v32 }
 0x168   : > { %v1862_v6 = vld [vmem:[#allocation2 + $0xb8] sm:$0xff]  ;;  %v2101_v30 = vadd.f32 %v2024_v39, %v1861_v38  ;;  %v278_v59 = vpack.c.bf16 %v246_v24, %v246_v24  ;;  %v479_v42 = vmul.f32 %v6089_v9, %v4922_v16  ;;  %v2772_v10 = vpack.c.bf16 %v6105_v43, %v6105_v43 }
 0x169   : > { %v3114_v13 = vld [vmem:[#allocation2 + $0x30] sm:$0xff]  ;;  %v2102_v27 = vadd.f32 %v2026_v46, %v1862_v6  ;;  %v6126_v23 = vmul.f32 %v5017_v61, %v2996_v34  ;;  %v6129_v56 = vmul.f32 %v5017_v61, %v2997_v47  ;;  %v2529_v1 = vsel %vm1200_vm2, %v2526_v32, %v2528_v40 }
 0x16a   : > { %v3354_v50 = vadd.f32 %v3253_v62, %v3114_v13  ;;  %2133 = vst.msk [vmem:[#allocation2 + $0xb0] sm:$0xff] %vm337_vm0, %v2101_v30  ;;  %v309_v22 = vunpack.c.l.bf16 %v277_v0  ;;  %v310_v62 = vunpack.c.l.bf16 %v278_v59  ;;  %v933_v29 = vunpack.c.l.bf16 %v880_v60 }
 0x16b   : > { %2134 = vst.msk [vmem:[#allocation2 + $0xb8] sm:$0xff] %vm337_vm0, %v2102_v27  ;;  %v6137_v21 = vmul.f32 %v5017_v61, %v2998_v20  ;;  %v3498_v37 = vunpack.c.l.bf16 %v4524_v54  ;;  %v480_v26 = vmul.f32 %v6095_v49, %v4922_v16  ;;  %v481_v52 = vmul.f32 %v4922_v16, %v432_v15 }
 0x16c   : > { %3386 = vst.msk [vmem:[#allocation2 + $0x30] sm:$0xff] %vm337_vm0, %v3354_v50  ;;  %v3499_v8 = vunpack.c.l.bf16 %v4525_v58  ;;  %v527_v18 = vpack.c.bf16 %v479_v42, %v479_v42  ;;  %v934_v31 = vunpack.c.l.bf16 %v881_v7  ;;  %v3093_v45 = vpack.c.bf16 %v6126_v23, %v6126_v23  ;;  %v4287_v23 = vld [vmem:[%s4915_s25 + $0x24] sm:$0xff]  }
 0x16d   : > { %v3115_v63 = vld [vmem:[#allocation2 + $0x38] sm:$0xff]  ;;  %342 = vst.msk [vmem:[#allocation2 + $0x20] sm:$0xff] %vm337_vm0, %v309_v22  ;;  %v3094_v5 = vpack.c.bf16 %v6129_v56, %v6129_v56  ;;  %v528_v19 = vpack.c.bf16 %v480_v26, %v480_v26  ;;  %v529_v14 = vpack.c.bf16 %v481_v52, %v481_v52  ;;  %v3500_v39 = vunpack.c.l.bf16 %v4526_v28 }
 0x16e   : > { %v3355_v55 = vadd.f32 %v3255_v2, %v3115_v63  ;;  %343 = vst.msk [vmem:[#allocation2 + $0x28] sm:$0xff] %vm337_vm0, %v310_v62  ;;  %v607_v36 = vunpack.c.l.bf16 %v527_v18  ;;  %v935_v2 = vunpack.c.l.bf16 %v882_v25  ;;  %v982_v32 = vmul.f32 %v4924_v17, %v933_v29 }
 0x16f   : > { %v3547_v44 = vmul.f32 %v5056_v48, %v3498_v37  ;;  %v608_v34 = vunpack.c.l.bf16 %v528_v19  ;;  %v609_v46 = vunpack.c.l.bf16 %v529_v14  ;;  %v983_v47 = vmul.f32 %v4924_v17, %v934_v31  ;;  %v4323_v14 = vld [vmem:[%s4915_s25 + $0x2c] sm:$0x1] }
 0x170   : > { %3387 = vst.msk [vmem:[#allocation2 + $0x38] sm:$0xff] %vm337_vm0, %v3355_v55  ;;  %v3548_v38 = vmul.f32 %v5056_v48, %v3499_v8  ;;  %v708_v40 = vrot.slane %v607_v36, 1  ;;  %v984_v0 = vmul.f32 %v4924_v17, %v935_v2  ;;  %v1030_v6 = vpack.c.bf16 %v982_v32, %v982_v32 }
 0x171   : > { %v2364_v24 = vld [vmem:[#allocation2 + $0xb0] sm:$0xff]  ;;  %v709_v15 = vrot.slane %v608_v34, 1  ;;  %v711_v60 = vrot.slane %v609_v46, 1  ;;  %v1031_v13 = vpack.c.bf16 %v983_v47, %v983_v47  ;;  %v3095_v59 = vpack.c.bf16 %v6137_v21, %v6137_v21 }
 0x172   : > { %v2365_v30 = vld [vmem:[#allocation2 + $0xb8] sm:$0xff]  ;;  %v2604_v20 = vadd.f32 %v2527_v53, %v2364_v24  ;;  %v1032_v42 = vpack.c.bf16 %v984_v0, %v984_v0  ;;  %v1110_v50 = vunpack.c.l.bf16 %v1030_v6  ;;  %v3549_v62 = vmul.f32 %v5056_v48, %v3500_v39 }
 0x173   : > { %v3616_v27 = vld [vmem:[#allocation2 + $0x30] sm:$0xff]  ;;  %v2605_v54 = vadd.f32 %v2529_v1, %v2365_v30  ;;  %v710_v7 = vsel %vm697_vm1, %v708_v40, %v709_v15  ;;  %v712_v53 = vsel %vm697_vm1, %v709_v15, %v711_v60  ;;  %v1111_v22 = vunpack.c.l.bf16 %v1031_v13  ;;  %v4369_v40 = vld [vmem:[%s4915_s25 + $0x24] sm:$0xe] }
 0x174   : > { %v3856_v56 = vadd.f32 %v6110_v51, %v3616_v27  ;;  %2636 = vst.msk [vmem:[#allocation2 + $0xb0] sm:$0xff] %vm337_vm0, %v2604_v20  ;;  %v573_v58 = vld [vmem:[#allocation2 + $0x20] sm:$0xff]  ;;  %v2835_v1 = vunpack.c.l.bf16 %v2771_v57  ;;  %v1112_v21 = vunpack.c.l.bf16 %v1032_v42  ;;  %v3595_v37 = vpack.c.bf16 %v3547_v44, %v3547_v44  ;;  %v4794_v20 = vld [vmem:[%s4915_s25 + $0x78] sm:$0xff]  }
 0x175   : > { %2637 = vst.msk [vmem:[#allocation2 + $0xb8] sm:$0xff] %vm337_vm0, %v2605_v54  ;;  %v574_v29 = vld [vmem:[#allocation2 + $0x28] sm:$0xff]  ;;  %v814_v63 = vadd.f32 %v710_v7, %v573_v58  ;;  %v3596_v26 = vpack.c.bf16 %v3548_v38, %v3548_v38  ;;  %v1420_v25 = vunpack.c.l.bf16 %v4287_v23  ;;  %v3173_v8 = vunpack.c.l.bf16 %v3093_v45 }
 0x176   : > { %v4321_v51 = vld [vmem:[%s4915_s25 + $0x24] sm:$0xff]   ;;  %3888 = vst.msk [vmem:[#allocation2 + $0x30] sm:$0xff] %vm337_vm0, %v3856_v56  ;;  %v815_v52 = vadd.f32 %v712_v53, %v574_v29  ;;  %v3174_v18 = vunpack.c.l.bf16 %v3094_v5  ;;  %v3175_v41 = vunpack.c.l.bf16 %v3095_v59  ;;  %v1211_v57 = vrot.slane %v1110_v50, 2 }
 0x177   : > { %v3617_v28 = vld [vmem:[#allocation2 + $0x38] sm:$0xff]  ;;  %846 = vst.msk [vmem:[#allocation2 + $0x20] sm:$0xff] %vm337_vm0, %v814_v63  ;;  %v1212_v31 = vrot.slane %v1111_v22, 2  ;;  %v1421_v19 = vunpack.c.h.bf16 %v4287_v23  ;;  %v1700_v39 = vunpack.c.l.bf16 %v4321_v51  ;;  %v2836_v36 = vunpack.c.l.bf16 %v2772_v10  ;;  %v4370_v54 = vld [vmem:[%s4915_s25 + $0x28] sm:$0xf] }
 0x178   : > { %v3857_v55 = vadd.f32 %v6113_v4, %v3617_v28  ;;  %847 = vst.msk [vmem:[#allocation2 + $0x28] sm:$0xff] %vm337_vm0, %v815_v52  ;;  %v3597_v4 = vpack.c.bf16 %v3549_v62, %v3549_v62  ;;  %v1214_v45 = vrot.slane %v1112_v21, 2  ;;  %v1701_v5 = vunpack.c.h.bf16 %v4321_v51  ;;  %v4371_v62 = vld [vmem:[%s4915_s25 + $0x2c] sm:$0x1] }
 0x179   : > { %v3675_v2 = vunpack.c.l.bf16 %v3595_v37  ;;  %v6178_v32 = vunpack.c.l.bf16 %v3596_v26  ;;  %v1453_v44 = vmul.f32 %v4952_v3, %v1420_v25  ;;  %v3291_v46 = vrot.slane %v3173_v8, 1  ;;  %v402_v8 = vld [vmem:[%s4915_s25 + $0x80] sm:$0x1] }
 0x17a   : > { %3889 = vst.msk [vmem:[#allocation2 + $0x38] sm:$0xff] %vm337_vm0, %v3857_v55  ;;  %v3292_v47 = vrot.slane %v3174_v18, 1  ;;  %v3294_v24 = vrot.slane %v3175_v41, 1  ;;  %v1702_v38 = vunpack.c.l.bf16 %v4323_v14  ;;  %v1213_v43 = vsel %vm1200_vm2, %v1211_v57, %v1212_v31 }
 0x17b   : > { %v2803_v34 = vld [vmem:[#allocation2 + $0xb0] sm:$0xff]  ;;  %v1454_v10 = vmul.f32 %v4952_v3, %v1421_v19  ;;  %v1749_v30 = vmul.f32 %v4956_v11, %v1700_v39  ;;  %v3677_v60 = vunpack.c.l.bf16 %v3597_v4  ;;  %v1215_v13 = vsel %vm1200_vm2, %v1212_v31, %v1214_v45 }
 0x17c   : > { %v2804_v0 = vld [vmem:[#allocation2 + $0xb8] sm:$0xff]  ;;  %v2867_v6 = vadd.f32 %v2835_v1, %v2803_v34  ;;  %v1750_v27 = vmul.f32 %v4956_v11, %v1701_v5  ;;  %v3793_v42 = vrot.slane %v3675_v2, 2  ;;  %v3794_v50 = vrot.slane %v6178_v32, 2 }
 0x17d   : > { %v2868_v15 = vadd.f32 %v2836_v36, %v2804_v0  ;;  %v3936_v59 = vld [vmem:[#allocation2 + $0x30] sm:$0xff]  ;;  %v1485_v56 = vpack.c.bf16 %v1453_v44, %v1453_v44  ;;  %v2203_v58 = vunpack.c.l.bf16 %v4369_v40  ;;  %v3293_v7 = vsel %vm697_vm1, %v3291_v46, %v3292_v47 }
 0x17e   : > { %2899 = vst.msk [vmem:[#allocation2 + $0xb0] sm:$0xff] %vm337_vm0, %v2867_v6  ;;  %v1076_v23 = vld [vmem:[#allocation2 + $0x20] sm:$0xff]  ;;  %v1751_v1 = vmul.f32 %v4956_v11, %v1702_v38  ;;  %v6195_v29 = vunpack.c.l.bf16 %v4794_v20  ;;  %v1486_v51 = vpack.c.bf16 %v1454_v10, %v1454_v10  ;;  %v1797_v28 = vpack.c.bf16 %v1749_v30, %v1749_v30 }
 0x17f   : > { %2900 = vst.msk [vmem:[#allocation2 + $0xb8] sm:$0xff] %vm337_vm0, %v2868_v15  ;;  %v1077_v53 = vld [vmem:[#allocation2 + $0x28] sm:$0xff]  ;;  %v1317_v22 = vadd.f32 %v1213_v43, %v1076_v23  ;;  %v2204_v37 = vunpack.c.l.bf16 %v4370_v54  ;;  %v3295_v52 = vsel %vm697_vm1, %v3292_v47, %v3294_v24  ;;  %v3796_v25 = vrot.slane %v3677_v60, 2 }
 0x180   : > { %v1318_v21 = vadd.f32 %v1215_v13, %v1077_v53  ;;  %v1798_v55 = vpack.c.bf16 %v1750_v27, %v1750_v27  ;;  %v6201_v18 = vsel %vm1200_vm2, %v3793_v42, %v3794_v50  ;;  %v1549_v41 = vunpack.c.l.bf16 %v1485_v56  ;;  %v905_v53 = vld [vmem:[%s4915_s25 + $0x7c] sm:$0xf] }
 0x181   : > { %v3937_v63 = vld [vmem:[#allocation2 + $0x38] sm:$0xff]  ;;  %1349 = vst.msk [vmem:[#allocation2 + $0x20] sm:$0xff] %vm337_vm0, %v1317_v22  ;;  %v2205_v57 = vunpack.c.l.bf16 %v4371_v62  ;;  %v2252_v31 = vmul.f32 %v4973_v35, %v2203_v58  ;;  %v1799_v14 = vpack.c.bf16 %v1751_v1, %v1751_v1  ;;  %v6206_v39 = vunpack.c.h.bf16 %v4794_v20  ;;  %v6225_v1 = vld [vmem:[%s4915_s25 + $0x30] sm:$0xff]  }
 0x182   : > { %v3965_v26 = vpack.c.bf16 %v3937_v63, %v3936_v59  ;;  %1350 = vst.msk [vmem:[#allocation2 + $0x28] sm:$0xff] %vm337_vm0, %v1318_v21  ;;  %v261_v36 = vmul.f32 %v6195_v29, %v4917_v12  ;;  %v1550_v4 = vunpack.c.l.bf16 %v1486_v51  ;;  %v1877_v45 = vunpack.c.l.bf16 %v1797_v28  ;;  %v904_v59 = vld [vmem:[%s4915_s25 + $0x78] sm:$0xe] }
 0x183   : > { %v2253_v5 = vmul.f32 %v4973_v35, %v2204_v37  ;;  %v456_v2 = vunpack.c.l.bf16 %v402_v8  ;;  %v1878_v44 = vunpack.c.l.bf16 %v1798_v55  ;;  %v262_v34 = vmul.f32 %v6206_v39, %v4917_v12 }
 0x184   : > { %v4052_v19 = vsel %vm337_vm0, %v3965_v26, 0  ;;  %v293_v46 = vpack.c.bf16 %v261_v36, %v261_v36  ;;  %v503_v47 = vmul.f32 %v6195_v29, %v4922_v16  ;;  %v2254_v40 = vmul.f32 %v4973_v35, %v2205_v57  ;;  %v906_v26 = vld [vmem:[%s4915_s25 + $0x80] sm:$0x1] }
 0x185   : > { %4094 = vmatpush.bf16.xpose.msra.mxu0 %v4052_v19  ;;  %4840 = vmatpush.bf16.xpose.msra.mxu2 %v4052_v19  ;;  %v3130_v32 = vld [vmem:[#allocation2 + $0xb0] sm:$0xff]  ;;  %v2300_v0 = vpack.c.bf16 %v2252_v31, %v2252_v31  ;;  %v504_v6 = vmul.f32 %v6206_v39, %v4922_v16  ;;  %v1879_v10 = vunpack.c.l.bf16 %v1799_v14  ;;  %v294_v30 = vpack.c.bf16 %v262_v34, %v262_v34  ;;  %v4451_v14 = vld [vmem:[%s4915_s25 + $0x38] sm:$0x1] }
 0x186   : > { %v3131_v24 = vld [vmem:[#allocation2 + $0xb8] sm:$0xff]  ;;  %v3370_v38 = vadd.f32 %v3293_v7, %v3130_v32  ;;  %v325_v20 = vunpack.c.l.bf16 %v293_v46  ;;  %v3797_v15 = vsel %vm1200_vm2, %v3794_v50, %v3796_v25  ;;  %v505_v13 = vmul.f32 %v4922_v16, %v456_v2 }
 0x187   : > { %v3371_v43 = vadd.f32 %v3295_v52, %v3131_v24  ;;  %v551_v27 = vpack.c.bf16 %v503_v47, %v503_v47  ;;  %v552_v54 = vpack.c.bf16 %v504_v6, %v504_v6  ;;  %v1977_v56 = vrot.slane %v1877_v45, 1 }
 0x188   : > { %3402 = vst.msk [vmem:[#allocation2 + $0xb0] sm:$0xff] %vm337_vm0, %v3370_v38  ;;  %v1517_v60 = vld [vmem:[#allocation2 + $0x20] sm:$0xff]  ;;  %v1978_v58 = vrot.slane %v1878_v44, 1  ;;  %v2301_v7 = vpack.c.bf16 %v2253_v5, %v2253_v5  ;;  %v326_v62 = vunpack.c.l.bf16 %v294_v30  ;;  %v553_v50 = vpack.c.bf16 %v505_v13, %v505_v13 }
 0x189   : > { %3403 = vst.msk [vmem:[#allocation2 + $0xb8] sm:$0xff] %vm337_vm0, %v3371_v43  ;;  %v1518_v42 = vld [vmem:[#allocation2 + $0x28] sm:$0xff]  ;;  %v1581_v23 = vadd.f32 %v1549_v41, %v1517_v60  ;;  %v631_v63 = vunpack.c.l.bf16 %v551_v27  ;;  %v1980_v21 = vrot.slane %v1879_v10, 1  ;;  %v2302_v51 = vpack.c.bf16 %v2254_v40, %v2254_v40 }
 0x18a   : > { %v1582_v22 = vadd.f32 %v1550_v4, %v1518_v42  ;;  %358 = vst.msk [vmem:[#allocation2 + $0xa0] sm:$0xff] %vm337_vm0, %v325_v20  ;;  %v6229_v28 = vunpack.c.l.bf16 %v2300_v0  ;;  %v632_v37 = vunpack.c.l.bf16 %v552_v54  ;;  %v633_v52 = vunpack.c.l.bf16 %v553_v50 }
 0x18b   : > { %1613 = vst.msk [vmem:[#allocation2 + $0x20] sm:$0xff] %vm337_vm0, %v1581_v23  ;;  %v748_v25 = vrot.slane %v631_v63, 1  ;;  %v957_v55 = vunpack.c.l.bf16 %v904_v59  ;;  %v958_v8 = vunpack.c.l.bf16 %v905_v53  ;;  %v1979_v41 = vsel %vm697_vm1, %v1977_v56, %v1978_v58  ;;  %v4497_v23 = vld [vmem:[%s4915_s25 + $0x30] sm:$0xe] }
 0x18c   : > { %1614 = vst.msk [vmem:[#allocation2 + $0x28] sm:$0xff] %vm337_vm0, %v1582_v22  ;;  %v6234_v57 = vunpack.c.l.bf16 %v2301_v7  ;;  %v4732_v31 = vunpack.c.l.bf16 %v6225_v1  ;;  %v749_v19 = vrot.slane %v632_v37, 1  ;;  %v751_v36 = vrot.slane %v633_v52, 1  ;;  %v4303_v7 = vld [vmem:[%s4915_s25 + $0x84] sm:$0xff]   ;;  %v4498_v22 = vld [vmem:[%s4915_s25 + $0x34] sm:$0xf] }
 0x18d   : > { %359 = vst.msk [vmem:[#allocation2 + $0xa8] sm:$0xff] %vm337_vm0, %v326_v62  ;;  %v959_v4 = vunpack.c.l.bf16 %v906_v26  ;;  %v1006_v45 = vmul.f32 %v4924_v17, %v957_v55  ;;  %v1007_v5 = vmul.f32 %v4924_v17, %v958_v8  ;;  %v1981_v32 = vsel %vm697_vm1, %v1978_v58, %v1980_v21  ;;  %v4345_v55 = vld [vmem:[%s4915_s25 + $0x84] sm:$0xff]  }
 0x18e   : > { %v2382_v44 = vunpack.c.l.bf16 %v2302_v51  ;;  %v2480_v34 = vrot.slane %v6229_v28, 2  ;;  %v750_v46 = vsel %vm697_vm1, %v748_v25, %v749_v19  ;;  %v4733_v38 = vunpack.c.h.bf16 %v6225_v1  ;;  %v4499_v1 = vld [vmem:[%s4915_s25 + $0x38] sm:$0x1] }
 0x18f   : > { %v3632_v2 = vld [vmem:[#allocation2 + $0xb0] sm:$0xff]  ;;  %v1008_v40 = vmul.f32 %v4924_v17, %v959_v4  ;;  %v1054_v0 = vpack.c.bf16 %v1006_v45, %v1006_v45  ;;  %v2481_v43 = vrot.slane %v6234_v57, 2  ;;  %v2971_v10 = vunpack.c.l.bf16 %v4451_v14 }
 0x190   : > { %v3633_v47 = vld [vmem:[#allocation2 + $0xb8] sm:$0xff]  ;;  %v3872_v24 = vadd.f32 %v6201_v18, %v3632_v2  ;;  %v3018_v30 = vmul.f32 %v4732_v31, %v5017_v61  ;;  %v3019_v18 = vmul.f32 %v4733_v38, %v5017_v61  ;;  %v752_v13 = vsel %vm697_vm1, %v749_v19, %v751_v36 }
 0x191   : > { %v3873_v6 = vadd.f32 %v3797_v15, %v3633_v47  ;;  %v589_v20 = vld [vmem:[#allocation2 + $0xa0] sm:$0xff]  ;;  %v1055_v54 = vpack.c.bf16 %v1007_v5, %v1007_v5  ;;  %v2483_v42 = vrot.slane %v2382_v44, 2  ;;  %v1056_v56 = vpack.c.bf16 %v1008_v40, %v1008_v40  ;;  %v4347_v44 = vld [vmem:[%s4915_s25 + $0x8c] sm:$0x1] }
 0x192   : > { %3904 = vst.msk [vmem:[#allocation2 + $0xb0] sm:$0xff] %vm337_vm0, %v3872_v24  ;;  %v1843_v60 = vld [vmem:[#allocation2 + $0x20] sm:$0xff]  ;;  %v830_v27 = vadd.f32 %v750_v46, %v589_v20  ;;  %v1134_v58 = vunpack.c.l.bf16 %v1054_v0  ;;  %v3020_v63 = vmul.f32 %v5017_v61, %v2971_v10  ;;  %v3066_v37 = vpack.c.bf16 %v3018_v30, %v3018_v30 }
 0x193   : > { %3905 = vst.msk [vmem:[#allocation2 + $0xb8] sm:$0xff] %vm337_vm0, %v3873_v6  ;;  %v1844_v15 = vld [vmem:[#allocation2 + $0x28] sm:$0xff]  ;;  %v2083_v59 = vadd.f32 %v1979_v41, %v1843_v60  ;;  %v1135_v50 = vunpack.c.l.bf16 %v1055_v54  ;;  %v1136_v51 = vunpack.c.l.bf16 %v1056_v56  ;;  %v3067_v26 = vpack.c.bf16 %v3019_v18, %v3019_v18 }
 0x194   : > { %v2084_v53 = vadd.f32 %v1981_v32, %v1844_v15  ;;  %v590_v62 = vld [vmem:[#allocation2 + $0xa8] sm:$0xff]  ;;  %862 = vst.msk [vmem:[#allocation2 + $0xa0] sm:$0xff] %vm337_vm0, %v830_v27  ;;  %v1251_v28 = vrot.slane %v1134_v58, 2  ;;  %v1436_v25 = vunpack.c.l.bf16 %v4303_v7  ;;  %v6263_v8 = vmul.f32 %v4732_v31, %v5009_v33 }
 0x195   : > { %2115 = vst.msk [vmem:[#allocation2 + $0x20] sm:$0xff] %vm337_vm0, %v2083_v59  ;;  %v831_v21 = vadd.f32 %v752_v13, %v590_v62  ;;  %v1252_v52 = vrot.slane %v1135_v50, 2  ;;  %v3471_v41 = vunpack.c.l.bf16 %v4497_v23  ;;  %v3472_v57 = vunpack.c.l.bf16 %v4498_v22 }
 0x196   : > { %2116 = vst.msk [vmem:[#allocation2 + $0x28] sm:$0xff] %vm337_vm0, %v2084_v53  ;;  %v3473_v19 = vunpack.c.l.bf16 %v4499_v1  ;;  %v2482_v14 = vsel %vm1200_vm2, %v2480_v34, %v2481_v43  ;;  %v2722_v36 = vmul.f32 %v4733_v38, %v5009_v33  ;;  %v1254_v4 = vrot.slane %v1136_v51, 2 }
 0x197   : > { %863 = vst.msk [vmem:[#allocation2 + $0xa8] sm:$0xff] %vm337_vm0, %v831_v21  ;;  %v1437_v45 = vunpack.c.h.bf16 %v4303_v7  ;;  %v2484_v2 = vsel %vm1200_vm2, %v2481_v43, %v2483_v42  ;;  %v1253_v32 = vsel %vm1200_vm2, %v1251_v28, %v1252_v52  ;;  %v1724_v46 = vunpack.c.l.bf16 %v4345_v55  ;;  %v4394_v21 = vld [vmem:[%s4915_s25 + $0x88] sm:$0xf] }
 0x198   : > { %v1725_v31 = vunpack.c.h.bf16 %v4345_v55  ;;  %v3068_v24 = vpack.c.bf16 %v3020_v63, %v3020_v63  ;;  %v3146_v40 = vunpack.c.l.bf16 %v3066_v37  ;;  %v6271_v0 = vunpack.c.l.bf16 %v3067_v26  ;;  %v4393_v63 = vld [vmem:[%s4915_s25 + $0x84] sm:$0xe] }
 0x199   : > { %v3952_v5 = vld [vmem:[#allocation2 + $0xb0] sm:$0xff]  ;;  %v1469_v6 = vmul.f32 %v4952_v3, %v1436_v25  ;;  %v3520_v38 = vmul.f32 %v5056_v48, %v3471_v41  ;;  %v3521_v10 = vmul.f32 %v5056_v48, %v3472_v57  ;;  %v3522_v30 = vmul.f32 %v5056_v48, %v3473_v19  ;;  %v4395_v41 = vld [vmem:[%s4915_s25 + $0x8c] sm:$0x1] }
 0x19a   : > { %v3953_v47 = vld [vmem:[#allocation2 + $0xb8] sm:$0xff]  ;;  %v1255_v60 = vsel %vm1200_vm2, %v1252_v52, %v1254_v4  ;;  %v1470_v13 = vmul.f32 %v4952_v3, %v1437_v45  ;;  %v1726_v27 = vunpack.c.l.bf16 %v4347_v44  ;;  %v1773_v42 = vmul.f32 %v4956_v11, %v1724_v46 }
 0x19b   : > { %v3973_v34 = vpack.c.bf16 %v3953_v47, %v3952_v5  ;;  %v1092_v43 = vld [vmem:[#allocation2 + $0xa0] sm:$0xff]  ;;  %v1774_v23 = vmul.f32 %v4956_v11, %v1725_v31  ;;  %v2753_v58 = vpack.c.bf16 %v6263_v8, %v6263_v8  ;;  %v1501_v53 = vpack.c.bf16 %v1469_v6, %v1469_v6 }
 0x19c   : > { %v2346_v20 = vld [vmem:[#allocation2 + $0x20] sm:$0xff]  ;;  %v1333_v18 = vadd.f32 %v1253_v32, %v1092_v43  ;;  %v3148_v22 = vunpack.c.l.bf16 %v3068_v24  ;;  %v3568_v1 = vpack.c.bf16 %v3520_v38, %v3520_v38  ;;  %v3569_v62 = vpack.c.bf16 %v3521_v10, %v3521_v10 }
 0x19d   : > { %v4076_v54 = vsel %vm337_vm0, %v3973_v34, 0  ;;  %v2347_v15 = vld [vmem:[#allocation2 + $0x28] sm:$0xff]  ;;  %v2586_v59 = vadd.f32 %v2482_v14, %v2346_v20  ;;  %v2754_v51 = vpack.c.bf16 %v2722_v36, %v2722_v36  ;;  %v3246_v28 = vrot.slane %v3146_v40, 1 }
 0x19e   : > { %4143 = vmatpush.bf16.xpose.msra.mxu1 %v4076_v54  ;;  %4848 = vmatpush.bf16.xpose.msra.mxu3 %v4076_v54  ;;  %v2587_v56 = vadd.f32 %v2484_v2, %v2347_v15  ;;  %v1093_v7 = vld [vmem:[#allocation2 + $0xa8] sm:$0xff]  ;;  %1365 = vst.msk [vmem:[#allocation2 + $0xa0] sm:$0xff] %vm337_vm0, %v1333_v18  ;;  %v3570_v37 = vpack.c.bf16 %v3522_v30, %v3522_v30  ;;  %v3247_v52 = vrot.slane %v6271_v0, 1  ;;  %v1565_v57 = vunpack.c.l.bf16 %v1501_v53  ;;  %v6304_v54 = vld [vmem:[%s4915_s25 + $0x90] sm:$0xff]  }
 0x19f   : > { %2618 = vst.msk [vmem:[#allocation2 + $0x20] sm:$0xff] %vm337_vm0, %v2586_v59  ;;  %v1334_v50 = vadd.f32 %v1255_v60, %v1093_v7  ;;  %v1775_v26 = vmul.f32 %v4956_v11, %v1726_v27  ;;  %v1502_v25 = vpack.c.bf16 %v1470_v13, %v1470_v13  ;;  %v1821_v55 = vpack.c.bf16 %v1773_v42, %v1773_v42  ;;  %v173_v2 = vld [vmem:[%s4915_s25 + $0xc] sm:$0xff]  }
 0x1a0   : > { %2619 = vst.msk [vmem:[#allocation2 + $0x28] sm:$0xff] %vm337_vm0, %v2587_v56  ;;  %v1822_v8 = vpack.c.bf16 %v1774_v23, %v1774_v23  ;;  %v2227_v19 = vunpack.c.l.bf16 %v4393_v63  ;;  %v2228_v14 = vunpack.c.l.bf16 %v4394_v21  ;;  %v2817_v4 = vunpack.c.l.bf16 %v2753_v58  ;;  %v373_v58 = vld [vmem:[%s4915_s25 + $0xc] sm:$0xff]  }
 0x1a1   : > { %1366 = vst.msk [vmem:[#allocation2 + $0xa8] sm:$0xff] %vm337_vm0, %v1334_v50  ;;  %v3249_v45 = vrot.slane %v3148_v22, 1  ;;  %v3648_v5 = vunpack.c.l.bf16 %v3568_v1  ;;  %v6293_v36 = vunpack.c.l.bf16 %v3569_v62  ;;  %v2818_v32 = vunpack.c.l.bf16 %v2754_v51  ;;  %v375_v62 = vld [vmem:[%s4915_s25 + $0x14] sm:$0x1] }
 0x1a2   : > { %v3650_v44 = vunpack.c.l.bf16 %v3570_v37  ;;  %v1823_v46 = vpack.c.bf16 %v1775_v26, %v1775_v26  ;;  %v2229_v31 = vunpack.c.l.bf16 %v4395_v41  ;;  %v6297_v47 = vsel %vm697_vm1, %v3246_v28, %v3247_v52 }
 0x1a3   : > { %v1566_v40 = vunpack.c.l.bf16 %v1502_v25  ;;  %v1901_v0 = vunpack.c.l.bf16 %v1821_v55  ;;  %v1902_v6 = vunpack.c.l.bf16 %v1822_v8  ;;  %v2276_v10 = vmul.f32 %v4973_v35, %v2227_v19 }
 0x1a4   : > { %v2277_v30 = vmul.f32 %v4973_v35, %v2228_v14  ;;  %v210_v43 = vunpack.c.l.bf16 %v173_v2  ;;  %v3250_v18 = vsel %vm697_vm1, %v3247_v52, %v3249_v45  ;;  %v3748_v13 = vrot.slane %v3648_v5, 2 }
 0x1a5   : > { %v1533_v24 = vld [vmem:[#allocation2 + $0xa0] sm:$0xff]  ;;  %v3749_v27 = vrot.slane %v6293_v36, 2  ;;  %v3751_v59 = vrot.slane %v3650_v44, 2  ;;  %v1903_v23 = vunpack.c.l.bf16 %v1823_v46  ;;  %v2278_v56 = vmul.f32 %v4973_v35, %v2229_v31 }
 0x1a6   : > { %v2785_v34 = vld [vmem:[#allocation2 + $0x20] sm:$0xff]  ;;  %v1597_v38 = vadd.f32 %v1565_v57, %v1533_v24  ;;  %v2017_v53 = vrot.slane %v1901_v0, 1  ;;  %v2018_v22 = vrot.slane %v1902_v6, 1  ;;  %v211_v1 = vunpack.c.h.bf16 %v173_v2 }
 0x1a7   : > { %v2786_v20 = vld [vmem:[#allocation2 + $0x28] sm:$0xff]  ;;  %v2849_v60 = vadd.f32 %v2817_v4, %v2785_v34  ;;  %v2324_v50 = vpack.c.bf16 %v2276_v10, %v2276_v10  ;;  %v2325_v63 = vpack.c.bf16 %v2277_v30, %v2277_v30  ;;  %v4748_v21 = vunpack.c.l.bf16 %v6304_v54  ;;  %v4475_v10 = vld [vmem:[%s4915_s25 + $0x98] sm:$0x1] }
 0x1a8   : > { %v2850_v15 = vadd.f32 %v2818_v32, %v2786_v20  ;;  %v1534_v42 = vld [vmem:[#allocation2 + $0xa8] sm:$0xff]  ;;  %1629 = vst.msk [vmem:[#allocation2 + $0xa0] sm:$0xff] %vm337_vm0, %v1597_v38  ;;  %v243_v51 = vmul.f32 %v4917_v12, %v210_v43  ;;  %v4749_v28 = vunpack.c.h.bf16 %v6304_v54  ;;  %v244_v37 = vmul.f32 %v4917_v12, %v211_v1 }
 0x1a9   : > { %2881 = vst.msk [vmem:[#allocation2 + $0x20] sm:$0xff] %vm337_vm0, %v2849_v60  ;;  %v1598_v7 = vadd.f32 %v1566_v40, %v1534_v42  ;;  %v427_v26 = vunpack.c.l.bf16 %v373_v58  ;;  %v428_v52 = vunpack.c.h.bf16 %v373_v58  ;;  %v2020_v25 = vrot.slane %v1903_v23, 1 }
 0x1aa   : > { %2882 = vst.msk [vmem:[#allocation2 + $0x28] sm:$0xff] %vm337_vm0, %v2850_v15  ;;  %v2326_v55 = vpack.c.bf16 %v2278_v56, %v2278_v56  ;;  %v275_v8 = vpack.c.bf16 %v243_v51, %v243_v51  ;;  %v429_v41 = vunpack.c.l.bf16 %v375_v62  ;;  %v2019_v57 = vsel %vm697_vm1, %v2017_v53, %v2018_v22  ;;  %v878_v56 = vld [vmem:[%s4915_s25 + $0x10] sm:$0xf] }
 0x1ab   : > { %1630 = vst.msk [vmem:[#allocation2 + $0xa8] sm:$0xff] %vm337_vm0, %v1598_v7  ;;  %v276_v19 = vpack.c.bf16 %v244_v37, %v244_v37  ;;  %v476_v14 = vmul.f32 %v4922_v16, %v427_v26  ;;  %v477_v4 = vmul.f32 %v4922_v16, %v428_v52  ;;  %v2404_v45 = vunpack.c.l.bf16 %v2324_v50 }
 0x1ac   : > { %v2405_v5 = vunpack.c.l.bf16 %v2325_v63  ;;  %v307_v36 = vunpack.c.l.bf16 %v275_v8  ;;  %v478_v2 = vmul.f32 %v4922_v16, %v429_v41  ;;  %v6322_v32 = vsel %vm1200_vm2, %v3748_v13, %v3749_v27  ;;  %v4521_v41 = vld [vmem:[%s4915_s25 + $0x90] sm:$0xe] }
 0x1ad   : > { %v308_v46 = vunpack.c.l.bf16 %v276_v19  ;;  %v524_v31 = vpack.c.bf16 %v476_v14, %v476_v14  ;;  %v525_v24 = vpack.c.bf16 %v477_v4, %v477_v4  ;;  %v6325_v0 = vsel %vm1200_vm2, %v3749_v27, %v3751_v59  ;;  %v877_v27 = vld [vmem:[%s4915_s25 + $0xc] sm:$0xe] }
 0x1ae   : > { %v2021_v6 = vsel %vm697_vm1, %v2018_v22, %v2020_v25  ;;  %v2406_v38 = vunpack.c.l.bf16 %v2326_v55  ;;  %340 = vst.msk [vmem:[#allocation2 + $0x10] sm:$0xff] %vm337_vm0, %v307_v36  ;;  %v6332_v20 = vmul.f32 %v4748_v21, %v5009_v33  ;;  %v6335_v60 = vmul.f32 %v4749_v28, %v5009_v33  ;;  %v879_v22 = vld [vmem:[%s4915_s25 + $0x14] sm:$0x1]  ;;  %v4523_v36 = vld [vmem:[%s4915_s25 + $0x98] sm:$0x1] }
 0x1af   : > { %v1859_v44 = vld [vmem:[#allocation2 + $0xa0] sm:$0xff]  ;;  %341 = vst.msk [vmem:[#allocation2 + $0x18] sm:$0xff] %vm337_vm0, %v308_v46  ;;  %v526_v13 = vpack.c.bf16 %v478_v2, %v478_v2  ;;  %v2520_v59 = vrot.slane %v2404_v45, 2  ;;  %v2521_v42 = vrot.slane %v2405_v5, 2  ;;  %v604_v23 = vunpack.c.l.bf16 %v524_v31 }
 0x1b0   : > { %v3112_v40 = vld [vmem:[#allocation2 + $0x20] sm:$0xff]  ;;  %v2099_v34 = vadd.f32 %v2019_v57, %v1859_v44  ;;  %v2995_v58 = vunpack.c.l.bf16 %v4475_v10  ;;  %v605_v7 = vunpack.c.l.bf16 %v525_v24  ;;  %v2523_v1 = vrot.slane %v2406_v38, 2  ;;  %v4522_v57 = vld [vmem:[%s4915_s25 + $0x94] sm:$0xf] }
 0x1b1   : > { %v3113_v30 = vld [vmem:[#allocation2 + $0x28] sm:$0xff]  ;;  %v3352_v43 = vadd.f32 %v6297_v47, %v3112_v40  ;;  %v606_v53 = vunpack.c.l.bf16 %v526_v13  ;;  %v703_v62 = vrot.slane %v604_v23, 1  ;;  %v930_v50 = vunpack.c.l.bf16 %v877_v27 }
 0x1b2   : > { %v3353_v54 = vadd.f32 %v3250_v18, %v3113_v30  ;;  %v1860_v15 = vld [vmem:[#allocation2 + $0xa8] sm:$0xff]  ;;  %2131 = vst.msk [vmem:[#allocation2 + $0xa0] sm:$0xff] %vm337_vm0, %v2099_v34  ;;  %v3042_v18 = vmul.f32 %v4748_v21, %v5017_v61  ;;  %v3043_v63 = vmul.f32 %v4749_v28, %v5017_v61  ;;  %v704_v51 = vrot.slane %v605_v7, 1 }
 0x1b3   : > { %3384 = vst.msk [vmem:[#allocation2 + $0x20] sm:$0xff] %vm337_vm0, %v3352_v43  ;;  %v2100_v47 = vadd.f32 %v2021_v6, %v1860_v15  ;;  %v706_v37 = vrot.slane %v606_v53, 1  ;;  %v931_v26 = vunpack.c.l.bf16 %v878_v56  ;;  %v2522_v52 = vsel %vm1200_vm2, %v2520_v59, %v2521_v42 }
 0x1b4   : > { %3385 = vst.msk [vmem:[#allocation2 + $0x28] sm:$0xff] %vm337_vm0, %v3353_v54  ;;  %v2769_v25 = vpack.c.bf16 %v6332_v20, %v6332_v20  ;;  %v932_v55 = vunpack.c.l.bf16 %v879_v22  ;;  %v979_v8 = vmul.f32 %v4924_v17, %v930_v50  ;;  %v3044_v21 = vmul.f32 %v5017_v61, %v2995_v58 }
 0x1b5   : > { %2132 = vst.msk [vmem:[#allocation2 + $0xa8] sm:$0xff] %vm337_vm0, %v2100_v47  ;;  %v571_v19 = vld [vmem:[#allocation2 + $0x10] sm:$0xff]  ;;  %v705_v14 = vsel %vm697_vm1, %v703_v62, %v704_v51  ;;  %v707_v28 = vsel %vm697_vm1, %v704_v51, %v706_v37  ;;  %v980_v4 = vmul.f32 %v4924_v17, %v931_v26  ;;  %v2524_v45 = vsel %vm1200_vm2, %v2521_v42, %v2523_v1  ;;  %v4320_v42 = vld [vmem:[%s4915_s25 + $0x20] sm:$0x1] }
 0x1b6   : > { %v3090_v5 = vpack.c.bf16 %v3042_v18, %v3042_v18  ;;  %v572_v2 = vld [vmem:[#allocation2 + $0x18] sm:$0xff]  ;;  %v812_v44 = vadd.f32 %v705_v14, %v571_v19  ;;  %v981_v46 = vmul.f32 %v4924_v17, %v932_v55  ;;  %v3091_v24 = vpack.c.bf16 %v3043_v63, %v3043_v63 }
 0x1b7   : > { %v813_v40 = vadd.f32 %v707_v28, %v572_v2  ;;  %v1027_v6 = vpack.c.bf16 %v979_v8, %v979_v8  ;;  %v1028_v34 = vpack.c.bf16 %v980_v4, %v980_v4  ;;  %v3495_v30 = vunpack.c.l.bf16 %v4521_v41  ;;  %v4366_v28 = vld [vmem:[%s4915_s25 + $0x18] sm:$0xe] }
 0x1b8   : > { %v3496_v43 = vunpack.c.l.bf16 %v4522_v57  ;;  %844 = vst.msk [vmem:[#allocation2 + $0x10] sm:$0xff] %vm337_vm0, %v812_v44  ;;  %v1029_v20 = vpack.c.bf16 %v981_v46, %v981_v46  ;;  %v3497_v54 = vunpack.c.l.bf16 %v4523_v36  ;;  %v2770_v47 = vpack.c.bf16 %v6335_v60, %v6335_v60  ;;  %v189_v44 = vld [vmem:[%s4915_s25 + $0x6c] sm:$0xff]  }
 0x1b9   : > { %v2362_v31 = vld [vmem:[#allocation2 + $0xa0] sm:$0xff]  ;;  %845 = vst.msk [vmem:[#allocation2 + $0x18] sm:$0xff] %vm337_vm0, %v813_v40  ;;  %v1107_v15 = vunpack.c.l.bf16 %v1027_v6  ;;  %v1108_v59 = vunpack.c.l.bf16 %v1028_v34  ;;  %v3092_v58 = vpack.c.bf16 %v3044_v21, %v3044_v21  ;;  %v6372_v18 = vunpack.c.l.bf16 %v3091_v24 }
 0x1ba   : > { %v3614_v38 = vld [vmem:[#allocation2 + $0x20] sm:$0xff]  ;;  %v2602_v10 = vadd.f32 %v2522_v52, %v2362_v31  ;;  %v1109_v7 = vunpack.c.l.bf16 %v1029_v20  ;;  %v1699_v50 = vunpack.c.l.bf16 %v4320_v42  ;;  %v3545_v60 = vmul.f32 %v5056_v48, %v3496_v43 }
 0x1bb   : > { %v3615_v13 = vld [vmem:[#allocation2 + $0x28] sm:$0xff]  ;;  %v3854_v27 = vadd.f32 %v6322_v32, %v3614_v38  ;;  %v6369_v32 = vunpack.c.l.bf16 %v3090_v5  ;;  %v1206_v22 = vrot.slane %v1107_v15, 2  ;;  %v1207_v1 = vrot.slane %v1108_v59, 2  ;;  %v4368_v34 = vld [vmem:[%s4915_s25 + $0x20] sm:$0x1] }
 0x1bc   : > { %v3855_v23 = vadd.f32 %v6325_v0, %v3615_v13  ;;  %v2363_v56 = vld [vmem:[#allocation2 + $0xa8] sm:$0xff]  ;;  %2634 = vst.msk [vmem:[#allocation2 + $0xa0] sm:$0xff] %vm337_vm0, %v2602_v10  ;;  %v3544_v0 = vmul.f32 %v5056_v48, %v3495_v30  ;;  %v1209_v62 = vrot.slane %v1109_v7, 2  ;;  %v3546_v63 = vmul.f32 %v5056_v48, %v3497_v54 }
 0x1bd   : > { %3886 = vst.msk [vmem:[#allocation2 + $0x20] sm:$0xff] %vm337_vm0, %v3854_v27  ;;  %v2603_v53 = vadd.f32 %v2524_v45, %v2363_v56  ;;  %v1208_v51 = vsel %vm1200_vm2, %v1206_v22, %v1207_v1  ;;  %v1451_v37 = vmul.f32 %v6089_v9, %v4952_v3  ;;  %v2833_v26 = vunpack.c.l.bf16 %v2769_v25  ;;  %v4367_v25 = vld [vmem:[%s4915_s25 + $0x1c] sm:$0xf] }
 0x1be   : > { %3887 = vst.msk [vmem:[#allocation2 + $0x28] sm:$0xff] %vm337_vm0, %v3855_v23  ;;  %v2834_v52 = vunpack.c.l.bf16 %v2770_v47  ;;  %v1210_v55 = vsel %vm1200_vm2, %v1207_v1, %v1209_v62  ;;  %v1452_v8 = vmul.f32 %v6095_v49, %v4952_v3  ;;  %v3172_v21 = vunpack.c.l.bf16 %v3092_v58 }
 0x1bf   : > { %2635 = vst.msk [vmem:[#allocation2 + $0xa8] sm:$0xff] %vm337_vm0, %v2603_v53  ;;  %v3286_v41 = vrot.slane %v6369_v32, 1  ;;  %v1074_v57 = vld [vmem:[#allocation2 + $0x10] sm:$0xff]  ;;  %v1746_v19 = vmul.f32 %v6089_v9, %v4956_v11  ;;  %v1747_v14 = vmul.f32 %v6095_v49, %v4956_v11  ;;  %v3287_v4 = vrot.slane %v6372_v18, 1 }
 0x1c0   : > { %v3592_v45 = vpack.c.bf16 %v3544_v0, %v3544_v0  ;;  %v1075_v5 = vld [vmem:[#allocation2 + $0x18] sm:$0xff]  ;;  %v1315_v36 = vadd.f32 %v1208_v51, %v1074_v57  ;;  %v1748_v2 = vmul.f32 %v4956_v11, %v1699_v50  ;;  %v3593_v31 = vpack.c.bf16 %v3545_v60, %v3545_v60 }
 0x1c1   : > { %v3594_v24 = vpack.c.bf16 %v3546_v63, %v3546_v63  ;;  %v1316_v40 = vadd.f32 %v1210_v55, %v1075_v5  ;;  %v1483_v6 = vpack.c.bf16 %v1451_v37, %v1451_v37  ;;  %v1484_v49 = vpack.c.bf16 %v1452_v8, %v1452_v8  ;;  %v397_v5 = vld [vmem:[%s4915_s25 + $0x6c] sm:$0xff]  }
 0x1c2   : > { %1347 = vst.msk [vmem:[#allocation2 + $0x10] sm:$0xff] %vm337_vm0, %v1315_v36  ;;  %v2200_v10 = vunpack.c.l.bf16 %v4366_v28  ;;  %v2201_v30 = vunpack.c.l.bf16 %v4367_v25  ;;  %v3289_v20 = vrot.slane %v3172_v21, 1  ;;  %v1794_v13 = vpack.c.bf16 %v1746_v19, %v1746_v19 }
 0x1c3   : > { %v2801_v46 = vld [vmem:[#allocation2 + $0xa0] sm:$0xff]  ;;  %1348 = vst.msk [vmem:[#allocation2 + $0x18] sm:$0xff] %vm337_vm0, %v1316_v40  ;;  %v1795_v27 = vpack.c.bf16 %v1747_v14, %v1747_v14  ;;  %v226_v54 = vunpack.c.l.bf16 %v189_v44  ;;  %v3672_v42 = vunpack.c.l.bf16 %v3592_v45  ;;  %v1796_v23 = vpack.c.bf16 %v1748_v2, %v1748_v2 }
 0x1c4   : > { %v3934_v9 = vld [vmem:[#allocation2 + $0x20] sm:$0xff]  ;;  %v2865_v38 = vadd.f32 %v2833_v26, %v2801_v46  ;;  %v2202_v56 = vunpack.c.l.bf16 %v4368_v34  ;;  %v3673_v58 = vunpack.c.l.bf16 %v3593_v31  ;;  %v3674_v7 = vunpack.c.l.bf16 %v3594_v24 }
 0x1c5   : > { %v3935_v43 = vld [vmem:[#allocation2 + $0x28] sm:$0xff]  ;;  %v1547_v53 = vunpack.c.l.bf16 %v1483_v6  ;;  %v1548_v22 = vunpack.c.l.bf16 %v1484_v49  ;;  %v2249_v1 = vmul.f32 %v4973_v35, %v2200_v10  ;;  %v2250_v18 = vmul.f32 %v4973_v35, %v2201_v30 }
 0x1c6   : > { %v3964_v15 = vpack.c.bf16 %v3935_v43, %v3934_v9  ;;  %v2802_v59 = vld [vmem:[#allocation2 + $0xa8] sm:$0xff]  ;;  %2897 = vst.msk [vmem:[#allocation2 + $0xa0] sm:$0xff] %vm337_vm0, %v2865_v38  ;;  %v1874_v0 = vunpack.c.l.bf16 %v1794_v13  ;;  %v1875_v62 = vunpack.c.l.bf16 %v1795_v27  ;;  %v227_v50 = vunpack.c.h.bf16 %v189_v44 }
 0x1c7   : > { %v2866_v47 = vadd.f32 %v2834_v52, %v2802_v59  ;;  %v259_v60 = vmul.f32 %v4917_v12, %v226_v54  ;;  %v3288_v63 = vsel %vm697_vm1, %v3286_v41, %v3287_v4  ;;  %v1876_v51 = vunpack.c.l.bf16 %v1796_v23  ;;  %v6408_v45 = vld [vmem:[%s4915_s25 + $0x24] sm:$0xff]  }
 0x1c8   : > { %v4049_v32 = vsel %vm337_vm0, %v3964_v15, 0  ;;  %v2251_v37 = vmul.f32 %v4973_v35, %v2202_v56  ;;  %v3290_v26 = vsel %vm697_vm1, %v3287_v4, %v3289_v20  ;;  %v3788_v52 = vrot.slane %v3672_v42, 2  ;;  %v399_v4 = vld [vmem:[%s4915_s25 + $0x74] sm:$0x1] }
 0x1c9   : > { %4095 = vmatpush.bf16.xpose.msra.mxu0 %v4049_v32  ;;  %4841 = vmatpush.bf16.xpose.msra.mxu2 %v4049_v32  ;;  %2898 = vst.msk [vmem:[#allocation2 + $0xa8] sm:$0xff] %vm337_vm0, %v2866_v47  ;;  %v3789_v55 = vrot.slane %v3673_v58, 2  ;;  %v1515_v8 = vld [vmem:[#allocation2 + $0x10] sm:$0xff]  ;;  %v260_v21 = vmul.f32 %v4917_v12, %v227_v50  ;;  %v3791_v57 = vrot.slane %v3674_v7, 2  ;;  %v2297_v28 = vpack.c.bf16 %v2249_v1, %v2249_v1  ;;  %v4446_v47 = vld [vmem:[%s4915_s25 + $0x24] sm:$0xff]  }
 0x1ca   : > { %v1516_v19 = vld [vmem:[#allocation2 + $0x18] sm:$0xff]  ;;  %v1579_v14 = vadd.f32 %v1547_v53, %v1515_v8  ;;  %v2298_v25 = vpack.c.bf16 %v2250_v18, %v2250_v18  ;;  %v1972_v2 = vrot.slane %v1874_v0, 1  ;;  %v1973_v44 = vrot.slane %v1875_v62, 1  ;;  %v901_v7 = vld [vmem:[%s4915_s25 + $0x6c] sm:$0xe] }
 0x1cb   : > { %v1580_v36 = vadd.f32 %v1548_v22, %v1516_v19  ;;  %v291_v46 = vpack.c.bf16 %v259_v60, %v259_v60  ;;  %v1975_v24 = vrot.slane %v1876_v51, 1  ;;  %v2299_v40 = vpack.c.bf16 %v2251_v37, %v2251_v37  ;;  %v4448_v22 = vld [vmem:[%s4915_s25 + $0x2c] sm:$0x1] }
 0x1cc   : > { %1611 = vst.msk [vmem:[#allocation2 + $0x10] sm:$0xff] %vm337_vm0, %v1579_v14  ;;  %v292_v6 = vpack.c.bf16 %v260_v21, %v260_v21  ;;  %v2686_v34 = vunpack.c.l.bf16 %v6408_v45  ;;  %v451_v38 = vunpack.c.l.bf16 %v397_v5  ;;  %v452_v49 = vunpack.c.h.bf16 %v397_v5 }
 0x1cd   : > { %v3128_v41 = vld [vmem:[#allocation2 + $0xa0] sm:$0xff]  ;;  %1612 = vst.msk [vmem:[#allocation2 + $0x18] sm:$0xff] %vm337_vm0, %v1580_v36  ;;  %v323_v9 = vunpack.c.l.bf16 %v291_v46  ;;  %v6416_v30 = vunpack.c.l.bf16 %v2297_v28  ;;  %v6418_v43 = vunpack.c.l.bf16 %v2298_v25  ;;  %v453_v13 = vunpack.c.l.bf16 %v399_v4  ;;  %v903_v28 = vld [vmem:[%s4915_s25 + $0x74] sm:$0x1] }
 0x1ce   : > { %v3368_v31 = vadd.f32 %v3288_v63, %v3128_v41  ;;  %v324_v20 = vunpack.c.l.bf16 %v292_v6  ;;  %v3790_v54 = vsel %vm1200_vm2, %v3788_v52, %v3789_v55  ;;  %v500_v15 = vmul.f32 %v4922_v16, %v451_v38  ;;  %v902_v63 = vld [vmem:[%s4915_s25 + $0x70] sm:$0xf] }
 0x1cf   : > { %356 = vst.msk [vmem:[#allocation2 + $0x90] sm:$0xff] %vm337_vm0, %v323_v9  ;;  %v501_v59 = vmul.f32 %v4922_v16, %v452_v49  ;;  %v3792_v42 = vsel %vm1200_vm2, %v3789_v55, %v3791_v57  ;;  %v1974_v23 = vsel %vm697_vm1, %v1972_v2, %v1973_v44  ;;  %v2687_v56 = vunpack.c.h.bf16 %v6408_v45 }
 0x1d0   : > { %v3129_v10 = vld [vmem:[#allocation2 + $0xa8] sm:$0xff]  ;;  %3400 = vst.msk [vmem:[#allocation2 + $0xa0] sm:$0xff] %vm337_vm0, %v3368_v31  ;;  %v502_v58 = vmul.f32 %v4922_v16, %v453_v13  ;;  %v1976_v53 = vsel %vm697_vm1, %v1973_v44, %v1975_v24  ;;  %v2379_v32 = vunpack.c.l.bf16 %v2299_v40  ;;  %v548_v1 = vpack.c.bf16 %v500_v15, %v500_v15 }
 0x1d1   : > { %v3369_v27 = vadd.f32 %v3290_v26, %v3129_v10  ;;  %357 = vst.msk [vmem:[#allocation2 + $0x98] sm:$0xff] %vm337_vm0, %v324_v20  ;;  %v549_v18 = vpack.c.bf16 %v501_v59, %v501_v59  ;;  %v2475_v0 = vrot.slane %v6416_v30, 2  ;;  %v2476_v62 = vrot.slane %v6418_v43, 2  ;;  %v4494_v30 = vld [vmem:[%s4915_s25 + $0x24] sm:$0xe] }
 0x1d2   : > { %v2719_v50 = vmul.f32 %v5009_v33, %v2686_v34  ;;  %v550_v60 = vpack.c.bf16 %v502_v58, %v502_v58  ;;  %v2966_v37 = vunpack.c.l.bf16 %v4446_v47  ;;  %v628_v26 = vunpack.c.l.bf16 %v548_v1 }
 0x1d3   : > { %3401 = vst.msk [vmem:[#allocation2 + $0xa8] sm:$0xff] %vm337_vm0, %v3369_v27  ;;  %v1841_v51 = vld [vmem:[#allocation2 + $0x10] sm:$0xff]  ;;  %v629_v52 = vunpack.c.l.bf16 %v549_v18  ;;  %v954_v55 = vunpack.c.l.bf16 %v901_v7  ;;  %v2967_v57 = vunpack.c.h.bf16 %v4446_v47  ;;  %v2968_v19 = vunpack.c.l.bf16 %v4448_v22  ;;  %v4496_v47 = vld [vmem:[%s4915_s25 + $0x2c] sm:$0x1] }
 0x1d4   : > { %v1842_v8 = vld [vmem:[#allocation2 + $0x18] sm:$0xff]  ;;  %v2081_v21 = vadd.f32 %v1974_v23, %v1841_v51  ;;  %v630_v14 = vunpack.c.l.bf16 %v550_v60  ;;  %v743_v5 = vrot.slane %v628_v26, 1  ;;  %v955_v36 = vunpack.c.l.bf16 %v902_v63 }
 0x1d5   : > { %v2082_v45 = vadd.f32 %v1976_v53, %v1842_v8  ;;  %v744_v41 = vrot.slane %v629_v52, 1  ;;  %v2478_v44 = vrot.slane %v2379_v32, 2  ;;  %v2720_v46 = vmul.f32 %v5009_v33, %v2687_v56  ;;  %v4344_v52 = vld [vmem:[%s4915_s25 + $0x80] sm:$0x1] }
 0x1d6   : > { %2113 = vst.msk [vmem:[#allocation2 + $0x10] sm:$0xff] %vm337_vm0, %v2081_v21  ;;  %v587_v4 = vld [vmem:[#allocation2 + $0x90] sm:$0xff]  ;;  %v746_v31 = vrot.slane %v630_v14, 1  ;;  %v3015_v24 = vmul.f32 %v5017_v61, %v2966_v37  ;;  %v956_v34 = vunpack.c.l.bf16 %v903_v28  ;;  %v1003_v9 = vmul.f32 %v4924_v17, %v954_v55 }
 0x1d7   : > { %v3630_v25 = vld [vmem:[#allocation2 + $0xa0] sm:$0xff]  ;;  %2114 = vst.msk [vmem:[#allocation2 + $0x18] sm:$0xff] %vm337_vm0, %v2082_v45  ;;  %v745_v6 = vsel %vm697_vm1, %v743_v5, %v744_v41  ;;  %v2751_v49 = vpack.c.bf16 %v2719_v50, %v2719_v50  ;;  %v3016_v10 = vmul.f32 %v5017_v61, %v2967_v57  ;;  %v3017_v27 = vmul.f32 %v5017_v61, %v2968_v19 }
 0x1d8   : > { %v3870_v2 = vadd.f32 %v3790_v54, %v3630_v25  ;;  %v588_v40 = vld [vmem:[#allocation2 + $0x98] sm:$0xff]  ;;  %v747_v43 = vsel %vm697_vm1, %v744_v41, %v746_v31  ;;  %v828_v20 = vadd.f32 %v745_v6, %v587_v4  ;;  %v4495_v54 = vld [vmem:[%s4915_s25 + $0x28] sm:$0xf]  ;;  %v1004_v59 = vmul.f32 %v4924_v17, %v955_v36 }
 0x1d9   : > { %v829_v15 = vadd.f32 %v747_v43, %v588_v40  ;;  %v2477_v23 = vsel %vm1200_vm2, %v2475_v0, %v2476_v62  ;;  %v2752_v56 = vpack.c.bf16 %v2720_v46, %v2720_v46  ;;  %v1005_v58 = vmul.f32 %v4924_v17, %v956_v34 }
 0x1da   : > { %v3631_v38 = vld [vmem:[#allocation2 + $0xa8] sm:$0xff]  ;;  %3902 = vst.msk [vmem:[#allocation2 + $0xa0] sm:$0xff] %vm337_vm0, %v3870_v2  ;;  %v1051_v7 = vpack.c.bf16 %v1003_v9, %v1003_v9  ;;  %v3063_v53 = vpack.c.bf16 %v3015_v24, %v3015_v24  ;;  %v3468_v32 = vunpack.c.l.bf16 %v4494_v30  ;;  %v1052_v22 = vpack.c.bf16 %v1004_v59, %v1004_v59 }
 0x1db   : > { %v3871_v13 = vadd.f32 %v3792_v42, %v3631_v38  ;;  %860 = vst.msk [vmem:[#allocation2 + $0x90] sm:$0xff] %vm337_vm0, %v828_v20  ;;  %v2479_v42 = vsel %vm1200_vm2, %v2476_v62, %v2478_v44  ;;  %v6458_v1 = vunpack.c.l.bf16 %v2751_v49  ;;  %v3469_v18 = vunpack.c.l.bf16 %v4495_v54  ;;  %v4390_v49 = vld [vmem:[%s4915_s25 + $0x78] sm:$0xe] }
 0x1dc   : > { %861 = vst.msk [vmem:[#allocation2 + $0x98] sm:$0xff] %vm337_vm0, %v829_v15  ;;  %v1053_v0 = vpack.c.bf16 %v1005_v58, %v1005_v58  ;;  %v1131_v50 = vunpack.c.l.bf16 %v1051_v7  ;;  %v3064_v63 = vpack.c.bf16 %v3016_v10, %v3016_v10  ;;  %v3065_v51 = vpack.c.bf16 %v3017_v27, %v3017_v27  ;;  %v4391_v10 = vld [vmem:[%s4915_s25 + $0x7c] sm:$0xf] }
 0x1dd   : > { %3903 = vst.msk [vmem:[#allocation2 + $0xa8] sm:$0xff] %vm337_vm0, %v3871_v13  ;;  %v2344_v60 = vld [vmem:[#allocation2 + $0x10] sm:$0xff]  ;;  %v3470_v37 = vunpack.c.l.bf16 %v4496_v47  ;;  %v1132_v26 = vunpack.c.l.bf16 %v1052_v22  ;;  %v2816_v21 = vunpack.c.l.bf16 %v2752_v56  ;;  %v6462_v14 = vunpack.c.l.bf16 %v3063_v53  ;;  %v4392_v56 = vld [vmem:[%s4915_s25 + $0x80] sm:$0x1] }
 0x1de   : > { %v2345_v55 = vld [vmem:[#allocation2 + $0x18] sm:$0xff]  ;;  %v2584_v8 = vadd.f32 %v2477_v23, %v2344_v60  ;;  %v1133_v62 = vunpack.c.l.bf16 %v1053_v0  ;;  %v1246_v57 = vrot.slane %v1131_v50, 2  ;;  %v3517_v28 = vmul.f32 %v5056_v48, %v3468_v32  ;;  %v4599_v47 = vld [vmem:[%s4915_s25] sm:$0xff]  }
 0x1df   : > { %v2585_v19 = vadd.f32 %v2479_v42, %v2345_v55  ;;  %v1247_v25 = vrot.slane %v1132_v26, 2  ;;  %v3518_v5 = vmul.f32 %v5056_v48, %v3469_v18  ;;  %v1467_v36 = vmul.f32 %v6195_v29, %v4952_v3 }
 0x1e0   : > { %2616 = vst.msk [vmem:[#allocation2 + $0x10] sm:$0xff] %vm337_vm0, %v2584_v8  ;;  %v1249_v41 = vrot.slane %v1133_v62, 2  ;;  %v1723_v2 = vunpack.c.l.bf16 %v4344_v52  ;;  %v3144_v44 = vunpack.c.l.bf16 %v3064_v63  ;;  %v3145_v46 = vunpack.c.l.bf16 %v3065_v51 }
 0x1e1   : > { %v3950_v45 = vld [vmem:[#allocation2 + $0xa0] sm:$0xff]  ;;  %2617 = vst.msk [vmem:[#allocation2 + $0x18] sm:$0xff] %vm337_vm0, %v2585_v19  ;;  %v3519_v4 = vmul.f32 %v5056_v48, %v3470_v37  ;;  %v1248_v24 = vsel %vm1200_vm2, %v1246_v57, %v1247_v25  ;;  %v1468_v9 = vmul.f32 %v6206_v39, %v4952_v3  ;;  %v1770_v38 = vmul.f32 %v6195_v29, %v4956_v11 }
 0x1e2   : > { %v1090_v31 = vld [vmem:[#allocation2 + $0x90] sm:$0xff]  ;;  %v1250_v6 = vsel %vm1200_vm2, %v1247_v25, %v1249_v41  ;;  %v3241_v43 = vrot.slane %v6462_v14, 1  ;;  %v3565_v20 = vpack.c.bf16 %v3517_v28, %v3517_v28  ;;  %v1771_v27 = vmul.f32 %v6206_v39, %v4956_v11 }
 0x1e3   : > { %v1331_v34 = vadd.f32 %v1248_v24, %v1090_v31  ;;  %v1091_v13 = vld [vmem:[#allocation2 + $0x98] sm:$0xff]  ;;  %v3566_v54 = vpack.c.bf16 %v3518_v5, %v3518_v5  ;;  %v1499_v59 = vpack.c.bf16 %v1467_v36, %v1467_v36  ;;  %v1772_v23 = vmul.f32 %v4956_v11, %v1723_v2 }
 0x1e4   : > { %v3951_v40 = vld [vmem:[#allocation2 + $0xa8] sm:$0xff]  ;;  %v1332_v15 = vadd.f32 %v1250_v6, %v1091_v13  ;;  %v3567_v58 = vpack.c.bf16 %v3519_v4, %v3519_v4  ;;  %v2224_v7 = vunpack.c.l.bf16 %v4390_v49  ;;  %v2225_v42 = vunpack.c.l.bf16 %v4391_v10 }
 0x1e5   : > { %v3972_v30 = vpack.c.bf16 %v3951_v40, %v3950_v45  ;;  %1363 = vst.msk [vmem:[#allocation2 + $0x90] sm:$0xff] %vm337_vm0, %v1331_v34  ;;  %v3242_v53 = vrot.slane %v3144_v44, 1  ;;  %v3244_v32 = vrot.slane %v3145_v46, 1  ;;  %v1500_v39 = vpack.c.bf16 %v1468_v9, %v1468_v9  ;;  %v372_v4 = vld [vmem:[%s4915_s25 + $0x8] sm:$0x1] }
 0x1e6   : > { %1364 = vst.msk [vmem:[#allocation2 + $0x98] sm:$0xff] %vm337_vm0, %v1332_v15  ;;  %v1818_v22 = vpack.c.bf16 %v1770_v38, %v1770_v38  ;;  %v6488_v0 = vunpack.c.l.bf16 %v3565_v20  ;;  %v1819_v50 = vpack.c.bf16 %v1771_v27, %v1771_v27  ;;  %v2226_v60 = vunpack.c.l.bf16 %v4392_v56  ;;  %v4429_v20 = vld [vmem:[%s4915_s25 + $0x84] sm:$0xff]  }
 0x1e7   : > { %v4073_v29 = vsel %vm337_vm0, %v3972_v30, 0  ;;  %v2783_v18 = vld [vmem:[#allocation2 + $0x10] sm:$0xff]  ;;  %v4600_v63 = vunpack.c.l.bf16 %v4599_v47  ;;  %v6491_v26 = vunpack.c.l.bf16 %v3566_v54  ;;  %v1563_v52 = vunpack.c.l.bf16 %v1499_v59 }
 0x1e8   : > { %4144 = vmatpush.bf16.xpose.msra.mxu1 %v4073_v29  ;;  %4849 = vmatpush.bf16.xpose.msra.mxu3 %v4073_v29  ;;  %v2784_v51 = vld [vmem:[#allocation2 + $0x18] sm:$0xff]  ;;  %v2847_v37 = vadd.f32 %v6458_v1, %v2783_v18  ;;  %v1820_v55 = vpack.c.bf16 %v1772_v23, %v1772_v23  ;;  %v6493_v62 = vunpack.c.l.bf16 %v3567_v58  ;;  %v2273_v57 = vmul.f32 %v4973_v35, %v2224_v7 }
 0x1e9   : > { %v2848_v8 = vadd.f32 %v2816_v21, %v2784_v51  ;;  %v2274_v19 = vmul.f32 %v4973_v35, %v2225_v42  ;;  %v1564_v14 = vunpack.c.l.bf16 %v1500_v39  ;;  %v1898_v28 = vunpack.c.l.bf16 %v1818_v22 }
 0x1ea   : > { %2879 = vst.msk [vmem:[#allocation2 + $0x10] sm:$0xff] %vm337_vm0, %v2847_v37  ;;  %v4601_v25 = vunpack.c.h.bf16 %v4599_v47  ;;  %v241_v45 = vmul.f32 %v4600_v63, %v4917_v12  ;;  %v3243_v1 = vsel %vm697_vm1, %v3241_v43, %v3242_v53  ;;  %v1899_v21 = vunpack.c.l.bf16 %v1819_v50 }
 0x1eb   : > { %2880 = vst.msk [vmem:[#allocation2 + $0x18] sm:$0xff] %vm337_vm0, %v2848_v8  ;;  %v2275_v41 = vmul.f32 %v4973_v35, %v2226_v60  ;;  %v3245_v36 = vsel %vm697_vm1, %v3242_v53, %v3244_v32  ;;  %v3743_v2 = vrot.slane %v6488_v0, 2  ;;  %v1900_v46 = vunpack.c.l.bf16 %v1820_v55  ;;  %v875_v55 = vld [vmem:[%s4915_s25 + $0x4] sm:$0xf] }
 0x1ec   : > { %v1531_v5 = vld [vmem:[#allocation2 + $0x90] sm:$0xff]  ;;  %v3744_v31 = vrot.slane %v6491_v26, 2  ;;  %v2321_v40 = vpack.c.bf16 %v2273_v57, %v2273_v57  ;;  %v2322_v6 = vpack.c.bf16 %v2274_v19, %v2274_v19  ;;  %v242_v34 = vmul.f32 %v4601_v25, %v4917_v12 }
 0x1ed   : > { %v1595_v44 = vadd.f32 %v1563_v52, %v1531_v5  ;;  %v1532_v24 = vld [vmem:[#allocation2 + $0x98] sm:$0xff]  ;;  %v3746_v9 = vrot.slane %v6493_v62, 2  ;;  %v2012_v49 = vrot.slane %v1898_v28, 1  ;;  %v273_v10 = vpack.c.bf16 %v241_v45, %v241_v45  ;;  %v876_v28 = vld [vmem:[%s4915_s25 + $0x8] sm:$0x1] }
 0x1ee   : > { %v1596_v38 = vadd.f32 %v1564_v14, %v1532_v24  ;;  %v2013_v30 = vrot.slane %v1899_v21, 1  ;;  %v2323_v43 = vpack.c.bf16 %v2275_v41, %v2275_v41  ;;  %v274_v13 = vpack.c.bf16 %v242_v34, %v242_v34 }
 0x1ef   : > { %1627 = vst.msk [vmem:[#allocation2 + $0x90] sm:$0xff] %vm337_vm0, %v1595_v44  ;;  %v426_v27 = vunpack.c.l.bf16 %v372_v4  ;;  %v2015_v54 = vrot.slane %v1900_v46, 1  ;;  %v305_v15 = vunpack.c.l.bf16 %v273_v10  ;;  %v473_v59 = vmul.f32 %v4600_v63, %v4922_v16  ;;  %v874_v63 = vld [vmem:[%s4915_s25] sm:$0xe]  ;;  %v4472_v10 = vld [vmem:[%s4915_s25 + $0x8c] sm:$0x1] }
 0x1f0   : > { %1628 = vst.msk [vmem:[#allocation2 + $0x98] sm:$0xff] %vm337_vm0, %v1596_v38  ;;  %v474_v23 = vmul.f32 %v4601_v25, %v4922_v16  ;;  %v2401_v47 = vunpack.c.l.bf16 %v2321_v40  ;;  %v2402_v29 = vunpack.c.l.bf16 %v2322_v6  ;;  %v306_v58 = vunpack.c.l.bf16 %v274_v13 }
 0x1f1   : > { %v3110_v56 = vld [vmem:[#allocation2 + $0x10] sm:$0xff]  ;;  %v475_v7 = vmul.f32 %v4922_v16, %v426_v27  ;;  %v2702_v32 = vunpack.c.l.bf16 %v4429_v20  ;;  %338 = vst.msk [vmem:[#allocation2] sm:$0xff] %vm337_vm0, %v305_v15  ;;  %v521_v39 = vpack.c.bf16 %v473_v59, %v473_v59  ;;  %v2014_v0 = vsel %vm697_vm1, %v2012_v49, %v2013_v30 }
 0x1f2   : > { %v3111_v42 = vld [vmem:[#allocation2 + $0x18] sm:$0xff]  ;;  %v3350_v53 = vadd.f32 %v3243_v1, %v3110_v56  ;;  %v522_v22 = vpack.c.bf16 %v474_v23, %v474_v23  ;;  %v2403_v50 = vunpack.c.l.bf16 %v2323_v43  ;;  %339 = vst.msk [vmem:[#allocation2 + $0x8] sm:$0xff] %vm337_vm0, %v306_v58  ;;  %v3745_v51 = vsel %vm1200_vm2, %v3743_v2, %v3744_v31  ;;  %v4470_v1 = vld [vmem:[%s4915_s25 + $0x84] sm:$0xff]  }
 0x1f3   : > { %v3351_v18 = vadd.f32 %v3245_v36, %v3111_v42  ;;  %v523_v60 = vpack.c.bf16 %v475_v7, %v475_v7  ;;  %v2703_v37 = vunpack.c.h.bf16 %v4429_v20  ;;  %v601_v26 = vunpack.c.l.bf16 %v521_v39  ;;  %v4518_v42 = vld [vmem:[%s4915_s25 + $0x84] sm:$0xe] }
 0x1f4   : > { %3382 = vst.msk [vmem:[#allocation2 + $0x10] sm:$0xff] %vm337_vm0, %v3350_v53  ;;  %v602_v52 = vunpack.c.l.bf16 %v522_v22  ;;  %v2016_v62 = vsel %vm697_vm1, %v2013_v30, %v2015_v54  ;;  %v2515_v57 = vrot.slane %v2401_v47, 2  ;;  %v2516_v19 = vrot.slane %v2402_v29, 2  ;;  %v4283_v47 = vld [vmem:[%s4915_s25 + $0xc] sm:$0xff]   ;;  %v4519_v53 = vld [vmem:[%s4915_s25 + $0x88] sm:$0xf] }
 0x1f5   : > { %3383 = vst.msk [vmem:[#allocation2 + $0x18] sm:$0xff] %vm337_vm0, %v3351_v18  ;;  %v603_v14 = vunpack.c.l.bf16 %v523_v60  ;;  %v3747_v25 = vsel %vm1200_vm2, %v3744_v31, %v3746_v9  ;;  %v698_v5 = vrot.slane %v601_v26, 1  ;;  %v927_v21 = vunpack.c.l.bf16 %v874_v63  ;;  %v4315_v60 = vld [vmem:[%s4915_s25 + $0xc] sm:$0xff]  }
 0x1f6   : > { %v1857_v8 = vld [vmem:[#allocation2 + $0x90] sm:$0xff]  ;;  %v2518_v36 = vrot.slane %v2403_v50, 2  ;;  %v6527_v2 = vmul.f32 %v5009_v33, %v2702_v32  ;;  %v699_v44 = vrot.slane %v602_v52, 1  ;;  %v6531_v24 = vmul.f32 %v5009_v33, %v2703_v37 }
 0x1f7   : > { %v2097_v45 = vadd.f32 %v2014_v0, %v1857_v8  ;;  %v1858_v41 = vld [vmem:[#allocation2 + $0x98] sm:$0xff]  ;;  %v701_v46 = vrot.slane %v603_v14, 1  ;;  %v928_v40 = vunpack.c.l.bf16 %v875_v55  ;;  %v929_v31 = vunpack.c.l.bf16 %v876_v28  ;;  %v4317_v14 = vld [vmem:[%s4915_s25 + $0x14] sm:$0x1] }
 0x1f8   : > { %v2098_v4 = vadd.f32 %v2016_v62, %v1858_v41  ;;  %v2517_v6 = vsel %vm1200_vm2, %v2515_v57, %v2516_v19  ;;  %v2990_v34 = vunpack.c.l.bf16 %v4470_v1  ;;  %v569_v9 = vld [vmem:[#allocation2] sm:$0xff]  ;;  %v700_v38 = vsel %vm697_vm1, %v698_v5, %v699_v44 }
 0x1f9   : > { %2129 = vst.msk [vmem:[#allocation2 + $0x90] sm:$0xff] %vm337_vm0, %v2097_v45  ;;  %v702_v49 = vsel %vm697_vm1, %v699_v44, %v701_v46  ;;  %v2991_v30 = vunpack.c.h.bf16 %v4470_v1  ;;  %v570_v43 = vld [vmem:[#allocation2 + $0x8] sm:$0xff]  ;;  %v810_v20 = vadd.f32 %v700_v38, %v569_v9  ;;  %v976_v13 = vmul.f32 %v4924_v17, %v927_v21 }
 0x1fa   : > { %2130 = vst.msk [vmem:[#allocation2 + $0x98] sm:$0xff] %vm337_vm0, %v2098_v4  ;;  %v977_v27 = vmul.f32 %v4924_v17, %v928_v40  ;;  %v2519_v15 = vsel %vm1200_vm2, %v2516_v19, %v2518_v36  ;;  %v2767_v59 = vpack.c.bf16 %v6527_v2, %v6527_v2  ;;  %v811_v23 = vadd.f32 %v702_v49, %v570_v43 }
 0x1fb   : > { %v3612_v54 = vld [vmem:[#allocation2 + $0x10] sm:$0xff]  ;;  %v978_v56 = vmul.f32 %v4924_v17, %v929_v31  ;;  %v2768_v7 = vpack.c.bf16 %v6531_v24, %v6531_v24  ;;  %842 = vst.msk [vmem:[#allocation2] sm:$0xff] %vm337_vm0, %v810_v20  ;;  %v1024_v32 = vpack.c.bf16 %v976_v13, %v976_v13  ;;  %v2992_v18 = vunpack.c.l.bf16 %v4472_v10 }
 0x1fc   : > { %v3613_v29 = vld [vmem:[#allocation2 + $0x18] sm:$0xff]  ;;  %v3852_v58 = vadd.f32 %v3745_v51, %v3612_v54  ;;  %v1025_v39 = vpack.c.bf16 %v977_v27, %v977_v27  ;;  %v3039_v0 = vmul.f32 %v5017_v61, %v2990_v34  ;;  %843 = vst.msk [vmem:[#allocation2 + $0x8] sm:$0xff] %vm337_vm0, %v811_v23  ;;  %v3040_v63 = vmul.f32 %v5017_v61, %v2991_v30  ;;  %v4520_v51 = vld [vmem:[%s4915_s25 + $0x8c] sm:$0x1] }
 0x1fd   : > { %v3853_v22 = vadd.f32 %v3747_v25, %v3613_v29  ;;  %v1026_v50 = vpack.c.bf16 %v978_v56, %v978_v56  ;;  %v1104_v37 = vunpack.c.l.bf16 %v1024_v32  ;;  %v1416_v52 = vunpack.c.l.bf16 %v4283_v47 }
 0x1fe   : > { %3884 = vst.msk [vmem:[#allocation2 + $0x10] sm:$0xff] %vm337_vm0, %v3852_v58  ;;  %v1105_v26 = vunpack.c.l.bf16 %v1025_v39  ;;  %v3492_v8 = vunpack.c.l.bf16 %v4518_v42  ;;  %v3493_v62 = vunpack.c.l.bf16 %v4519_v53  ;;  %v1417_v19 = vunpack.c.h.bf16 %v4283_v47 }
 0x1ff   : > { %3885 = vst.msk [vmem:[#allocation2 + $0x18] sm:$0xff] %vm337_vm0, %v3853_v22  ;;  %v1106_v57 = vunpack.c.l.bf16 %v1026_v50  ;;  %v1201_v25 = vrot.slane %v1104_v37, 2  ;;  %v1694_v1 = vunpack.c.l.bf16 %v4315_v60  ;;  %v3041_v21 = vmul.f32 %v5017_v61, %v2992_v18  ;;  %v4363_v22 = vld [vmem:[%s4915_s25 + $0xc] sm:$0xe] }
 0x200   : > { %v2360_v55 = vld [vmem:[#allocation2 + $0x90] sm:$0xff]  ;;  %v1202_v45 = vrot.slane %v1105_v26, 2  ;;  %v3494_v41 = vunpack.c.l.bf16 %v4520_v51  ;;  %v1695_v2 = vunpack.c.h.bf16 %v4315_v60  ;;  %v1449_v4 = vmul.f32 %v4952_v3, %v1416_v52 }
 0x201   : > { %v2600_v28 = vadd.f32 %v2517_v6, %v2360_v55  ;;  %v2361_v5 = vld [vmem:[#allocation2 + $0x98] sm:$0xff]  ;;  %v1204_v36 = vrot.slane %v1106_v57, 2  ;;  %v1696_v40 = vunpack.c.l.bf16 %v4317_v14  ;;  %v3541_v31 = vmul.f32 %v5056_v48, %v3492_v8  ;;  %v4364_v60 = vld [vmem:[%s4915_s25 + $0x10] sm:$0xf]  ;;  %v4365_v55 = vld [vmem:[%s4915_s25 + $0x14] sm:$0x1] }
 0x202   : > { %v2601_v44 = vadd.f32 %v2519_v15, %v2361_v5  ;;  %v1203_v46 = vsel %vm1200_vm2, %v1201_v25, %v1202_v45  ;;  %v3542_v6 = vmul.f32 %v5056_v48, %v3493_v62  ;;  %v1072_v34 = vld [vmem:[#allocation2] sm:$0xff]  ;;  %v1450_v38 = vmul.f32 %v4952_v3, %v1417_v19 }
 0x203   : > { %2632 = vst.msk [vmem:[#allocation2 + $0x90] sm:$0xff] %vm337_vm0, %v2600_v28  ;;  %v1205_v9 = vsel %vm1200_vm2, %v1202_v45, %v1204_v36  ;;  %v3087_v49 = vpack.c.bf16 %v3039_v0, %v3039_v0  ;;  %v1073_v10 = vld [vmem:[#allocation2 + $0x8] sm:$0xff]  ;;  %v1313_v30 = vadd.f32 %v1203_v46, %v1072_v34  ;;  %v1743_v43 = vmul.f32 %v4956_v11, %v1694_v1 }
 0x204   : > { %2633 = vst.msk [vmem:[#allocation2 + $0x98] sm:$0xff] %vm337_vm0, %v2601_v44  ;;  %v1744_v20 = vmul.f32 %v4956_v11, %v1695_v2  ;;  %v3088_v27 = vpack.c.bf16 %v3040_v63, %v3040_v63  ;;  %v3089_v54 = vpack.c.bf16 %v3041_v21, %v3041_v21  ;;  %v3543_v15 = vmul.f32 %v5056_v48, %v3494_v41 }
 0x205   : > { %v3932_v13 = vld [vmem:[#allocation2 + $0x10] sm:$0xff]  ;;  %v1314_v23 = vadd.f32 %v1205_v9, %v1073_v10  ;;  %v2831_v47 = vunpack.c.l.bf16 %v2767_v59  ;;  %1345 = vst.msk [vmem:[#allocation2] sm:$0xff] %vm337_vm0, %v1313_v30  ;;  %v1481_v29 = vpack.c.bf16 %v1449_v4, %v1449_v4  ;;  %v1745_v58 = vmul.f32 %v4956_v11, %v1696_v40  ;;  %v396_v10 = vld [vmem:[%s4915_s25 + $0x68] sm:$0x1] }
 0x206   : > { %v3933_v56 = vld [vmem:[#allocation2 + $0x18] sm:$0xff]  ;;  %v3589_v53 = vpack.c.bf16 %v3541_v31, %v3541_v31  ;;  %v3590_v32 = vpack.c.bf16 %v3542_v6, %v3542_v6  ;;  %v1482_v39 = vpack.c.bf16 %v1450_v38, %v1450_v38  ;;  %v2832_v18 = vunpack.c.l.bf16 %v2768_v7  ;;  %v4793_v6 = vld [vmem:[%s4915_s25 + $0x60] sm:$0xff]  }
 0x207   : > { %v3963_v42 = vpack.c.bf16 %v3933_v56, %v3932_v13  ;;  %1346 = vst.msk [vmem:[#allocation2 + $0x8] sm:$0xff] %vm337_vm0, %v1314_v23  ;;  %v3167_v0 = vunpack.c.l.bf16 %v3087_v49  ;;  %v1791_v50 = vpack.c.bf16 %v1743_v43, %v1743_v43  ;;  %v1792_v59 = vpack.c.bf16 %v1744_v20, %v1744_v20 }
 0x208   : > { %v3168_v37 = vunpack.c.l.bf16 %v3088_v27  ;;  %v3169_v26 = vunpack.c.l.bf16 %v3089_v54  ;;  %v3591_v52 = vpack.c.bf16 %v3543_v15, %v3543_v15  ;;  %v1545_v62 = vunpack.c.l.bf16 %v1481_v29 }
 0x209   : > { %v4046_v63 = vsel %vm337_vm0, %v3963_v42, 0  ;;  %v1793_v57 = vpack.c.bf16 %v1745_v58, %v1745_v58  ;;  %v2197_v19 = vunpack.c.l.bf16 %v4363_v22  ;;  %v3669_v24 = vunpack.c.l.bf16 %v3589_v53 }
 0x20a   : > { %v2799_v51 = vld [vmem:[#allocation2 + $0x90] sm:$0xff]  ;;  %4096 = vmatpush.bf16.xpose.msra.mxu0 %v4046_v63  ;;  %4842 = vmatpush.bf16.xpose.msra.mxu2 %v4046_v63  ;;  %v6580_v7 = vunpack.c.l.bf16 %v3590_v32  ;;  %v1546_v28 = vunpack.c.l.bf16 %v1482_v39  ;;  %v2198_v25 = vunpack.c.l.bf16 %v4364_v60  ;;  %v1871_v1 = vunpack.c.l.bf16 %v1791_v50  ;;  %v898_v60 = vld [vmem:[%s4915_s25 + $0x60] sm:$0xe] }
 0x20b   : > { %v2863_v8 = vadd.f32 %v2831_v47, %v2799_v51  ;;  %v2800_v14 = vld [vmem:[#allocation2 + $0x98] sm:$0xff]  ;;  %v1872_v5 = vunpack.c.l.bf16 %v1792_v59  ;;  %v2199_v21 = vunpack.c.l.bf16 %v4365_v55  ;;  %v3281_v41 = vrot.slane %v3167_v0, 1  ;;  %v899_v55 = vld [vmem:[%s4915_s25 + $0x64] sm:$0xf] }
 0x20c   : > { %v2864_v45 = vadd.f32 %v2832_v18, %v2800_v14  ;;  %v3282_v36 = vrot.slane %v3168_v37, 1  ;;  %v1513_v2 = vld [vmem:[#allocation2] sm:$0xff]  ;;  %v3284_v44 = vrot.slane %v3169_v26, 1  ;;  %v1873_v40 = vunpack.c.l.bf16 %v1793_v57  ;;  %v6599_v59 = vld [vmem:[%s4915_s25 + $0x18] sm:$0xff]  }
 0x20d   : > { %2895 = vst.msk [vmem:[#allocation2 + $0x90] sm:$0xff] %vm337_vm0, %v2863_v8  ;;  %v1577_v4 = vadd.f32 %v1545_v62, %v1513_v2  ;;  %v2246_v31 = vmul.f32 %v4973_v35, %v2197_v19  ;;  %v3671_v34 = vunpack.c.l.bf16 %v3591_v52  ;;  %v3783_v9 = vrot.slane %v3669_v24, 2 }
 0x20e   : > { %2896 = vst.msk [vmem:[#allocation2 + $0x98] sm:$0xff] %vm337_vm0, %v2864_v45  ;;  %v1514_v46 = vld [vmem:[#allocation2 + $0x8] sm:$0xff]  ;;  %v2247_v49 = vmul.f32 %v4973_v35, %v2198_v25  ;;  %v3784_v30 = vrot.slane %v6580_v7, 2  ;;  %v1967_v43 = vrot.slane %v1871_v1, 1  ;;  %v1968_v20 = vrot.slane %v1872_v5, 1 }
 0x20f   : > { %v1578_v38 = vadd.f32 %v1546_v28, %v1514_v46  ;;  %1609 = vst.msk [vmem:[#allocation2] sm:$0xff] %vm337_vm0, %v1577_v4  ;;  %v2248_v13 = vmul.f32 %v4973_v35, %v2199_v21  ;;  %v3283_v27 = vsel %vm697_vm1, %v3281_v41, %v3282_v36  ;;  %v4616_v54 = vunpack.c.l.bf16 %v4793_v6  ;;  %v900_v28 = vld [vmem:[%s4915_s25 + $0x68] sm:$0x1] }
 0x210   : > { %v4617_v15 = vunpack.c.h.bf16 %v4793_v6  ;;  %v3285_v23 = vsel %vm697_vm1, %v3282_v36, %v3284_v44  ;;  %v1970_v56 = vrot.slane %v1873_v40, 1  ;;  %v2294_v47 = vpack.c.bf16 %v2246_v31, %v2246_v31 }
 0x211   : > { %1610 = vst.msk [vmem:[#allocation2 + $0x8] sm:$0xff] %vm337_vm0, %v1578_v38  ;;  %v450_v29 = vunpack.c.l.bf16 %v396_v10  ;;  %v3786_v42 = vrot.slane %v3671_v34, 2  ;;  %v2295_v53 = vpack.c.bf16 %v2247_v49, %v2247_v49  ;;  %v257_v32 = vmul.f32 %v4616_v54, %v4917_v12  ;;  %v4445_v34 = vld [vmem:[%s4915_s25 + $0x20] sm:$0x1] }
 0x212   : > { %v258_v39 = vmul.f32 %v4617_v15, %v4917_v12  ;;  %v3785_v18 = vsel %vm1200_vm2, %v3783_v9, %v3784_v30  ;;  %v1969_v0 = vsel %vm697_vm1, %v1967_v43, %v1968_v20  ;;  %v2296_v50 = vpack.c.bf16 %v2248_v13, %v2248_v13 }
 0x213   : > { %v289_v51 = vpack.c.bf16 %v257_v32, %v257_v32  ;;  %v497_v26 = vmul.f32 %v4616_v54, %v4922_v16  ;;  %v498_v52 = vmul.f32 %v4617_v15, %v4922_v16  ;;  %v1971_v12 = vsel %vm697_vm1, %v1968_v20, %v1970_v56 }
 0x214   : > { %v3126_v58 = vld [vmem:[#allocation2 + $0x90] sm:$0xff]  ;;  %v290_v37 = vpack.c.bf16 %v258_v39, %v258_v39  ;;  %v2374_v62 = vunpack.c.l.bf16 %v2294_v47  ;;  %v499_v57 = vmul.f32 %v4922_v16, %v450_v29  ;;  %v2375_v14 = vunpack.c.l.bf16 %v2295_v53 }
 0x215   : > { %v3366_v22 = vadd.f32 %v3283_v27, %v3126_v58  ;;  %v3127_v63 = vld [vmem:[#allocation2 + $0x98] sm:$0xff]  ;;  %v4728_v24 = vunpack.c.l.bf16 %v6599_v59  ;;  %v321_v7 = vunpack.c.l.bf16 %v289_v51  ;;  %v951_v25 = vunpack.c.l.bf16 %v898_v60 }
 0x216   : > { %v3367_v8 = vadd.f32 %v3285_v23, %v3127_v63  ;;  %v1839_v19 = vld [vmem:[#allocation2] sm:$0xff]  ;;  %v2376_v5 = vunpack.c.l.bf16 %v2296_v50  ;;  %v322_v21 = vunpack.c.l.bf16 %v290_v37  ;;  %v952_v41 = vunpack.c.l.bf16 %v899_v55 }
 0x217   : > { %3398 = vst.msk [vmem:[#allocation2 + $0x90] sm:$0xff] %vm337_vm0, %v3366_v22  ;;  %v2079_v1 = vadd.f32 %v1969_v0, %v1839_v19  ;;  %v4729_v2 = vunpack.c.h.bf16 %v6599_v59  ;;  %v545_v16 = vpack.c.bf16 %v497_v26, %v497_v26  ;;  %v546_v44 = vpack.c.bf16 %v498_v52, %v498_v52  ;;  %v4491_v19 = vld [vmem:[%s4915_s25 + $0x18] sm:$0xe] }
 0x218   : > { %3399 = vst.msk [vmem:[#allocation2 + $0x98] sm:$0xff] %vm337_vm0, %v3367_v8  ;;  %v1840_v45 = vld [vmem:[#allocation2 + $0x8] sm:$0xff]  ;;  %v3787_v46 = vsel %vm1200_vm2, %v3784_v30, %v3786_v42  ;;  %v2470_v4 = vrot.slane %v2374_v62, 2  ;;  %v547_v40 = vpack.c.bf16 %v499_v57, %v499_v57  ;;  %v953_v31 = vunpack.c.l.bf16 %v900_v28 }
 0x219   : > { %v2080_v36 = vadd.f32 %v1971_v12, %v1840_v45  ;;  %354 = vst.msk [vmem:[#allocation2 + $0x80] sm:$0xff] %vm337_vm0, %v321_v7  ;;  %v2471_v6 = vrot.slane %v2375_v14, 2  ;;  %v625_v9 = vunpack.c.l.bf16 %v545_v16  ;;  %v626_v38 = vunpack.c.l.bf16 %v546_v44  ;;  %v4299_v12 = vld [vmem:[%s4915_s25 + $0x6c] sm:$0xff]  }
 0x21a   : > { %2111 = vst.msk [vmem:[#allocation2] sm:$0xff] %vm337_vm0, %v2079_v1  ;;  %v1000_v49 = vmul.f32 %v4924_v17, %v951_v25  ;;  %v2473_v10 = vrot.slane %v2376_v5, 2  ;;  %v2717_v43 = vmul.f32 %v4728_v24, %v5009_v33  ;;  %v627_v20 = vunpack.c.l.bf16 %v547_v40 }
 0x21b   : > { %2112 = vst.msk [vmem:[#allocation2 + $0x8] sm:$0xff] %vm337_vm0, %v2080_v36  ;;  %v1001_v30 = vmul.f32 %v4924_v17, %v952_v41  ;;  %v2718_v27 = vmul.f32 %v4729_v2, %v5009_v33  ;;  %v738_v54 = vrot.slane %v625_v9, 1  ;;  %v739_v15 = vrot.slane %v626_v38, 1  ;;  %v4339_v41 = vld [vmem:[%s4915_s25 + $0x6c] sm:$0xff]   ;;  %v4341_v9 = vld [vmem:[%s4915_s25 + $0x74] sm:$0x1] }
 0x21c   : > { %355 = vst.msk [vmem:[#allocation2 + $0x88] sm:$0xff] %vm337_vm0, %v322_v21  ;;  %v1002_v23 = vmul.f32 %v4924_v17, %v953_v31  ;;  %v2965_v47 = vunpack.c.l.bf16 %v4445_v34  ;;  %v3012_v29 = vmul.f32 %v4728_v24, %v5017_v61  ;;  %v741_v58 = vrot.slane %v627_v20, 1 }
 0x21d   : > { %v2472_v53 = vsel %vm1200_vm2, %v2470_v4, %v2471_v6  ;;  %v740_v32 = vsel %vm697_vm1, %v738_v54, %v739_v15  ;;  %v1048_v39 = vpack.c.bf16 %v1000_v49, %v1000_v49  ;;  %v1049_v22 = vpack.c.bf16 %v1001_v30, %v1001_v30  ;;  %v4493_v4 = vld [vmem:[%s4915_s25 + $0x20] sm:$0x1] }
 0x21e   : > { %v3628_v13 = vld [vmem:[#allocation2 + $0x90] sm:$0xff]  ;;  %v2474_v50 = vsel %vm1200_vm2, %v2471_v6, %v2473_v10  ;;  %v3013_v17 = vmul.f32 %v4729_v2, %v5017_v61  ;;  %v1050_v59 = vpack.c.bf16 %v1002_v23, %v1002_v23  ;;  %v742_v63 = vsel %vm697_vm1, %v739_v15, %v741_v58  ;;  %v4492_v2 = vld [vmem:[%s4915_s25 + $0x1c] sm:$0xf] }
 0x21f   : > { %v3868_v56 = vadd.f32 %v3785_v18, %v3628_v13  ;;  %v3629_v42 = vld [vmem:[#allocation2 + $0x98] sm:$0xff]  ;;  %v1128_v37 = vunpack.c.l.bf16 %v1048_v39  ;;  %v1129_v26 = vunpack.c.l.bf16 %v1049_v22  ;;  %v3014_v8 = vmul.f32 %v5017_v61, %v2965_v47 }
 0x220   : > { %v3869_v0 = vadd.f32 %v3787_v46, %v3629_v42  ;;  %v585_v18 = vld [vmem:[#allocation2 + $0x80] sm:$0xff]  ;;  %v2749_v57 = vpack.c.bf16 %v2717_v43, %v2717_v43  ;;  %v1130_v24 = vunpack.c.l.bf16 %v1050_v59  ;;  %v2750_v7 = vpack.c.bf16 %v2718_v27, %v2718_v27 }
 0x221   : > { %3900 = vst.msk [vmem:[#allocation2 + $0x90] sm:$0xff] %vm337_vm0, %v3868_v56  ;;  %v2342_v60 = vld [vmem:[#allocation2] sm:$0xff]  ;;  %v826_v51 = vadd.f32 %v740_v32, %v585_v18  ;;  %v1241_v25 = vrot.slane %v1128_v37, 2  ;;  %v1242_v45 = vrot.slane %v1129_v26, 2  ;;  %v3060_v1 = vpack.c.bf16 %v3012_v29, %v3012_v29 }
 0x222   : > { %3901 = vst.msk [vmem:[#allocation2 + $0x98] sm:$0xff] %vm337_vm0, %v3869_v0  ;;  %v2343_v52 = vld [vmem:[#allocation2 + $0x8] sm:$0xff]  ;;  %v2582_v55 = vadd.f32 %v2472_v53, %v2342_v60  ;;  %v3061_v5 = vpack.c.bf16 %v3013_v17, %v3013_v17  ;;  %v1432_v21 = vunpack.c.l.bf16 %v4299_v12  ;;  %v3062_v36 = vpack.c.bf16 %v3014_v8, %v3014_v8 }
 0x223   : > { %v2583_v62 = vadd.f32 %v2474_v50, %v2343_v52  ;;  %v586_v14 = vld [vmem:[#allocation2 + $0x88] sm:$0xff]  ;;  %858 = vst.msk [vmem:[#allocation2 + $0x80] sm:$0xff] %vm337_vm0, %v826_v51  ;;  %v3465_v16 = vunpack.c.l.bf16 %v4491_v19  ;;  %v2813_v46 = vunpack.c.l.bf16 %v2749_v57  ;;  %v1244_v40 = vrot.slane %v1130_v24, 2 }
 0x224   : > { %2614 = vst.msk [vmem:[#allocation2] sm:$0xff] %vm337_vm0, %v2582_v55  ;;  %v827_v28 = vadd.f32 %v742_v63, %v586_v14  ;;  %v1433_v31 = vunpack.c.h.bf16 %v4299_v12  ;;  %v2814_v6 = vunpack.c.l.bf16 %v2750_v7  ;;  %v1243_v34 = vsel %vm1200_vm2, %v1241_v25, %v1242_v45  ;;  %v4387_v52 = vld [vmem:[%s4915_s25 + $0x6c] sm:$0xe]  ;;  %v4388_v55 = vld [vmem:[%s4915_s25 + $0x70] sm:$0xf] }
 0x225   : > { %2615 = vst.msk [vmem:[#allocation2 + $0x8] sm:$0xff] %vm337_vm0, %v2583_v62  ;;  %v1718_v38 = vunpack.c.l.bf16 %v4339_v41  ;;  %v1719_v49 = vunpack.c.h.bf16 %v4339_v41  ;;  %v3140_v43 = vunpack.c.l.bf16 %v3060_v1  ;;  %v3141_v20 = vunpack.c.l.bf16 %v3061_v5 }
 0x226   : > { %859 = vst.msk [vmem:[#allocation2 + $0x88] sm:$0xff] %vm337_vm0, %v827_v28  ;;  %v3466_v30 = vunpack.c.l.bf16 %v4492_v2  ;;  %v1465_v13 = vmul.f32 %v4952_v3, %v1432_v21  ;;  %v3142_v54 = vunpack.c.l.bf16 %v3062_v36  ;;  %v3467_v15 = vunpack.c.l.bf16 %v4493_v4  ;;  %v4389_v28 = vld [vmem:[%s4915_s25 + $0x74] sm:$0x1] }
 0x227   : > { %v3514_v23 = vmul.f32 %v5056_v48, %v3465_v16  ;;  %v1245_v29 = vsel %vm1200_vm2, %v1242_v45, %v1244_v40  ;;  %v1466_v42 = vmul.f32 %v4952_v3, %v1433_v31  ;;  %v1720_v53 = vunpack.c.l.bf16 %v4341_v9 }
 0x228   : > { %v3948_v44 = vld [vmem:[#allocation2 + $0x90] sm:$0xff]  ;;  %v1767_v0 = vmul.f32 %v4956_v11, %v1718_v38  ;;  %v1768_v50 = vmul.f32 %v4956_v11, %v1719_v49  ;;  %v3515_v18 = vmul.f32 %v5056_v48, %v3466_v30  ;;  %v1497_v3 = vpack.c.bf16 %v1465_v13, %v1465_v13 }
 0x229   : > { %v3949_v10 = vld [vmem:[#allocation2 + $0x98] sm:$0xff]  ;;  %v3236_v60 = vrot.slane %v3140_v43, 1  ;;  %v3516_v63 = vmul.f32 %v5056_v48, %v3467_v15  ;;  %v3237_v37 = vrot.slane %v3141_v20, 1  ;;  %v1769_v26 = vmul.f32 %v4956_v11, %v1720_v53 }
 0x22a   : > { %v3971_v27 = vpack.c.bf16 %v3949_v10, %v3948_v44  ;;  %v1088_v56 = vld [vmem:[#allocation2 + $0x80] sm:$0xff]  ;;  %v3239_v8 = vrot.slane %v3142_v54, 1  ;;  %v1498_v12 = vpack.c.bf16 %v1466_v42, %v1466_v42  ;;  %v1815_v62 = vpack.c.bf16 %v1767_v0, %v1767_v0 }
 0x22b   : > { %v2781_v47 = vld [vmem:[#allocation2] sm:$0xff]  ;;  %v1329_v58 = vadd.f32 %v1243_v34, %v1088_v56  ;;  %v1816_v57 = vpack.c.bf16 %v1768_v50, %v1768_v50  ;;  %v3562_v19 = vpack.c.bf16 %v3514_v23, %v3514_v23  ;;  %v3563_v14 = vpack.c.bf16 %v3515_v18, %v3515_v18 }
 0x22c   : > { %v4070_v32 = vsel %vm337_vm0, %v3971_v27, 0  ;;  %v2782_v39 = vld [vmem:[#allocation2 + $0x8] sm:$0xff]  ;;  %v2845_v22 = vadd.f32 %v2813_v46, %v2781_v47  ;;  %v1561_v24 = vunpack.c.l.bf16 %v1497_v3  ;;  %v3564_v7 = vpack.c.bf16 %v3516_v63, %v3516_v63  ;;  %v4824_v3 = vld [vmem:[%s4915_s25 + $0x78] sm:$0xff]  }
 0x22d   : > { %4145 = vmatpush.bf16.xpose.msra.mxu1 %v4070_v32  ;;  %4850 = vmatpush.bf16.xpose.msra.mxu3 %v4070_v32  ;;  %v2846_v17 = vadd.f32 %v2814_v6, %v2782_v39  ;;  %v1089_v59 = vld [vmem:[#allocation2 + $0x88] sm:$0xff]  ;;  %1361 = vst.msk [vmem:[#allocation2 + $0x80] sm:$0xff] %vm337_vm0, %v1329_v58  ;;  %v2221_v25 = vunpack.c.l.bf16 %v4387_v52  ;;  %v2222_v45 = vunpack.c.l.bf16 %v4388_v55  ;;  %v3238_v1 = vsel %vm697_vm1, %v3236_v60, %v3237_v37 }
 0x22e   : > { %2877 = vst.msk [vmem:[#allocation2] sm:$0xff] %vm337_vm0, %v2845_v22  ;;  %v1330_v51 = vadd.f32 %v1245_v29, %v1089_v59  ;;  %v1817_v5 = vpack.c.bf16 %v1769_v26, %v1769_v26  ;;  %v3240_v11 = vsel %vm697_vm1, %v3237_v37, %v3239_v8  ;;  %v1562_v41 = vunpack.c.l.bf16 %v1498_v12 }
 0x22f   : > { %2878 = vst.msk [vmem:[#allocation2 + $0x8] sm:$0xff] %vm337_vm0, %v2846_v17  ;;  %v1895_v36 = vunpack.c.l.bf16 %v1815_v62  ;;  %v1896_v2 = vunpack.c.l.bf16 %v1816_v57  ;;  %v3642_v44 = vunpack.c.l.bf16 %v3562_v19  ;;  %v3643_v46 = vunpack.c.l.bf16 %v3563_v14  ;;  %v4469_v57 = vld [vmem:[%s4915_s25 + $0x80] sm:$0x1] }
 0x230   : > { %1362 = vst.msk [vmem:[#allocation2 + $0x88] sm:$0xff] %vm337_vm0, %v1330_v51  ;;  %v2223_v40 = vunpack.c.l.bf16 %v4389_v28  ;;  %v3644_v34 = vunpack.c.l.bf16 %v3564_v7  ;;  %v2270_v9 = vmul.f32 %v4973_v35, %v2221_v25  ;;  %v2271_v38 = vmul.f32 %v4973_v35, %v2222_v45 }
 0x231   : > { %v1897_v43 = vunpack.c.l.bf16 %v1817_v5  ;;  %v2007_v30 = vrot.slane %v1895_v36, 1  ;;  %v2008_v13 = vrot.slane %v1896_v2, 1  ;;  %v3738_v27 = vrot.slane %v3642_v44, 2 }
 0x232   : > { %v3739_v54 = vrot.slane %v3643_v46, 2  ;;  %v2272_v15 = vmul.f32 %v4973_v35, %v2223_v40  ;;  %v3741_v23 = vrot.slane %v3644_v34, 2  ;;  %v2318_v56 = vpack.c.bf16 %v2270_v9, %v2270_v9  ;;  %v4515_v46 = vld [vmem:[%s4915_s25 + $0x78] sm:$0xe]  ;;  %v4517_v34 = vld [vmem:[%s4915_s25 + $0x80] sm:$0x1] }
 0x233   : > { %v2319_v47 = vpack.c.bf16 %v2271_v38, %v2271_v38  ;;  %v2010_v29 = vrot.slane %v1897_v43, 1  ;;  %v2009_v58 = vsel %vm697_vm1, %v2007_v30, %v2008_v13  ;;  %v4744_v55 = vunpack.c.l.bf16 %v4824_v3 }
 0x234   : > { %v1529_v21 = vld [vmem:[#allocation2 + $0x80] sm:$0xff]  ;;  %v3740_v42 = vsel %vm1200_vm2, %v3738_v27, %v3739_v54  ;;  %v2320_v53 = vpack.c.bf16 %v2272_v15, %v2272_v15  ;;  %v3742_v32 = vsel %vm1200_vm2, %v3739_v54, %v3741_v23  ;;  %v2398_v22 = vunpack.c.l.bf16 %v2318_v56 }
 0x235   : > { %v3108_v16 = vld [vmem:[#allocation2] sm:$0xff]  ;;  %v1593_v4 = vadd.f32 %v1561_v24, %v1529_v21  ;;  %v2399_v0 = vunpack.c.l.bf16 %v2319_v47  ;;  %v2011_v35 = vsel %vm697_vm1, %v2008_v13, %v2010_v29  ;;  %v4745_v62 = vunpack.c.h.bf16 %v4824_v3 }
 0x236   : > { %v3109_v31 = vld [vmem:[#allocation2 + $0x8] sm:$0xff]  ;;  %v3348_v6 = vadd.f32 %v3238_v1, %v3108_v16  ;;  %v2400_v51 = vunpack.c.l.bf16 %v2320_v53  ;;  %v2510_v26 = vrot.slane %v2398_v22, 2  ;;  %v2733_v19 = vmul.f32 %v4744_v55, %v5009_v33  ;;  %v4594_v53 = vld [vmem:[%s6789_s2 + $0x20] sm:$0xff] }
 0x237   : > { %v3349_v49 = vadd.f32 %v3240_v11, %v3109_v31  ;;  %v1530_v10 = vld [vmem:[#allocation2 + $0x88] sm:$0xff]  ;;  %1625 = vst.msk [vmem:[#allocation2 + $0x80] sm:$0xff] %vm337_vm0, %v1593_v4  ;;  %v2511_v52 = vrot.slane %v2399_v0, 2  ;;  %v2989_v25 = vunpack.c.l.bf16 %v4469_v57  ;;  %v2734_v1 = vmul.f32 %v4745_v62, %v5009_v33  ;;  %v4516_v4 = vld [vmem:[%s4915_s25 + $0x7c] sm:$0xf] }
 0x238   : > { %3380 = vst.msk [vmem:[#allocation2] sm:$0xff] %vm337_vm0, %v3348_v6  ;;  %v1594_v20 = vadd.f32 %v1562_v41, %v1530_v10  ;;  %v2513_v8 = vrot.slane %v2400_v51, 2  ;;  %v3036_v5 = vmul.f32 %v4744_v55, %v5017_v61  ;;  %v3037_v11 = vmul.f32 %v4745_v62, %v5017_v61  ;;  %v4591_v55 = vld [vmem:[%s6789_s2 + $0x8] sm:$0xff] }
 0x239   : > { %3381 = vst.msk [vmem:[#allocation2 + $0x8] sm:$0xff] %vm337_vm0, %v3349_v49  ;;  %v2512_v12 = vsel %vm1200_vm2, %v2510_v26, %v2511_v52  ;;  %v2765_v36 = vpack.c.bf16 %v2733_v19, %v2733_v19  ;;  %v3038_v44 = vmul.f32 %v5017_v61, %v2989_v25  ;;  %v2766_v33 = vpack.c.bf16 %v2734_v1, %v2734_v1  ;;  %v4592_v25 = vld [vmem:[%s6789_s2 + $0x10] sm:$0xff] }
 0x23a   : > { %1626 = vst.msk [vmem:[#allocation2 + $0x88] sm:$0xff] %vm337_vm0, %v1594_v20  ;;  %v2514_v7 = vsel %vm1200_vm2, %v2511_v52, %v2513_v8  ;;  %v3084_v40 = vpack.c.bf16 %v3036_v5, %v3036_v5  ;;  %v3085_v31 = vpack.c.bf16 %v3037_v11, %v3037_v11  ;;  %v3489_v9 = vunpack.c.l.bf16 %v4515_v46  ;;  %v4595_v8 = vld [vmem:[%s6789_s2 + $0x28] sm:$0xff]  ;;  %v4593_v5 = vld [vmem:[%s6789_s2 + $0x18] sm:$0xff] }
 0x23b   : > { %v2829_v6 = vunpack.c.l.bf16 %v2765_v36  ;;  %v3490_v38 = vunpack.c.l.bf16 %v4516_v4  ;;  %v3086_v49 = vpack.c.bf16 %v3038_v44, %v3038_v44  ;;  %v2830_v43 = vunpack.c.l.bf16 %v2766_v33  ;;  %v4597_v11 = vld [vmem:[%s6789_s2 + $0x38] sm:$0xff] }
 0x23c   : > { %v3164_v20 = vunpack.c.l.bf16 %v3084_v40  ;;  %v3165_v30 = vunpack.c.l.bf16 %v3085_v31  ;;  %v3491_v61 = vunpack.c.l.bf16 %v4517_v34  ;;  %v3538_v27 = vmul.f32 %v5056_v48, %v3489_v9 }
 0x23d   : > { %v3539_v54 = vmul.f32 %v5056_v48, %v3490_v38  ;;  %v3166_v23 = vunpack.c.l.bf16 %v3086_v49 }
 0x23e   : > { %v1855_v39 = vld [vmem:[#allocation2 + $0x80] sm:$0xff]  ;;  %v3276_v47 = vrot.slane %v3164_v20, 1  ;;  %v3277_v29 = vrot.slane %v3165_v30, 1 }
 0x23f   : > { %v3610_v50 = vld [vmem:[#allocation2] sm:$0xff]  ;;  %v2095_v17 = vadd.f32 %v2009_v58, %v1855_v39  ;;  %v3540_v58 = vmul.f32 %v5056_v48, %v3491_v61  ;;  %v3587_v39 = vpack.c.bf16 %v3539_v54, %v3539_v54  ;;  %v3279_v22 = vrot.slane %v3166_v23, 1 }
 0x240   : > { %v3611_v18 = vld [vmem:[#allocation2 + $0x8] sm:$0xff]  ;;  %v3850_v59 = vadd.f32 %v3740_v42, %v3610_v50  ;;  %v4590_v42 = vld [vmem:[%s6789_s2] sm:$0xff]  ;;  %v3278_v0 = vsel %vm697_vm1, %v3276_v47, %v3277_v29 }
 0x241   : > { %v3851_v60 = vadd.f32 %v3742_v32, %v3611_v18  ;;  %v1856_v63 = vld [vmem:[#allocation2 + $0x88] sm:$0xff]  ;;  %2127 = vst.msk [vmem:[#allocation2 + $0x80] sm:$0xff] %vm337_vm0, %v2095_v17  ;;  %v3586_v32 = vpack.c.bf16 %v3538_v27, %v3538_v27  ;;  %v3588_v48 = vpack.c.bf16 %v3540_v58, %v3540_v58  ;;  %v3667_v17 = vunpack.c.l.bf16 %v3587_v39 }
 0x242   : > { %3882 = vst.msk [vmem:[#allocation2] sm:$0xff] %vm337_vm0, %v3850_v59  ;;  %v2096_v37 = vadd.f32 %v2011_v35, %v1856_v63  ;;  %v3280_v18 = vsel %vm697_vm1, %v3277_v29, %v3279_v22 }
 0x243   : > { %3883 = vst.msk [vmem:[#allocation2 + $0x8] sm:$0xff] %vm337_vm0, %v3851_v60  ;;  %v3666_v35 = vunpack.c.l.bf16 %v3586_v32  ;;  %v3668_v60 = vunpack.c.l.bf16 %v3588_v48 }
 0x244   : > { %2128 = vst.msk [vmem:[#allocation2 + $0x88] sm:$0xff] %vm337_vm0, %v2096_v37  ;;  %v3779_v37 = vrot.slane %v3667_v17, 2 }
 0x245   : > { %v3778_v51 = vrot.slane %v3666_v35, 2  ;;  %v3781_v26 = vrot.slane %v3668_v60, 2 }
 0x247   : > { %v3780_v52 = vsel %vm1200_vm2, %v3778_v51, %v3779_v37  ;;  %v3782_v62 = vsel %vm1200_vm2, %v3779_v37, %v3781_v26 }
 0x248   : > { %v2358_v14 = vld [vmem:[#allocation2 + $0x80] sm:$0xff] }
 0x249   : > { %v3930_v24 = vld [vmem:[#allocation2] sm:$0xff]  ;;  %v2598_v28 = vadd.f32 %v2512_v12, %v2358_v14 }
 0x24a   : > { %v3931_v45 = vld [vmem:[#allocation2 + $0x8] sm:$0xff] }
 0x24b   : > { %v3962_v21 = vpack.c.bf16 %v3931_v45, %v3930_v24  ;;  %v2359_v41 = vld [vmem:[#allocation2 + $0x88] sm:$0xff]  ;;  %2630 = vst.msk [vmem:[#allocation2 + $0x80] sm:$0xff] %vm337_vm0, %v2598_v28  ;;  %v4596_v45 = vld [vmem:[%s6789_s2 + $0x30] sm:$0xff] }
 0x24c   : > { %v2599_v2 = vadd.f32 %v2514_v7, %v2359_v41 }
 0x24d   : > { %v4043_v16 = vsel %vm337_vm0, %v3962_v21, 0 }
 0x24e   : > { %4097 = vmatpush.bf16.xpose.msra.mxu0 %v4043_v16  ;;  %4843 = vmatpush.bf16.xpose.msra.mxu2 %v4043_v16  ;;  %2631 = vst.msk [vmem:[#allocation2 + $0x88] sm:$0xff] %vm337_vm0, %v2599_v2 }
 0x252   : > { %v2797_v10 = vld [vmem:[#allocation2 + $0x80] sm:$0xff] }
 0x253   : > { %v2861_v13 = vadd.f32 %v2829_v6, %v2797_v10 }
 0x255   : > { %v2798_v15 = vld [vmem:[#allocation2 + $0x88] sm:$0xff]  ;;  %2893 = vst.msk [vmem:[#allocation2 + $0x80] sm:$0xff] %vm337_vm0, %v2861_v13  ;;  %4571 = vmatmul.msk.bf16.vlgmr.msra.gmra.mxu0 %vm337_vm0, %v4590_v42  ;;  %4575 = vmatmul.msk.bf16.vlgmr.msra.gmra.mxu2 %vm337_vm0, %v4594_v53 }
 0x256   : > { %v2862_v56 = vadd.f32 %v2830_v43, %v2798_v15 }
 0x258   : > { %2894 = vst.msk [vmem:[#allocation2 + $0x88] sm:$0xff] %vm337_vm0, %v2862_v56 }
 0x25c   : > { %v3124_v50 = vld [vmem:[#allocation2 + $0x80] sm:$0xff] }
 0x25d   : > { %v3364_v59 = vadd.f32 %v3278_v0, %v3124_v50 }
 0x25f   : > { %v3125_v3 = vld [vmem:[#allocation2 + $0x88] sm:$0xff]  ;;  %3396 = vst.msk [vmem:[#allocation2 + $0x80] sm:$0xff] %vm337_vm0, %v3364_v59 }
 0x260   : > { %v3365_v63 = vadd.f32 %v3280_v18, %v3125_v3 }
 0x262   : > { %3397 = vst.msk [vmem:[#allocation2 + $0x88] sm:$0xff] %vm337_vm0, %v3365_v63 }
 0x265   : > { %4572 = vmatmul.msk.bf16.gmra.mxu0 %vm337_vm0, %v4591_v55  ;;  %4576 = vmatmul.msk.bf16.gmra.mxu2 %vm337_vm0, %v4595_v8 }
 0x266   : > { %v3626_v12 = vld [vmem:[#allocation2 + $0x80] sm:$0xff] }
 0x267   : > { %v3866_v57 = vadd.f32 %v3780_v52, %v3626_v12 }
 0x269   : > { %v3627_v19 = vld [vmem:[#allocation2 + $0x88] sm:$0xff]  ;;  %3898 = vst.msk [vmem:[#allocation2 + $0x80] sm:$0xff] %vm337_vm0, %v3866_v57 }
 0x26a   : > { %v3867_v14 = vadd.f32 %v3782_v62, %v3627_v19 }
 0x26c   : > { %3899 = vst.msk [vmem:[#allocation2 + $0x88] sm:$0xff] %vm337_vm0, %v3867_v14 }
 0x270   : > { %v3946_v24 = vld [vmem:[#allocation2 + $0x80] sm:$0xff] }
 0x273   : > { %v3947_v7 = vld [vmem:[#allocation2 + $0x88] sm:$0xff] }
 0x274   : > { %v3970_v28 = vpack.c.bf16 %v3947_v7, %v3946_v24 }
 0x275   : > { %4573 = vmatmul.msk.bf16.gmra.mxu0 %vm337_vm0, %v4592_v25  ;;  %4577 = vmatmul.msk.bf16.gmra.mxu2 %vm337_vm0, %v4596_v45 }
 0x276   : > { %v4067_v1 = vsel %vm337_vm0, %v3970_v28, 0 }
 0x277   : > { %4146 = vmatpush.bf16.xpose.msra.mxu1 %v4067_v1  ;;  %4851 = vmatpush.bf16.xpose.msra.mxu3 %v4067_v1 }
 0x27e   : > { %4579 = vmatmul.msk.bf16.vlgmr.msra.gmra.mxu1 %vm337_vm0, %v4590_v42  ;;  %4583 = vmatmul.msk.bf16.vlgmr.msra.gmra.mxu3 %vm337_vm0, %v4594_v53 }
 0x285   : > { %4574 = vmatmul.msk.bf16.gmra.mxu0 %vm337_vm0, %v4593_v5  ;;  %4578 = vmatmul.msk.bf16.gmra.mxu2 %vm337_vm0, %v4597_v11 }
 0x28e   : > { %4580 = vmatmul.msk.bf16.gmra.mxu1 %vm337_vm0, %v4591_v55  ;;  %4584 = vmatmul.msk.bf16.gmra.mxu3 %vm337_vm0, %v4595_v8 }
 0x29e   : > { %4581 = vmatmul.msk.bf16.gmra.mxu1 %vm337_vm0, %v4592_v25  ;;  %4585 = vmatmul.msk.bf16.gmra.mxu3 %vm337_vm0, %v4596_v45 }
 0x2ae   : > { %4582 = vmatmul.msk.bf16.gmra.mxu1 %vm337_vm0, %v4593_v5  ;;  %4586 = vmatmul.msk.bf16.gmra.mxu3 %vm337_vm0, %v4597_v11 }
 0x2d2   : > { %v4099_v21 = vpop.f32.mrf.mxu0 }
 0x2d3   : > { %4188 = vst [vmem:[%s6750_s30] sm:$0xff] %v4099_v21 }
 0x2d8   : > { %v4119_v41 = vpop.f32.mrf.mxu2 }
 0x2d9   : > { %4204 = vst [vmem:[%s6750_s30 + $0x80] sm:$0xff] %v4119_v41 }
 0x2da   : > { %v4101_v36 = vpop.f32.mrf.mxu0 }
 0x2db   : > { %4190 = vst [vmem:[%s6750_s30 + $0x10] sm:$0xff] %v4101_v36 }
 0x2e0   : > { %v4121_v2 = vpop.f32.mrf.mxu2 }
 0x2e1   : > { %4206 = vst [vmem:[%s6750_s30 + $0x90] sm:$0xff] %v4121_v2 }
 0x2e2   : > { %v4104_v16 = vpop.f32.mrf.mxu0 }
 0x2e3   : > { %4192 = vst [vmem:[%s6750_s30 + $0x20] sm:$0xff] %v4104_v16 }
 0x2e8   : > { %v4124_v44 = vpop.f32.mrf.mxu2 }
 0x2e9   : > { %4208 = vst [vmem:[%s6750_s30 + $0xa0] sm:$0xff] %v4124_v44 }
 0x2ea   : > { %v4106_v46 = vpop.f32.mrf.mxu0 }
 0x2eb   : > { %4194 = vst [vmem:[%s6750_s30 + $0x30] sm:$0xff] %v4106_v46 }
 0x2f0   : > { %v4126_v4 = vpop.f32.mrf.mxu2 }
 0x2f1   : > { %4210 = vst [vmem:[%s6750_s30 + $0xb0] sm:$0xff] %v4126_v4 }
 0x2f2   : > { %v4109_v33 = vpop.f32.mrf.mxu0 }
 0x2f3   : > { %4196 = vst [vmem:[%s6750_s30 + $0x40] sm:$0xff] %v4109_v33 }
 0x2f8   : > { %v4129_v31 = vpop.f32.mrf.mxu2 }
 0x2f9   : > { %4212 = vst [vmem:[%s6750_s30 + $0xc0] sm:$0xff] %v4129_v31 }
 0x2fa   : > { %v4111_v34 = vpop.f32.mrf.mxu0 }
 0x2fb   : > { %v4148_v40 = vpop.f32.mrf.mxu1  ;;  %4198 = vst [vmem:[%s6750_s30 + $0x50] sm:$0xff] %v4111_v34 }
 0x2fc   : > { %4189 = vst [vmem:[%s6750_s30 + $0x8] sm:$0xff] %v4148_v40 }
 0x300   : > { %v4131_v38 = vpop.f32.mrf.mxu2 }
 0x301   : > { %v4168_v6 = vpop.f32.mrf.mxu3  ;;  %4214 = vst [vmem:[%s6750_s30 + $0xd0] sm:$0xff] %v4131_v38 }
 0x302   : > { %4205 = vst [vmem:[%s6750_s30 + $0x88] sm:$0xff] %v4168_v6  ;;  %v4114_v10 = vpop.f32.mrf.mxu0 }
 0x303   : > { %v4150_v9 = vpop.f32.mrf.mxu1  ;;  %4200 = vst [vmem:[%s6750_s30 + $0x60] sm:$0xff] %v4114_v10 }
 0x304   : > { %4191 = vst [vmem:[%s6750_s30 + $0x18] sm:$0xff] %v4150_v9 }
 0x308   : > { %v4134_v20 = vpop.f32.mrf.mxu2 }
 0x309   : > { %v4170_v49 = vpop.f32.mrf.mxu3  ;;  %4216 = vst [vmem:[%s6750_s30 + $0xe0] sm:$0xff] %v4134_v20 }
 0x30a   : > { %4207 = vst [vmem:[%s6750_s30 + $0x98] sm:$0xff] %v4170_v49  ;;  %v4116_v13 = vpop.f32.mrf.mxu0 }
 0x30b   : > { %v4153_v43 = vpop.f32.mrf.mxu1  ;;  %4202 = vst [vmem:[%s6750_s30 + $0x70] sm:$0xff] %v4116_v13 }
 0x30c   : > { %4193 = vst [vmem:[%s6750_s30 + $0x28] sm:$0xff] %v4153_v43 }
 0x310   : > { %v4136_v27 = vpop.f32.mrf.mxu2 }
 0x311   : > { %v4173_v30 = vpop.f32.mrf.mxu3  ;;  %4218 = vst [vmem:[%s6750_s30 + $0xf0] sm:$0xff] %v4136_v27 }
 0x312   : > { %4209 = vst [vmem:[%s6750_s30 + $0xa8] sm:$0xff] %v4173_v30 }
 0x313   : > { %v4155_v61 = vpop.f32.mrf.mxu1 }
 0x314   : > { %4195 = vst [vmem:[%s6750_s30 + $0x38] sm:$0xff] %v4155_v61 }
 0x319   : > { %v4175_v54 = vpop.f32.mrf.mxu3 }
 0x31a   : > { %4211 = vst [vmem:[%s6750_s30 + $0xb8] sm:$0xff] %v4175_v54 }
 0x31b   : > { %v4158_v15 = vpop.f32.mrf.mxu1 }
 0x31c   : > { %4197 = vst [vmem:[%s6750_s30 + $0x48] sm:$0xff] %v4158_v15 }
 0x321   : > { %v4178_v23 = vpop.f32.mrf.mxu3 }
 0x322   : > { %4213 = vst [vmem:[%s6750_s30 + $0xc8] sm:$0xff] %v4178_v23 }
 0x323   : > { %v4160_v56 = vpop.f32.mrf.mxu1 }
 0x324   : > { %4199 = vst [vmem:[%s6750_s30 + $0x58] sm:$0xff] %v4160_v56 }
 0x329   : > { %v4180_v47 = vpop.f32.mrf.mxu3 }
 0x32a   : > { %4215 = vst [vmem:[%s6750_s30 + $0xd8] sm:$0xff] %v4180_v47 }
 0x32b   : > { %v4163_v29 = vpop.f32.mrf.mxu1 }
 0x32c   : > { %4201 = vst [vmem:[%s6750_s30 + $0x68] sm:$0xff] %v4163_v29 }
 0x331   : > { %v4183_v58 = vpop.f32.mrf.mxu3 }
 0x332   : > { %4217 = vst [vmem:[%s6750_s30 + $0xe8] sm:$0xff] %v4183_v58 }
 0x333   : > { %v4165_v42 = vpop.f32.mrf.mxu1 }
 0x334   : > { %4203 = vst [vmem:[%s6750_s30 + $0x78] sm:$0xff] %v4165_v42 }
 0x339   : > { %v4185_v53 = vpop.f32.mrf.mxu3 }
 0x33a   : > { %4219 = vst [vmem:[%s6750_s30 + $0xf8] sm:$0xff] %v4185_v53 }
 0x33b PF: > { %s13_s12 = sadd.s32 1, %s4867_s12  }
 0x33c   : > { %p10_p4 = scmp.ge.s32.totalorder %s13_s12, 4  }
 0x33e   :  { %12 = sbr.rel (!%p10_p4) target bundleno = 1 (0x1), region = 64 }

</bundles_post_ra>
